<compile_context>
chip_gen: v7x
topology: tpu7x:2x2x1
jax: 0.10.0
libtpu: 0.0.40
codegen_flags: <defaults>
</compile_context>

<pallas_src>
import functools

import jax
import jax.numpy as jnp
from jax.experimental import pallas as pl
from jax.experimental.pallas import tpu as pltpu

# bf16 operands / f32 accumulation: MXU-native on v5e/v6e/v7x. Set to
# jnp.float32 to recover closer-to-PyTorch numerics (at ~2x the bytes).
COMPUTE_DTYPE = jnp.bfloat16

_LANE = 128


def _round_up(x, m):
    return ((x + m - 1) // m) * m


def _row_align(dtype):
    """Sublane packing alignment for the second-minor (row) dim."""
    itemsize = jnp.dtype(dtype).itemsize
    return {1: 32, 2: 16}.get(itemsize, 8)


def _vmem_cap_bytes():
    try:
        return int(pltpu.get_tpu_info().vmem_capacity_bytes)
    except Exception:
        return 64 << 20  # v7x per-TensorCore capacity (most conservative)


# ~75% of per-core VMEM: ~48 MiB on v7x, ~96 MiB on v5e/v6e.
_VMEM_CLAMP = min(int(0.75 * _vmem_cap_bytes()), 100 << 20)


def _vmem_limit_bytes(*block_bytes):
    # 2x each block (double buffering upper bound) + fixed margin, clamped so
    # we never request more scoped VMEM than the generation can provide.
    total = 2 * int(sum(block_bytes)) + (4 << 20)
    return int(min(max(total, 8 << 20), _VMEM_CLAMP))


def _choose_tm(Mp, tm_max, align):
    """Row tile: <= tm_max, multiple of `align`, and (when possible) giving at
    least two grid steps so v7x's two TensorCores both get work and the
    pipeline has something to prefetch."""
    if Mp <= align:
        return Mp
    if Mp <= tm_max:
        return min(Mp, max(align, _round_up(-(-Mp // 2), align)))
    return tm_max


def _resident_spec(block_shape, index_map):
    """Single-buffered BlockSpec for grid-invariant (resident) operands; they
    are fetched once, so double buffering only wastes VMEM."""
    try:
        return pl.BlockSpec(block_shape, index_map, pipeline_mode=pl.Buffered(1))
    except TypeError:  # older JAX without pipeline_mode on BlockSpec
        return pl.BlockSpec(block_shape, index_map)


# ---------------------------------------------------------------------------
# Kernels
# ---------------------------------------------------------------------------

def _gemm_bias_act_kernel(x_ref, w_ref, b_ref, o_ref, *, relu):
    """One (TM, K) x (K, N) tile: bias add + optional ReLU, f32 accumulation."""
    x = x_ref[...]
    if x.dtype != w_ref.dtype:
        # uint8 conv1 patches: 0..255 is exact in bf16; go via f32 for a safe cast.
        x = x.astype(jnp.float32).astype(w_ref.dtype)
    acc = jnp.dot(x, w_ref[...], preferred_element_type=jnp.float32)
    acc = acc + b_ref[...]                       # (TM, N) + (1, N)
    if relu:
        acc = jnp.maximum(acc, 0.0)
    o_ref[...] = acc.astype(o_ref.dtype)


def _mlp_head_kernel(x_ref, w4_ref, b4_ref, wh_ref, bh_ref, o_ref):
    """Fused fc4 (+ReLU) and head for one (TM, K) row tile."""
    x = x_ref[...]
    if x.dtype != w4_ref.dtype:
        x = x.astype(w4_ref.dtype)
    h = jnp.dot(x, w4_ref[...], preferred_element_type=jnp.float32)
    h = jnp.maximum(h + b4_ref[...], 0.0)
    out = jnp.dot(h.astype(wh_ref.dtype), wh_ref[...],
                  preferred_element_type=jnp.float32)
    o_ref[...] = (out + bh_ref[...]).astype(o_ref.dtype)


# ---------------------------------------------------------------------------
# Pallas-call wrappers
# ---------------------------------------------------------------------------

def _pad_rows(x, m):
    pad = m - x.shape[0]
    return x if pad == 0 else jnp.pad(x, ((0, pad), (0, 0)))


def gemm_bias_act(x, w, b, *, relu=True, out_dtype=jnp.float32, tm=1024):
    """(M, K) @ (K, N) + b, tiled over M. N must be a multiple of 128."""
    M, K = x.shape
    K2, N = w.shape
    assert K == K2 and N % _LANE == 0
    align = _row_align(x.dtype)
    Mp = _round_up(M, align)
    x = _pad_rows(x, Mp)
    tm = _choose_tm(Mp, tm, align)
    kernel = functools.partial(_gemm_bias_act_kernel, relu=relu)
    out = pl.pallas_call(
        kernel,
        out_shape=jax.ShapeDtypeStruct((Mp, N), out_dtype),
        grid=(pl.cdiv(Mp, tm),),
        in_specs=[
            pl.BlockSpec((tm, K), lambda i: (i, 0)),    # streamed row tiles
            _resident_spec((K, N), lambda i: (0, 0)),   # resident weight
            _resident_spec((1, N), lambda i: (0, 0)),   # resident bias
        ],
        out_specs=pl.BlockSpec((tm, N), lambda i: (i, 0)),
        compiler_params=pltpu.CompilerParams(
            dimension_semantics=("parallel",),
            vmem_limit_bytes=_vmem_limit_bytes(
                tm * K * x.dtype.itemsize,
                K * N * w.dtype.itemsize,
                N * 4,
                tm * N * jnp.dtype(out_dtype).itemsize,
            ),
        ),
    )(x, w, b.reshape(1, N))
    return out if Mp == M else out[:M]


def mlp_head(x, w4, b4, wh, bh, *, tm=1024):
    """Fused Linear(K->H)+ReLU and Linear(H->N), tiled over rows of x."""
    M, K = x.shape
    H = w4.shape[1]
    N = wh.shape[1]
    assert w4.shape[0] == K and wh.shape[0] == H
    assert H % _LANE == 0 and N % _LANE == 0
    align = _row_align(x.dtype)
    Mp = _round_up(M, align)
    x = _pad_rows(x, Mp)
    tm = _choose_tm(Mp, tm, align)
    out = pl.pallas_call(
        _mlp_head_kernel,
        out_shape=jax.ShapeDtypeStruct((Mp, N), jnp.float32),
        grid=(pl.cdiv(Mp, tm),),
        in_specs=[
            pl.BlockSpec((tm, K), lambda i: (i, 0)),
            _resident_spec((K, H), lambda i: (0, 0)),
            _resident_spec((1, H), lambda i: (0, 0)),
            _resident_spec((H, N), lambda i: (0, 0)),
            _resident_spec((1, N), lambda i: (0, 0)),
        ],
        out_specs=pl.BlockSpec((tm, N), lambda i: (i, 0)),
        compiler_params=pltpu.CompilerParams(
            dimension_semantics=("parallel",),
            vmem_limit_bytes=_vmem_limit_bytes(
                tm * K * x.dtype.itemsize,
                K * H * w4.dtype.itemsize,
                H * 4,
                H * N * wh.dtype.itemsize,
                N * 4,
                tm * H * 4,      # fc4 hidden tile (f32)
                tm * N * 4,
            ),
        ),
    )(x, w4, b4.reshape(1, H), wh, bh.reshape(1, N))
    return out if Mp == M else out[:M]


# ---------------------------------------------------------------------------
# im2col (XLA glue) and parameter preparation
# ---------------------------------------------------------------------------

def _im2col(x_nhwc, kh, kw, stride, c_take=None):
    """Patch matrix (B*OH*OW, kh*kw*c) in (kh, kw, c) feature order.

    `c_take` reads only the first `c_take` channels, skipping the zero-padded
    output channels of the previous conv at no extra cost.
    """
    B, H, W, C = x_nhwc.shape
    c = C if c_take is None else c_take
    OH = (H - kh) // stride + 1
    OW = (W - kw) // stride + 1
    cols = []
    for i in range(kh):
        for j in range(kw):
            patch = jax.lax.slice(
                x_nhwc,
                (0, i, j, 0),
                (B, i + (OH - 1) * stride + 1, j + (OW - 1) * stride + 1, c),
                (1, stride, stride, 1),
            )
            cols.append(patch)                      # (B, OH, OW, c)
    patches = jnp.concatenate(cols, axis=-1)        # (kh, kw, c) feature order
    return patches.reshape(B * OH * OW, kh * kw * c), (B, OH, OW)


def init_params(key, in_channels=4, n_actions=14):
    """Deterministic PyTorch-style uniform(-1/sqrt(fan_in), 1/sqrt(fan_in))."""
    def u(k, shape, fan_in):
        bound = 1.0 / float(fan_in) ** 0.5
        return jax.random.uniform(k, shape, jnp.float32, -bound, bound)

    ks = jax.random.split(key, 10)
    return {
        "conv1_w": u(ks[0], (32, in_channels, 8, 8), in_channels * 8 * 8),
        "conv1_b": u(ks[1], (32,), in_channels * 8 * 8),
        "conv2_w": u(ks[2], (64, 32, 4, 4), 32 * 4 * 4),
        "conv2_b": u(ks[3], (64,), 32 * 4 * 4),
        "conv3_w": u(ks[4], (64, 64, 3, 3), 64 * 3 * 3),
        "conv3_b": u(ks[5], (64,), 64 * 3 * 3),
        "fc4_w":   u(ks[6], (512, 7 * 7 * 64), 7 * 7 * 64),
        "fc4_b":   u(ks[7], (512,), 7 * 7 * 64),
        "head_w":  u(ks[8], (n_actions, 512), 512),
        "head_b":  u(ks[9], (n_actions,), 512),
    }


def prepare_params(params):
    """One-time inference layout: patch-order conv weights (1/255 folded into
    conv1), pre-transposed / row-permuted fc weights (bf16), all GEMM output N
    dims zero-padded to a multiple of 128; biases stay f32."""
    cd = COMPUTE_DTYPE

    def conv_w(w_oihw, scale=1.0):
        cout, cin, kh, kw = w_oihw.shape
        w2 = jnp.transpose(w_oihw, (2, 3, 1, 0)).reshape(kh * kw * cin, cout)
        if scale != 1.0:
            w2 = w2 * scale
        w2 = jnp.pad(w2, ((0, 0), (0, _round_up(cout, _LANE) - cout)))
        return w2.astype(cd)

    def pad_n(v):
        n = v.shape[-1]
        return jnp.pad(v, [(0, 0)] * (v.ndim - 1) + [(0, _round_up(n, _LANE) - n)])

    # fc4 weight: transpose to (in, out) and permute its input rows from the
    # PyTorch NCHW-flatten (c, h, w) order to our NHWC-flatten (h, w, c) order
    # so no runtime transpose of the conv3 activation is needed.
    fc4_w = params["fc4_w"].reshape(512, 64, 7, 7)                 # (out, c, h, w)
    fc4_w = jnp.transpose(fc4_w, (2, 3, 1, 0)).reshape(7 * 7 * 64, 512)

    return {
        "conv1_w": conv_w(params["conv1_w"], scale=1.0 / 255.0),   # (256, 128) bf16
        "conv1_b": pad_n(params["conv1_b"]),                       # (128,) f32
        "conv2_w": conv_w(params["conv2_w"]),                      # (512, 128) bf16
        "conv2_b": pad_n(params["conv2_b"]),
        "conv3_w": conv_w(params["conv3_w"]),                      # (576, 128) bf16
        "conv3_b": pad_n(params["conv3_b"]),
        "fc4_w":   fc4_w.astype(cd),                               # (3136, 512) bf16
        "fc4_b":   params["fc4_b"],                                # (512,) f32
        "head_w":  pad_n(params["head_w"].T).astype(cd),           # (512, 128) bf16
        "head_b":  pad_n(params["head_b"]),                        # (128,) f32
    }


# ---------------------------------------------------------------------------
# Forward pass (matches DQN.forward)
# ---------------------------------------------------------------------------

@functools.partial(jax.jit, static_argnames=("n_actions",))
def dqn_forward(p, x_nchw, *, n_actions=14):
    """x_nchw: (B, C, 84, 84) uint8 (or any numeric). Matches DQN.forward."""
    x = jnp.transpose(x_nchw, (0, 2, 3, 1))                  # NHWC, still uint8
    # conv1: 8x8 stride 4, 32 real channels (padded to 128); /255 is folded
    # into the weight; bf16 activation out.
    patches, (B, OH, OW) = _im2col(x, 8, 8, 4)
    x = gemm_bias_act(patches, p["conv1_w"], p["conv1_b"],
                      out_dtype=COMPUTE_DTYPE).reshape(B, OH, OW, -1)
    # conv2: 4x4 stride 2, 64 real channels; read only the 32 real input ch.
    patches, (B, OH, OW) = _im2col(x, 4, 4, 2, c_take=32)
    x = gemm_bias_act(patches, p["conv2_w"], p["conv2_b"],
                      out_dtype=COMPUTE_DTYPE).reshape(B, OH, OW, -1)
    # conv3: 3x3 stride 1, 64 real channels; read only the 64 real input ch.
    patches, (B, OH, OW) = _im2col(x, 3, 3, 1, c_take=64)
    x = gemm_bias_act(patches, p["conv3_w"], p["conv3_b"],
                      out_dtype=COMPUTE_DTYPE).reshape(B, OH, OW, -1)  # (B,7,7,128)
    # NHWC flatten over the 64 real channels; fc4_w rows were permuted to
    # (h, w, c) order in prepare_params, so no runtime transpose is needed.
    x = x[:, :, :, :64].reshape(B, -1)                       # (B, 3136) bf16
    # fc4 + head fused in a single pallas_call; strip the head's lane padding.
    out = mlp_head(x, p["fc4_w"], p["fc4_b"], p["head_w"], p["head_b"])
    return out[:, :n_actions]                                # (B, n_actions) f32


if __name__ == "__main__":
    key = jax.random.PRNGKey(0)
    pkey, xkey = jax.random.split(key)
    params = init_params(pkey, in_channels=4, n_actions=14)
    prepped = prepare_params(params)          # one-time weight layout / padding

    # 84x84 spatial is implied by fc4 expecting 7*7*64 features.
    B, C, H, W = 2, 4, 84, 84
    x = jax.random.randint(xkey, (B, C, H, W), 0, 256, dtype=jnp.int32).astype(jnp.uint8)

    out = dqn_forward(prepped, x, n_actions=14)
    out = jax.block_until_ready(out)
    assert out.shape == (B, 14) and out.dtype == jnp.float32
    print("KERNEL_OK")
</pallas_src>

<mosaic_0001>
module attributes {stable_mosaic.version = 11 : i64} {
  func.func @_gemm_bias_act_kernel(%arg0: i32, %arg1: memref<416x256xi8, #tpu.memory_space<vmem>>, %arg2: memref<256x128xbf16, #tpu.memory_space<vmem>>, %arg3: memref<1x128xf32, #tpu.memory_space<vmem>>, %arg4: memref<416x128xbf16, #tpu.memory_space<vmem>>) attributes {dimension_semantics = [#tpu.dimension_semantics<parallel>], iteration_bounds = array<i64: 2>, scalar_prefetch = 0 : i64, scratch_operands = 0 : i64, tpu.core_type = #tpu.core_type<tc>, window_params = [{transform_indices = @transform_0, window_bounds = array<i64: 416, 256>}, {pipeline_mode = #tpu.pipeline_mode<synchronous>, transform_indices = @transform_1, window_bounds = array<i64: 256, 128>}, {pipeline_mode = #tpu.pipeline_mode<synchronous>, transform_indices = @transform_2, window_bounds = array<i64: 1, 128>}, {transform_indices = @transform_3, window_bounds = array<i64: 416, 128>}]} {
    %c0 = arith.constant 0 : index
    %c0_0 = arith.constant 0 : index
    %0 = vector.load %arg1[%c0, %c0_0] : memref<416x256xi8, #tpu.memory_space<vmem>>, vector<416x256xi8>
    %1 = arith.uitofp %0 : vector<416x256xi8> to vector<416x256xf32>
    %2 = arith.truncf %1 : vector<416x256xf32> to vector<416x256xbf16>
    %c0_1 = arith.constant 0 : index
    %c0_2 = arith.constant 0 : index
    %3 = vector.load %arg2[%c0_1, %c0_2] : memref<256x128xbf16, #tpu.memory_space<vmem>>, vector<256x128xbf16>
    %cst = arith.constant dense<0.000000e+00> : vector<416x128xf32>
    %4 = tpu.matmul %2, %3, %cst {dimension_numbers = #tpu.dot_dimension_numbers<[1], [0], [0], [1], [0, 0, 1, 1], [], []>} : vector<416x256xbf16>, vector<256x128xbf16>, vector<416x128xf32> -> vector<416x128xf32>
    %c0_3 = arith.constant 0 : index
    %c0_4 = arith.constant 0 : index
    %5 = vector.load %arg3[%c0_3, %c0_4] : memref<1x128xf32, #tpu.memory_space<vmem>>, vector<1x128xf32>
    %6 = vector.broadcast %5 : vector<1x128xf32> to vector<416x128xf32>
    %7 = arith.addf %4, %6 : vector<416x128xf32>
    %cst_5 = arith.constant 0.000000e+00 : f32
    %8 = vector.broadcast %cst_5 : f32 to vector<416x128xf32>
    %9 = arith.maximumf %7, %8 : vector<416x128xf32>
    %10 = arith.truncf %9 : vector<416x128xf32> to vector<416x128xbf16>
    %c0_6 = arith.constant 0 : index
    %c0_7 = arith.constant 0 : index
    %11 = vector.load %arg4[%c0_6, %c0_7] : memref<416x128xbf16, #tpu.memory_space<vmem>>, vector<416x128xbf16>
    tpu.vector_store %arg4[%c0_6, %c0_7], %10 {strides = array<i32>} : memref<416x128xbf16, #tpu.memory_space<vmem>>, vector<416x128xbf16>,
    return
  }
  func.func @transform_0(%arg0: i32) -> (i32, i32) {
    %c0_i32 = arith.constant 0 : i32
    %c0_i32_0 = arith.constant 0 : i32
    return %arg0, %c0_i32 : i32, i32
  }
  func.func @transform_1(%arg0: i32) -> (i32, i32) {
    %c0_i32 = arith.constant 0 : i32
    %c0_i32_0 = arith.constant 0 : i32
    %c0_i32_1 = arith.constant 0 : i32
    return %c0_i32, %c0_i32_0 : i32, i32
  }
  func.func @transform_2(%arg0: i32) -> (i32, i32) {
    %c0_i32 = arith.constant 0 : i32
    %c0_i32_0 = arith.constant 0 : i32
    %c0_i32_1 = arith.constant 0 : i32
    return %c0_i32, %c0_i32_0 : i32, i32
  }
  func.func @transform_3(%arg0: i32) -> (i32, i32) {
    %c0_i32 = arith.constant 0 : i32
    %c0_i32_0 = arith.constant 0 : i32
    return %arg0, %c0_i32 : i32, i32
  }
}

module attributes {stable_mosaic.version = 11 : i64} {
  func.func @_gemm_bias_act_kernel(%arg0: i32, %arg1: memref<96x512xbf16, #tpu.memory_space<vmem>>, %arg2: memref<512x128xbf16, #tpu.memory_space<vmem>>, %arg3: memref<1x128xf32, #tpu.memory_space<vmem>>, %arg4: memref<96x128xbf16, #tpu.memory_space<vmem>>) attributes {dimension_semantics = [#tpu.dimension_semantics<parallel>], iteration_bounds = array<i64: 2>, scalar_prefetch = 0 : i64, scratch_operands = 0 : i64, tpu.core_type = #tpu.core_type<tc>, window_params = [{transform_indices = @transform_0, window_bounds = array<i64: 96, 512>}, {pipeline_mode = #tpu.pipeline_mode<synchronous>, transform_indices = @transform_1, window_bounds = array<i64: 512, 128>}, {pipeline_mode = #tpu.pipeline_mode<synchronous>, transform_indices = @transform_2, window_bounds = array<i64: 1, 128>}, {transform_indices = @transform_3, window_bounds = array<i64: 96, 128>}]} {
    %c0 = arith.constant 0 : index
    %c0_0 = arith.constant 0 : index
    %0 = vector.load %arg1[%c0, %c0_0] : memref<96x512xbf16, #tpu.memory_space<vmem>>, vector<96x512xbf16>
    %c0_1 = arith.constant 0 : index
    %c0_2 = arith.constant 0 : index
    %1 = vector.load %arg2[%c0_1, %c0_2] : memref<512x128xbf16, #tpu.memory_space<vmem>>, vector<512x128xbf16>
    %cst = arith.constant dense<0.000000e+00> : vector<96x128xf32>
    %2 = tpu.matmul %0, %1, %cst {dimension_numbers = #tpu.dot_dimension_numbers<[1], [0], [0], [1], [0, 0, 1, 1], [], []>} : vector<96x512xbf16>, vector<512x128xbf16>, vector<96x128xf32> -> vector<96x128xf32>
    %c0_3 = arith.constant 0 : index
    %c0_4 = arith.constant 0 : index
    %3 = vector.load %arg3[%c0_3, %c0_4] : memref<1x128xf32, #tpu.memory_space<vmem>>, vector<1x128xf32>
    %4 = vector.broadcast %3 : vector<1x128xf32> to vector<96x128xf32>
    %5 = arith.addf %2, %4 : vector<96x128xf32>
    %cst_5 = arith.constant 0.000000e+00 : f32
    %6 = vector.broadcast %cst_5 : f32 to vector<96x128xf32>
    %7 = arith.maximumf %5, %6 : vector<96x128xf32>
    %8 = arith.truncf %7 : vector<96x128xf32> to vector<96x128xbf16>
    %c0_6 = arith.constant 0 : index
    %c0_7 = arith.constant 0 : index
    %9 = vector.load %arg4[%c0_6, %c0_7] : memref<96x128xbf16, #tpu.memory_space<vmem>>, vector<96x128xbf16>
    tpu.vector_store %arg4[%c0_6, %c0_7], %8 {strides = array<i32>} : memref<96x128xbf16, #tpu.memory_space<vmem>>, vector<96x128xbf16>,
    return
  }
  func.func @transform_0(%arg0: i32) -> (i32, i32) {
    %c0_i32 = arith.constant 0 : i32
    %c0_i32_0 = arith.constant 0 : i32
    return %arg0, %c0_i32 : i32, i32
  }
  func.func @transform_1(%arg0: i32) -> (i32, i32) {
    %c0_i32 = arith.constant 0 : i32
    %c0_i32_0 = arith.constant 0 : i32
    %c0_i32_1 = arith.constant 0 : i32
    return %c0_i32, %c0_i32_0 : i32, i32
  }
  func.func @transform_2(%arg0: i32) -> (i32, i32) {
    %c0_i32 = arith.constant 0 : i32
    %c0_i32_0 = arith.constant 0 : i32
    %c0_i32_1 = arith.constant 0 : i32
    return %c0_i32, %c0_i32_0 : i32, i32
  }
  func.func @transform_3(%arg0: i32) -> (i32, i32) {
    %c0_i32 = arith.constant 0 : i32
    %c0_i32_0 = arith.constant 0 : i32
    return %arg0, %c0_i32 : i32, i32
  }
}

module attributes {stable_mosaic.version = 11 : i64} {
  func.func @_gemm_bias_act_kernel(%arg0: i32, %arg1: memref<64x576xbf16, #tpu.memory_space<vmem>>, %arg2: memref<576x128xbf16, #tpu.memory_space<vmem>>, %arg3: memref<1x128xf32, #tpu.memory_space<vmem>>, %arg4: memref<64x128xbf16, #tpu.memory_space<vmem>>) attributes {dimension_semantics = [#tpu.dimension_semantics<parallel>], iteration_bounds = array<i64: 2>, scalar_prefetch = 0 : i64, scratch_operands = 0 : i64, tpu.core_type = #tpu.core_type<tc>, window_params = [{transform_indices = @transform_0, window_bounds = array<i64: 64, 576>}, {pipeline_mode = #tpu.pipeline_mode<synchronous>, transform_indices = @transform_1, window_bounds = array<i64: 576, 128>}, {pipeline_mode = #tpu.pipeline_mode<synchronous>, transform_indices = @transform_2, window_bounds = array<i64: 1, 128>}, {transform_indices = @transform_3, window_bounds = array<i64: 64, 128>}]} {
    %c0 = arith.constant 0 : index
    %c0_0 = arith.constant 0 : index
    %0 = vector.load %arg1[%c0, %c0_0] : memref<64x576xbf16, #tpu.memory_space<vmem>>, vector<64x576xbf16>
    %c0_1 = arith.constant 0 : index
    %c0_2 = arith.constant 0 : index
    %1 = vector.load %arg2[%c0_1, %c0_2] : memref<576x128xbf16, #tpu.memory_space<vmem>>, vector<576x128xbf16>
    %cst = arith.constant dense<0.000000e+00> : vector<64x128xf32>
    %2 = tpu.matmul %0, %1, %cst {dimension_numbers = #tpu.dot_dimension_numbers<[1], [0], [0], [1], [0, 0, 1, 1], [], []>} : vector<64x576xbf16>, vector<576x128xbf16>, vector<64x128xf32> -> vector<64x128xf32>
    %c0_3 = arith.constant 0 : index
    %c0_4 = arith.constant 0 : index
    %3 = vector.load %arg3[%c0_3, %c0_4] : memref<1x128xf32, #tpu.memory_space<vmem>>, vector<1x128xf32>
    %4 = vector.broadcast %3 : vector<1x128xf32> to vector<64x128xf32>
    %5 = arith.addf %2, %4 : vector<64x128xf32>
    %cst_5 = arith.constant 0.000000e+00 : f32
    %6 = vector.broadcast %cst_5 : f32 to vector<64x128xf32>
    %7 = arith.maximumf %5, %6 : vector<64x128xf32>
    %8 = arith.truncf %7 : vector<64x128xf32> to vector<64x128xbf16>
    %c0_6 = arith.constant 0 : index
    %c0_7 = arith.constant 0 : index
    %9 = vector.load %arg4[%c0_6, %c0_7] : memref<64x128xbf16, #tpu.memory_space<vmem>>, vector<64x128xbf16>
    tpu.vector_store %arg4[%c0_6, %c0_7], %8 {strides = array<i32>} : memref<64x128xbf16, #tpu.memory_space<vmem>>, vector<64x128xbf16>,
    return
  }
  func.func @transform_0(%arg0: i32) -> (i32, i32) {
    %c0_i32 = arith.constant 0 : i32
    %c0_i32_0 = arith.constant 0 : i32
    return %arg0, %c0_i32 : i32, i32
  }
  func.func @transform_1(%arg0: i32) -> (i32, i32) {
    %c0_i32 = arith.constant 0 : i32
    %c0_i32_0 = arith.constant 0 : i32
    %c0_i32_1 = arith.constant 0 : i32
    return %c0_i32, %c0_i32_0 : i32, i32
  }
  func.func @transform_2(%arg0: i32) -> (i32, i32) {
    %c0_i32 = arith.constant 0 : i32
    %c0_i32_0 = arith.constant 0 : i32
    %c0_i32_1 = arith.constant 0 : i32
    return %c0_i32, %c0_i32_0 : i32, i32
  }
  func.func @transform_3(%arg0: i32) -> (i32, i32) {
    %c0_i32 = arith.constant 0 : i32
    %c0_i32_0 = arith.constant 0 : i32
    return %arg0, %c0_i32 : i32, i32
  }
}

module attributes {stable_mosaic.version = 11 : i64} {
  func.func @_mlp_head_kernel(%arg0: i32, %arg1: memref<16x3136xbf16, #tpu.memory_space<vmem>>, %arg2: memref<3136x512xbf16, #tpu.memory_space<vmem>>, %arg3: memref<1x512xf32, #tpu.memory_space<vmem>>, %arg4: memref<512x128xbf16, #tpu.memory_space<vmem>>, %arg5: memref<1x128xf32, #tpu.memory_space<vmem>>, %arg6: memref<16x128xf32, #tpu.memory_space<vmem>>) attributes {dimension_semantics = [#tpu.dimension_semantics<parallel>], iteration_bounds = array<i64: 1>, scalar_prefetch = 0 : i64, scratch_operands = 0 : i64, tpu.core_type = #tpu.core_type<tc>, window_params = [{transform_indices = @transform_0, window_bounds = array<i64: 16, 3136>}, {pipeline_mode = #tpu.pipeline_mode<synchronous>, transform_indices = @transform_1, window_bounds = array<i64: 3136, 512>}, {pipeline_mode = #tpu.pipeline_mode<synchronous>, transform_indices = @transform_2, window_bounds = array<i64: 1, 512>}, {pipeline_mode = #tpu.pipeline_mode<synchronous>, transform_indices = @transform_3, window_bounds = array<i64: 512, 128>}, {pipeline_mode = #tpu.pipeline_mode<synchronous>, transform_indices = @transform_4, window_bounds = array<i64: 1, 128>}, {transform_indices = @transform_5, window_bounds = array<i64: 16, 128>}]} {
    %c0 = arith.constant 0 : index
    %c0_0 = arith.constant 0 : index
    %0 = vector.load %arg1[%c0, %c0_0] : memref<16x3136xbf16, #tpu.memory_space<vmem>>, vector<16x3136xbf16>
    %c0_1 = arith.constant 0 : index
    %c0_2 = arith.constant 0 : index
    %1 = vector.load %arg2[%c0_1, %c0_2] : memref<3136x512xbf16, #tpu.memory_space<vmem>>, vector<3136x512xbf16>
    %cst = arith.constant dense<0.000000e+00> : vector<16x512xf32>
    %2 = tpu.matmul %0, %1, %cst {dimension_numbers = #tpu.dot_dimension_numbers<[1], [0], [0], [1], [0, 0, 1, 1], [], []>} : vector<16x3136xbf16>, vector<3136x512xbf16>, vector<16x512xf32> -> vector<16x512xf32>
    %c0_3 = arith.constant 0 : index
    %c0_4 = arith.constant 0 : index
    %3 = vector.load %arg3[%c0_3, %c0_4] : memref<1x512xf32, #tpu.memory_space<vmem>>, vector<1x512xf32>
    %4 = vector.broadcast %3 : vector<1x512xf32> to vector<16x512xf32>
    %5 = arith.addf %2, %4 : vector<16x512xf32>
    %cst_5 = arith.constant 0.000000e+00 : f32
    %6 = vector.broadcast %cst_5 : f32 to vector<16x512xf32>
    %7 = arith.maximumf %5, %6 : vector<16x512xf32>
    %8 = arith.truncf %7 : vector<16x512xf32> to vector<16x512xbf16>
    %c0_6 = arith.constant 0 : index
    %c0_7 = arith.constant 0 : index
    %9 = vector.load %arg4[%c0_6, %c0_7] : memref<512x128xbf16, #tpu.memory_space<vmem>>, vector<512x128xbf16>
    %cst_8 = arith.constant dense<0.000000e+00> : vector<16x128xf32>
    %10 = tpu.matmul %8, %9, %cst_8 {dimension_numbers = #tpu.dot_dimension_numbers<[1], [0], [0], [1], [0, 0, 1, 1], [], []>} : vector<16x512xbf16>, vector<512x128xbf16>, vector<16x128xf32> -> vector<16x128xf32>
    %c0_9 = arith.constant 0 : index
    %c0_10 = arith.constant 0 : index
    %11 = vector.load %arg5[%c0_9, %c0_10] : memref<1x128xf32, #tpu.memory_space<vmem>>, vector<1x128xf32>
    %12 = vector.broadcast %11 : vector<1x128xf32> to vector<16x128xf32>
    %13 = arith.addf %10, %12 : vector<16x128xf32>
    %c0_11 = arith.constant 0 : index
    %c0_12 = arith.constant 0 : index
    %14 = vector.load %arg6[%c0_11, %c0_12] : memref<16x128xf32, #tpu.memory_space<vmem>>, vector<16x128xf32>
    tpu.vector_store %arg6[%c0_11, %c0_12], %13 {strides = array<i32>} : memref<16x128xf32, #tpu.memory_space<vmem>>, vector<16x128xf32>,
    return
  }
  func.func @transform_0(%arg0: i32) -> (i32, i32) {
    %c0_i32 = arith.constant 0 : i32
    %c0_i32_0 = arith.constant 0 : i32
    return %arg0, %c0_i32 : i32, i32
  }
  func.func @transform_1(%arg0: i32) -> (i32, i32) {
    %c0_i32 = arith.constant 0 : i32
    %c0_i32_0 = arith.constant 0 : i32
    %c0_i32_1 = arith.constant 0 : i32
    return %c0_i32, %c0_i32_0 : i32, i32
  }
  func.func @transform_2(%arg0: i32) -> (i32, i32) {
    %c0_i32 = arith.constant 0 : i32
    %c0_i32_0 = arith.constant 0 : i32
    %c0_i32_1 = arith.constant 0 : i32
    return %c0_i32, %c0_i32_0 : i32, i32
  }
  func.func @transform_3(%arg0: i32) -> (i32, i32) {
    %c0_i32 = arith.constant 0 : i32
    %c0_i32_0 = arith.constant 0 : i32
    %c0_i32_1 = arith.constant 0 : i32
    return %c0_i32, %c0_i32_0 : i32, i32
  }
  func.func @transform_4(%arg0: i32) -> (i32, i32) {
    %c0_i32 = arith.constant 0 : i32
    %c0_i32_0 = arith.constant 0 : i32
    %c0_i32_1 = arith.constant 0 : i32
    return %c0_i32, %c0_i32_0 : i32, i32
  }
  func.func @transform_5(%arg0: i32) -> (i32, i32) {
    %c0_i32 = arith.constant 0 : i32
    %c0_i32_0 = arith.constant 0 : i32
    return %arg0, %c0_i32 : i32, i32
  }
}

</mosaic_0001>

<bundles_post_ra>
// kernel: dqn_forward.4
= control target key start
LH: loop header
LB: loop body
LE: loop exit
PB: predicated region body
PF: predicated region fallthrough
CT: control target
= control target key end

     0   :  { %s1935_s12 = smov 0   ;;  %s1937_s13 = smov 0   ;;  %s2344_s0 = inlined_call_operand.vmem [shape: u8[800,256], index: 0, kind: input, shape index: {}]   ;;  %s2345_s1 = inlined_call_operand.vmem [shape: bf16[256,128], index: 1, kind: input, shape index: {}]   ;;  %s2346_s2 = inlined_call_operand.vmem [shape: f32[1,128], index: 2, kind: input, shape index: {}]   ;;  %s2347_s3 = inlined_call_operand.vmem [shape: bf16[800,128], index: 3, kind: output, shape index: {}]  }
   0x1   :  { %s1939_s14 = smov 0  }
   0x2 LB: > { %s1948_s15 = sadd.s32 4294967295, %s1880_s14   ;;  %s1950_s16 = sadd.s32 1, %s1880_s14   ;;  %s1880_s14 = sphi %s1939_s14, %s2354_s14   ;;  %s1876_s13 = sphi %s1937_s13, %s2353_s13   ;;  %s1872_s12 = sphi %s1935_s12, %s2352_s12  }
   0x3   : > { %s85_s17 = ssub.s32 %s1880_s14, %s1950_s16  ;;  %s88_s18 = sadd.s32 1, %s1876_s13 }
   0x4   : > { %p86_p0 = scmp.eq.s32.totalorder %s85_s17, 0  ;;  %p98_p1 = scmp.ne.s32.totalorder %s1876_s13, %s1872_s12 }
   0x5   : > { %p99_p2 = scmp.eq.s32.totalorder %s1948_s15, 1  ;;  %p1390_p3 = scmp.ge.s32.totalorder %s1880_s14, 1 }
   0x6   : > { %s1958_s19 = scalar_select %p86_p0, %s1876_s13, %s88_s18  }
   0x7   : > { %p1960_p4 = por %p99_p2, %p98_p1  ;;  %p149_p5 = scmp.lt.s32.totalorder %s1880_s14, 3 }
   0x9   : > { %p150_p6 = pnand %p1390_p3, %p149_p5 }
   0xa   : > { %v1806_v0 = vld [vmem:[%s2345_s1] sm:$0xff] (!%p150_p6)   ;;  %v1914_v1 = vmov (!%p150_p6), 0   ;;  %s178_s23 = smul.u32 (!%p150_p6), 13, %s1948_s15  ;;  %v1807_v2 = vld [vmem:[%s2345_s1 + $0x8] sm:$0xff] (!%p150_p6)   ;;  %v1808_v3 = vld [vmem:[%s2345_s1 + $0x10] sm:$0xff] (!%p150_p6)  }
   0xb   : > { %153 = sbr.rel (%p150_p6) target bundleno = 488 (0x1e8), region = 32  ;;  %414 = vmatprep.subr.bf16.mxu0 (!%p150_p6), %v1914_v1  ;;  %1683 = vmatprep.subr.bf16.mxu1 (!%p150_p6), %v1914_v1  ;;  %v1809_v4 = vld [vmem:[%s2345_s1 + $0x18] sm:$0xff] (!%p150_p6)   ;;  %v1810_v5 = vld [vmem:[%s2345_s1 + $0x20] sm:$0xff] (!%p150_p6)   ;;  %v1811_v10 = vld [vmem:[%s2345_s1 + $0x28] sm:$0xff] (!%p150_p6)  }
   0xc   : > { %415 = vmatpush1.bf16.msra.mxu0 (!%p150_p6), %v1806_v0  ;;  %1699 = vmatpush1.bf16.msra.mxu1 (!%p150_p6), %v1806_v0  ;;  %p184_p7 = scmp.lt.s32.totalorder (!%p150_p6), %s178_s23, 24  ;;  %v1812_v11 = vld [vmem:[%s2345_s1 + $0x30] sm:$0xff] (!%p150_p6)   ;;  %v1813_v12 = vld [vmem:[%s2345_s1 + $0x38] sm:$0xff] (!%p150_p6)   ;;  %v1814_v13 = vld [vmem:[%s2345_s1 + $0x40] sm:$0xff] (!%p150_p6)  }
   0xd   : > { %416 = vmatprep.subr.bf16.mxu0 (!%p150_p6), %v1914_v1  ;;  %1684 = vmatprep.subr.bf16.mxu1 (!%p150_p6), %v1914_v1  ;;  %v1815_v14 = vld [vmem:[%s2345_s1 + $0x48] sm:$0xff] (!%p150_p6)   ;;  %v1816_v15 = vld [vmem:[%s2345_s1 + $0x50] sm:$0xff] (!%p150_p6)   ;;  %v1817_v16 = vld [vmem:[%s2345_s1 + $0x58] sm:$0xff] (!%p150_p6)  }
   0xe   : > { %v1818_v17 = vld [vmem:[%s2345_s1 + $0x60] sm:$0xff] (!%p150_p6)   ;;  %v1819_v18 = vld [vmem:[%s2345_s1 + $0x68] sm:$0xff] (!%p150_p6)   ;;  %v1820_v19 = vld [vmem:[%s2345_s1 + $0x70] sm:$0xff] (!%p150_p6)  }
   0xf   : > { %v1821_v20 = vld [vmem:[%s2345_s1 + $0x78] sm:$0xff] (!%p150_p6)  }
  0x10   : > { %417 = vmatpush1.bf16.msra.mxu0 (!%p150_p6), %v1807_v2  ;;  %1700 = vmatpush1.bf16.msra.mxu1 (!%p150_p6), %v1807_v2 }
  0x11   : > { %418 = vmatprep.subr.bf16.mxu0 (!%p150_p6), %v1914_v1  ;;  %1685 = vmatprep.subr.bf16.mxu1 (!%p150_p6), %v1914_v1 }
  0x12   : > { %s2356_s23 = smov (!%p184_p7, %s178_s23), 24  ;;  %s974_s18 = smul.u32 (%p1960_p4), 52, %s1948_s15 }
  0x13   : > { %s1474_s30 = sshll.u32 %s2356_s23, 4  ;;  %s1527_s21 = smul.u32 (%p1960_p4), 208, %s1948_s15 }
  0x14   : > { %419 = vmatpush1.bf16.msra.mxu0 %v1808_v3  ;;  %1701 = vmatpush1.bf16.msra.mxu1 %v1808_v3  ;;  %s1988_s6 = scalar_lea.vmem %s2344_s0, %s1474_s30  ;;  %s975_s22 = ssub.s32 (%p1960_p4), 100, %s974_s18 }
  0x15   : > { %420 = vmatprep.subr.bf16.mxu0 %v1914_v1  ;;  %1686 = vmatprep.subr.bf16.mxu1 %v1914_v1  ;;  %v1996_v6 = vld [vmem:[%s1988_s6 + $0x8] sm:$0xff]  ;;  %v201_v21 = vld [vmem:[%s1988_s6] sm:$0xff]  ;;  %v216_v23 = vld [vmem:[%s1988_s6 + $0x78] sm:$0xff]  ;;  %p976_p8 = scmp.lt.s32.totalorder (%p1960_p4), %s975_s22, 52  ;;  %s2181_s25 = scalar_lea.vmem (%p1960_p4), %s2347_s3, %s1527_s21  }
  0x16   : > { %v1999_v7 = vld [vmem:[%s1988_s6 + $0x68] sm:$0xff]  ;;  %v228_v8 = vunpack.c.l.u8.bf16 %v1996_v6  ;;  %v2058_v22 = vld [vmem:[%s1988_s6 + $0x60] sm:$0xff]  ;;  %v227_v24 = vunpack.c.l.u8.bf16 %v201_v21  ;;  %v230_v26 = vunpack.c.h.u8.bf16 %v1996_v6  ;;  %v256_v27 = vunpack.c.l.u8.bf16 %v216_v23  ;;  %v215_v28 = vld [vmem:[%s1988_s6 + $0x70] sm:$0xff] }
  0x17   : > { %v254_v9 = vunpack.c.h.u8.bf16 %v1999_v7  ;;  %v253_v25 = vunpack.c.h.u8.bf16 %v2058_v22  ;;  %v204_v29 = vld [vmem:[%s1988_s6 + $0x18] sm:$0xff]  ;;  %v229_v30 = vunpack.c.h.u8.bf16 %v201_v21  ;;  %v255_v31 = vunpack.c.l.u8.bf16 %v215_v28  ;;  %v203_v34 = vld [vmem:[%s1988_s6 + $0x10] sm:$0xff]  ;;  %v218_v35 = vld [vmem:[%s1988_s6 + $0x88] sm:$0xff] }
  0x18   : > { %421 = vmatpush1.bf16.msra.mxu0 %v1809_v4  ;;  %1702 = vmatpush1.bf16.msra.mxu1 %v1809_v4  ;;  %v232_v32 = vunpack.c.l.u8.bf16 %v204_v29  ;;  %v258_v33 = vunpack.c.h.u8.bf16 %v216_v23  ;;  %v231_v36 = vunpack.c.l.u8.bf16 %v203_v34  ;;  %v257_v37 = vunpack.c.h.u8.bf16 %v215_v28  ;;  %v217_v40 = vld [vmem:[%s1988_s6 + $0x80] sm:$0xff]  ;;  %v206_v41 = vld [vmem:[%s1988_s6 + $0x28] sm:$0xff]  ;;  %v220_v47 = vld [vmem:[%s1988_s6 + $0x98] sm:$0xff] }
  0x19   : > { %422 = vmatprep.subr.bf16.mxu0 %v1914_v1  ;;  %1687 = vmatprep.subr.bf16.mxu1 %v1914_v1  ;;  %v234_v38 = vunpack.c.h.u8.bf16 %v204_v29  ;;  %v260_v39 = vunpack.c.l.u8.bf16 %v218_v35  ;;  %v233_v42 = vunpack.c.h.u8.bf16 %v203_v34  ;;  %v259_v43 = vunpack.c.l.u8.bf16 %v217_v40  ;;  %v205_v46 = vld [vmem:[%s1988_s6 + $0x20] sm:$0xff]  ;;  %v219_v52 = vld [vmem:[%s1988_s6 + $0x90] sm:$0xff]  ;;  %v208_v53 = vld [vmem:[%s1988_s6 + $0x38] sm:$0xff] }
  0x1a   : > { %446 = vmatprep.mubr.bf16.mxu0 %v228_v8  ;;  %550 = vmatprep.mubr.bf16.mxu1 %v254_v9  ;;  %v236_v44 = vunpack.c.l.u8.bf16 %v206_v41  ;;  %v262_v45 = vunpack.c.h.u8.bf16 %v218_v35  ;;  %v235_v48 = vunpack.c.l.u8.bf16 %v205_v46  ;;  %v261_v49 = vunpack.c.h.u8.bf16 %v217_v40  ;;  %v207_v58 = vld [vmem:[%s1988_s6 + $0x30] sm:$0xff]  ;;  %v222_v59 = vld [vmem:[%s1988_s6 + $0xa8] sm:$0xff]  ;;  %v221_v0 = vld [vmem:[%s1988_s6 + $0xa0] sm:$0xff] }
  0x1b   : > { %v238_v50 = vunpack.c.h.u8.bf16 %v206_v41  ;;  %v264_v51 = vunpack.c.l.u8.bf16 %v220_v47  ;;  %v237_v54 = vunpack.c.h.u8.bf16 %v205_v46  ;;  %v263_v55 = vunpack.c.l.u8.bf16 %v219_v52  ;;  %v209_v6 = vld [vmem:[%s1988_s6 + $0x40] sm:$0xff]  ;;  %v224_v8 = vld [vmem:[%s1988_s6 + $0xb8] sm:$0xff] }
  0x1c   : > { %423 = vmatpush1.bf16.msra.mxu0 %v1810_v5  ;;  %1703 = vmatpush1.bf16.msra.mxu1 %v1810_v5  ;;  %v240_v56 = vunpack.c.l.u8.bf16 %v208_v53  ;;  %v266_v57 = vunpack.c.h.u8.bf16 %v220_v47  ;;  %v239_v60 = vunpack.c.l.u8.bf16 %v207_v58  ;;  %v265_v61 = vunpack.c.h.u8.bf16 %v219_v52 }
  0x1d   : > { %424 = vmatprep.subr.bf16.mxu0 %v1914_v1  ;;  %1688 = vmatprep.subr.bf16.mxu1 %v1914_v1  ;;  %v242_v62 = vunpack.c.h.u8.bf16 %v208_v53  ;;  %v268_v63 = vunpack.c.l.u8.bf16 %v222_v59  ;;  %v241_v2 = vunpack.c.h.u8.bf16 %v207_v58  ;;  %v267_v3 = vunpack.c.l.u8.bf16 %v221_v0 }
  0x1e   : > { %v270_v5 = vunpack.c.h.u8.bf16 %v222_v59  ;;  %v243_v9 = vunpack.c.l.u8.bf16 %v209_v6  ;;  %v252_v29 = vunpack.c.l.u8.bf16 %v1999_v7 }
  0x20   : > { %425 = vmatpush1.bf16.msra.mxu0 %v1811_v10  ;;  %1704 = vmatpush1.bf16.msra.mxu1 %v1811_v10  ;;  %v269_v10 = vunpack.c.h.u8.bf16 %v221_v0 }
  0x21   : > { %426 = vmatprep.subr.bf16.mxu0 %v1914_v1  ;;  %1689 = vmatprep.subr.bf16.mxu1 %v1914_v1 }
  0x24   : > { %427 = vmatpush1.bf16.msra.mxu0 %v1812_v11  ;;  %1705 = vmatpush1.bf16.msra.mxu1 %v1812_v11 }
  0x25   : > { %428 = vmatprep.subr.bf16.mxu0 %v1914_v1  ;;  %1690 = vmatprep.subr.bf16.mxu1 %v1914_v1 }
  0x28   : > { %429 = vmatpush1.bf16.msra.mxu0 %v1813_v12  ;;  %1706 = vmatpush1.bf16.msra.mxu1 %v1813_v12  ;;  %v272_v12 = vunpack.c.l.u8.bf16 %v224_v8 }
  0x29   : > { %430 = vmatprep.subr.bf16.mxu0 %v1914_v1  ;;  %1691 = vmatprep.subr.bf16.mxu1 %v1914_v1 }
  0x2c   : > { %431 = vmatpush1.bf16.msra.mxu0 %v1814_v13  ;;  %1707 = vmatpush1.bf16.msra.mxu1 %v1814_v13  ;;  %v223_v13 = vld [vmem:[%s1988_s6 + $0xb0] sm:$0xff] }
  0x2d   : > { %432 = vmatprep.subr.bf16.mxu0 %v1914_v1  ;;  %1692 = vmatprep.subr.bf16.mxu1 %v1914_v1  ;;  %v273_v23 = vunpack.c.h.u8.bf16 %v223_v13 }
  0x30   : > { %433 = vmatpush1.bf16.msra.mxu0 %v1815_v14  ;;  %1708 = vmatpush1.bf16.msra.mxu1 %v1815_v14  ;;  %v212_v14 = vld [vmem:[%s1988_s6 + $0x58] sm:$0xff] }
  0x31   : > { %434 = vmatprep.subr.bf16.mxu0 %v1914_v1  ;;  %1693 = vmatprep.subr.bf16.mxu1 %v1914_v1 }
  0x34   : > { %435 = vmatpush1.bf16.msra.mxu0 %v1816_v15  ;;  %1709 = vmatpush1.bf16.msra.mxu1 %v1816_v15  ;;  %v245_v15 = vunpack.c.h.u8.bf16 %v209_v6 }
  0x35   : > { %436 = vmatprep.subr.bf16.mxu0 %v1914_v1  ;;  %1694 = vmatprep.subr.bf16.mxu1 %v1914_v1 }
  0x38   : > { %437 = vmatpush1.bf16.msra.mxu0 %v1817_v16  ;;  %1710 = vmatpush1.bf16.msra.mxu1 %v1817_v16  ;;  %v271_v16 = vunpack.c.l.u8.bf16 %v223_v13 }
  0x39   : > { %438 = vmatprep.subr.bf16.mxu0 %v1914_v1  ;;  %1695 = vmatprep.subr.bf16.mxu1 %v1914_v1 }
  0x3c   : > { %439 = vmatpush1.bf16.msra.mxu0 %v1818_v17  ;;  %1711 = vmatpush1.bf16.msra.mxu1 %v1818_v17  ;;  %v248_v17 = vunpack.c.l.u8.bf16 %v212_v14 }
  0x3d   : > { %440 = vmatprep.subr.bf16.mxu0 %v1914_v1  ;;  %1696 = vmatprep.subr.bf16.mxu1 %v1914_v1 }
  0x40   : > { %441 = vmatpush1.bf16.msra.mxu0 %v1819_v18  ;;  %1712 = vmatpush1.bf16.msra.mxu1 %v1819_v18  ;;  %v274_v18 = vunpack.c.h.u8.bf16 %v224_v8 }
  0x41   : > { %442 = vmatprep.subr.bf16.mxu0 %v1914_v1  ;;  %1697 = vmatprep.subr.bf16.mxu1 %v1914_v1 }
  0x44   : > { %443 = vmatpush1.bf16.msra.mxu0 %v1820_v19  ;;  %1713 = vmatpush1.bf16.msra.mxu1 %v1820_v19  ;;  %v211_v19 = vld [vmem:[%s1988_s6 + $0x50] sm:$0xff] }
  0x45   : > { %444 = vmatprep.subr.bf16.mxu0 %v1914_v1  ;;  %1698 = vmatprep.subr.bf16.mxu1 %v1914_v1  ;;  %v210_v1 = vld [vmem:[%s1988_s6 + $0x48] sm:$0xff]  ;;  %v247_v21 = vunpack.c.l.u8.bf16 %v211_v19 }
  0x46   : > { %v244_v4 = vunpack.c.l.u8.bf16 %v210_v1  ;;  %v246_v11 = vunpack.c.h.u8.bf16 %v210_v1 }
  0x48   : > { %445 = vmatpush1.bf16.msra.mxu0 %v1821_v20  ;;  %1714 = vmatpush1.bf16.msra.mxu1 %v1821_v20  ;;  %v226_v20 = vld [vmem:[%s1988_s6 + $0xc8] sm:$0xff] }
  0x4b   : > { %447 = vmatmul.mubr.bf16.vlgmr.msra.gmra.mrb[0].mxu0 %v227_v24  ;;  %551 = vmatmul.mubr.bf16.vlgmr.msra.gmra.mrb[0].mxu1 %v253_v25  ;;  %v250_v24 = vunpack.c.h.u8.bf16 %v212_v14  ;;  %v276_v25 = vunpack.c.l.u8.bf16 %v226_v20 }
  0x4c   : > { %454 = vmatprep.mubr.bf16.mxu0 %v230_v26  ;;  %558 = vmatprep.mubr.bf16.mxu1 %v256_v27  ;;  %v225_v26 = vld [vmem:[%s1988_s6 + $0xc0] sm:$0xff]  ;;  %v249_v27 = vunpack.c.h.u8.bf16 %v211_v19  ;;  %s175_s6 = sand.u32 1, %s1872_s12  }
  0x4d   : > { %v275_v28 = vunpack.c.l.u8.bf16 %v225_v26  ;;  %s1715_s17 = smul.u32 208, %s175_s6 }
  0x4f   : > { %s2098_s12 = scalar_lea.vmem [#allocation2], %s1715_s17  }
  0x53   : > { %455 = vmatmul.mubr.bf16.gmra.mrb[4].mxu0 %v229_v30  ;;  %559 = vmatmul.mubr.bf16.gmra.mrb[4].mxu1 %v255_v31  ;;  %v278_v30 = vunpack.c.h.u8.bf16 %v226_v20  ;;  %v251_v31 = vunpack.c.l.u8.bf16 %v2058_v22 }
  0x54   : > { %462 = vmatprep.mubr.bf16.mxu0 %v232_v32  ;;  %566 = vmatprep.mubr.bf16.mxu1 %v258_v33  ;;  %v277_v32 = vunpack.c.h.u8.bf16 %v225_v26  ;;  %v2091_v33 = vld [vmem:[%s2346_s2] ss:$0 sm:$0xff] }
  0x5b   : > { %463 = vmatmul.mubr.bf16.gmra.mrb[8].mxu0 %v231_v36  ;;  %567 = vmatmul.mubr.bf16.gmra.mrb[8].mxu1 %v257_v37 }
  0x5c   : > { %470 = vmatprep.mubr.bf16.mxu0 %v234_v38  ;;  %574 = vmatprep.mubr.bf16.mxu1 %v260_v39 }
  0x63   : > { %471 = vmatmul.mubr.bf16.gmra.mrb[12].mxu0 %v233_v42  ;;  %575 = vmatmul.mubr.bf16.gmra.mrb[12].mxu1 %v259_v43 }
  0x64   : > { %478 = vmatprep.mubr.bf16.mxu0 %v236_v44  ;;  %582 = vmatprep.mubr.bf16.mxu1 %v262_v45 }
  0x6b   : > { %479 = vmatmul.mubr.bf16.gmra.mrb[16].mxu0 %v235_v48  ;;  %583 = vmatmul.mubr.bf16.gmra.mrb[16].mxu1 %v261_v49 }
  0x6c   : > { %486 = vmatprep.mubr.bf16.mxu0 %v238_v50  ;;  %590 = vmatprep.mubr.bf16.mxu1 %v264_v51 }
  0x73   : > { %487 = vmatmul.mubr.bf16.gmra.mrb[20].mxu0 %v237_v54  ;;  %591 = vmatmul.mubr.bf16.gmra.mrb[20].mxu1 %v263_v55 }
  0x74   : > { %494 = vmatprep.mubr.bf16.mxu0 %v240_v56  ;;  %598 = vmatprep.mubr.bf16.mxu1 %v266_v57 }
  0x7b   : > { %495 = vmatmul.mubr.bf16.gmra.mrb[24].mxu0 %v239_v60  ;;  %599 = vmatmul.mubr.bf16.gmra.mrb[24].mxu1 %v265_v61 }
  0x7c   : > { %502 = vmatprep.mubr.bf16.mxu0 %v242_v62  ;;  %606 = vmatprep.mubr.bf16.mxu1 %v268_v63 }
  0x83   : > { %503 = vmatmul.mubr.bf16.gmra.mrb[28].mxu0 %v241_v2  ;;  %607 = vmatmul.mubr.bf16.gmra.mrb[28].mxu1 %v267_v3 }
  0x84   : > { %510 = vmatprep.mubr.bf16.mxu0 %v244_v4  ;;  %614 = vmatprep.mubr.bf16.mxu1 %v270_v5 }
  0x8b   : > { %511 = vmatmul.mubr.bf16.gmra.mrb[32].mxu0 %v243_v9  ;;  %615 = vmatmul.mubr.bf16.gmra.mrb[32].mxu1 %v269_v10 }
  0x8c   : > { %518 = vmatprep.mubr.bf16.mxu0 %v246_v11  ;;  %622 = vmatprep.mubr.bf16.mxu1 %v272_v12 }
  0x93   : > { %519 = vmatmul.mubr.bf16.gmra.mrb[36].mxu0 %v245_v15  ;;  %623 = vmatmul.mubr.bf16.gmra.mrb[36].mxu1 %v271_v16 }
  0x94   : > { %526 = vmatprep.mubr.bf16.mxu0 %v248_v17  ;;  %630 = vmatprep.mubr.bf16.mxu1 %v274_v18 }
  0x9b   : > { %527 = vmatmul.mubr.bf16.gmra.mrb[40].mxu0 %v247_v21  ;;  %631 = vmatmul.mubr.bf16.gmra.mrb[40].mxu1 %v273_v23 }
  0x9c   : > { %534 = vmatprep.mubr.bf16.mxu0 %v250_v24  ;;  %638 = vmatprep.mubr.bf16.mxu1 %v276_v25 }
  0xa3   : > { %535 = vmatmul.mubr.bf16.gmra.mrb[44].mxu0 %v249_v27  ;;  %639 = vmatmul.mubr.bf16.gmra.mrb[44].mxu1 %v275_v28 }
  0xa4   : > { %542 = vmatprep.mubr.bf16.mxu0 %v252_v29  ;;  %646 = vmatprep.mubr.bf16.mxu1 %v278_v30 }
  0xab   : > { %543 = vmatmul.mubr.bf16.gmra.mrb[48].mxu0 %v251_v31  ;;  %647 = vmatmul.mubr.bf16.gmra.mrb[48].mxu1 %v277_v32 }
 0x11e   : > { %v448_v34 = vpop.f32.mrb[0].mxu0  ;;  %v552_v35 = vpop.f32.mrb[0].mxu1 }
 0x11f   : > { %v449_v7 = vadd.f32 %v2091_v33, %v448_v34  ;;  %v553_v36 = vadd.f32 %v2091_v33, %v552_v35  ;;  %v450_v37 = vpop.f32.mrb[1].mxu0  ;;  %v554_v38 = vpop.f32.mrb[1].mxu1 }
 0x120   : > { %v451_v39 = vpop.f32.mrb[2].mxu0  ;;  %v555_v22 = vpop.f32.mrb[2].mxu1 }
 0x121   : > { %v452_v40 = vadd.f32 %v2091_v33, %v451_v39  ;;  %v556_v41 = vadd.f32 %v2091_v33, %v555_v22  ;;  %v453_v42 = vpop.f32.mrb[3].mxu0  ;;  %v557_v43 = vpop.f32.mrb[3].mxu1  ;;  %v655_v44 = vmax.f32 %v449_v7, 0.0  ;;  %v681_v45 = vmax.f32 %v553_v36, 0.0 }
 0x123   : > { %v656_v46 = vmax.f32 %v452_v40, 0.0  ;;  %v682_v47 = vmax.f32 %v556_v41, 0.0 }
 0x125   : > { %v1531_v48 = vpack.c.bf16 %v656_v46, %v655_v44  ;;  %v1596_v49 = vpack.c.bf16 %v682_v47, %v681_v45 }
 0x126   : > { %v456_v50 = vpop.f32.mrb[4].mxu0  ;;  %v560_v51 = vpop.f32.mrb[4].mxu1 }
 0x127   : > { %1532 = vst [vmem:[%s2098_s12] sm:$0xff] %v1531_v48   ;;  %1670 = vst [vmem:[%s2098_s12 + $0x68] sm:$0xff] %v1596_v49   ;;  %v457_v52 = vadd.f32 %v2091_v33, %v456_v50  ;;  %v561_v53 = vadd.f32 %v2091_v33, %v560_v51  ;;  %v458_v54 = vpop.f32.mrb[5].mxu0  ;;  %v562_v55 = vpop.f32.mrb[5].mxu1 }
 0x128   : > { %v459_v56 = vpop.f32.mrb[6].mxu0  ;;  %v563_v57 = vpop.f32.mrb[6].mxu1 }
 0x129   : > { %v460_v58 = vadd.f32 %v2091_v33, %v459_v56  ;;  %v564_v59 = vadd.f32 %v2091_v33, %v563_v57  ;;  %v461_v60 = vpop.f32.mrb[7].mxu0  ;;  %v565_v61 = vpop.f32.mrb[7].mxu1  ;;  %v657_v62 = vmax.f32 %v457_v52, 0.0  ;;  %v683_v63 = vmax.f32 %v561_v53, 0.0 }
 0x12b   : > { %v658_v0 = vmax.f32 %v460_v58, 0.0  ;;  %v684_v1 = vmax.f32 %v564_v59, 0.0 }
 0x12d   : > { %v1536_v2 = vpack.c.bf16 %v658_v0, %v657_v62  ;;  %v1601_v3 = vpack.c.bf16 %v684_v1, %v683_v63 }
 0x12e   : > { %v464_v4 = vpop.f32.mrb[8].mxu0  ;;  %v568_v5 = vpop.f32.mrb[8].mxu1 }
 0x12f   : > { %1658 = vst [vmem:[%s2098_s12 + $0x8] sm:$0xff] %v1536_v2   ;;  %1671 = vst [vmem:[%s2098_s12 + $0x70] sm:$0xff] %v1601_v3   ;;  %v465_v6 = vadd.f32 %v2091_v33, %v464_v4  ;;  %v569_v8 = vadd.f32 %v2091_v33, %v568_v5  ;;  %v466_v9 = vpop.f32.mrb[9].mxu0  ;;  %v570_v10 = vpop.f32.mrb[9].mxu1 }
 0x130   : > { %v467_v11 = vpop.f32.mrb[10].mxu0  ;;  %v571_v12 = vpop.f32.mrb[10].mxu1 }
 0x131   : > { %v468_v13 = vadd.f32 %v2091_v33, %v467_v11  ;;  %v572_v14 = vadd.f32 %v2091_v33, %v571_v12  ;;  %v469_v15 = vpop.f32.mrb[11].mxu0  ;;  %v573_v16 = vpop.f32.mrb[11].mxu1  ;;  %v659_v17 = vmax.f32 %v465_v6, 0.0  ;;  %v685_v18 = vmax.f32 %v569_v8, 0.0 }
 0x133   : > { %v660_v19 = vmax.f32 %v468_v13, 0.0  ;;  %v686_v20 = vmax.f32 %v572_v14, 0.0 }
 0x135   : > { %v1541_v21 = vpack.c.bf16 %v660_v19, %v659_v17  ;;  %v1606_v23 = vpack.c.bf16 %v686_v20, %v685_v18 }
 0x136   : > { %v472_v24 = vpop.f32.mrb[12].mxu0  ;;  %v576_v25 = vpop.f32.mrb[12].mxu1 }
 0x137   : > { %1659 = vst [vmem:[%s2098_s12 + $0x10] sm:$0xff] %v1541_v21   ;;  %1672 = vst [vmem:[%s2098_s12 + $0x78] sm:$0xff] %v1606_v23   ;;  %v473_v26 = vadd.f32 %v2091_v33, %v472_v24  ;;  %v577_v27 = vadd.f32 %v2091_v33, %v576_v25  ;;  %v474_v28 = vpop.f32.mrb[13].mxu0  ;;  %v578_v29 = vpop.f32.mrb[13].mxu1 }
 0x138   : > { %v475_v30 = vpop.f32.mrb[14].mxu0  ;;  %v579_v31 = vpop.f32.mrb[14].mxu1 }
 0x139   : > { %v476_v32 = vadd.f32 %v2091_v33, %v475_v30  ;;  %v580_v34 = vadd.f32 %v2091_v33, %v579_v31  ;;  %v477_v35 = vpop.f32.mrb[15].mxu0  ;;  %v581_v7 = vpop.f32.mrb[15].mxu1  ;;  %v661_v36 = vmax.f32 %v473_v26, 0.0  ;;  %v687_v37 = vmax.f32 %v577_v27, 0.0 }
 0x13b   : > { %v662_v38 = vmax.f32 %v476_v32, 0.0  ;;  %v688_v39 = vmax.f32 %v580_v34, 0.0 }
 0x13d   : > { %v1546_v22 = vpack.c.bf16 %v662_v38, %v661_v36  ;;  %v1611_v40 = vpack.c.bf16 %v688_v39, %v687_v37 }
 0x13e   : > { %v480_v41 = vpop.f32.mrb[16].mxu0  ;;  %v584_v42 = vpop.f32.mrb[16].mxu1 }
 0x13f   : > { %1660 = vst [vmem:[%s2098_s12 + $0x18] sm:$0xff] %v1546_v22   ;;  %1673 = vst [vmem:[%s2098_s12 + $0x80] sm:$0xff] %v1611_v40   ;;  %v481_v43 = vadd.f32 %v2091_v33, %v480_v41  ;;  %v585_v44 = vadd.f32 %v2091_v33, %v584_v42  ;;  %v482_v45 = vpop.f32.mrb[17].mxu0  ;;  %v586_v46 = vpop.f32.mrb[17].mxu1 }
 0x140   : > { %v483_v47 = vpop.f32.mrb[18].mxu0  ;;  %v587_v48 = vpop.f32.mrb[18].mxu1 }
 0x141   : > { %v484_v49 = vadd.f32 %v2091_v33, %v483_v47  ;;  %v588_v50 = vadd.f32 %v2091_v33, %v587_v48  ;;  %v485_v51 = vpop.f32.mrb[19].mxu0  ;;  %v589_v52 = vpop.f32.mrb[19].mxu1  ;;  %v663_v53 = vmax.f32 %v481_v43, 0.0  ;;  %v689_v54 = vmax.f32 %v585_v44, 0.0 }
 0x143   : > { %v664_v55 = vmax.f32 %v484_v49, 0.0  ;;  %v690_v56 = vmax.f32 %v588_v50, 0.0 }
 0x145   : > { %v1551_v57 = vpack.c.bf16 %v664_v55, %v663_v53  ;;  %v1616_v58 = vpack.c.bf16 %v690_v56, %v689_v54 }
 0x146   : > { %v488_v59 = vpop.f32.mrb[20].mxu0  ;;  %v592_v60 = vpop.f32.mrb[20].mxu1 }
 0x147   : > { %1661 = vst [vmem:[%s2098_s12 + $0x20] sm:$0xff] %v1551_v57   ;;  %1674 = vst [vmem:[%s2098_s12 + $0x88] sm:$0xff] %v1616_v58   ;;  %v489_v61 = vadd.f32 %v2091_v33, %v488_v59  ;;  %v593_v62 = vadd.f32 %v2091_v33, %v592_v60  ;;  %v490_v63 = vpop.f32.mrb[21].mxu0  ;;  %v594_v0 = vpop.f32.mrb[21].mxu1 }
 0x148   : > { %v491_v1 = vpop.f32.mrb[22].mxu0  ;;  %v595_v2 = vpop.f32.mrb[22].mxu1 }
 0x149   : > { %v492_v3 = vadd.f32 %v2091_v33, %v491_v1  ;;  %v596_v4 = vadd.f32 %v2091_v33, %v595_v2  ;;  %v493_v5 = vpop.f32.mrb[23].mxu0  ;;  %v597_v6 = vpop.f32.mrb[23].mxu1  ;;  %v665_v8 = vmax.f32 %v489_v61, 0.0  ;;  %v691_v9 = vmax.f32 %v593_v62, 0.0 }
 0x14b   : > { %v666_v10 = vmax.f32 %v492_v3, 0.0  ;;  %v692_v11 = vmax.f32 %v596_v4, 0.0 }
 0x14d   : > { %v1556_v12 = vpack.c.bf16 %v666_v10, %v665_v8  ;;  %v1621_v13 = vpack.c.bf16 %v692_v11, %v691_v9 }
 0x14e   : > { %v496_v14 = vpop.f32.mrb[24].mxu0  ;;  %v600_v15 = vpop.f32.mrb[24].mxu1 }
 0x14f   : > { %1662 = vst [vmem:[%s2098_s12 + $0x28] sm:$0xff] %v1556_v12   ;;  %1675 = vst [vmem:[%s2098_s12 + $0x90] sm:$0xff] %v1621_v13   ;;  %v497_v16 = vadd.f32 %v2091_v33, %v496_v14  ;;  %v601_v17 = vadd.f32 %v2091_v33, %v600_v15  ;;  %v498_v18 = vpop.f32.mrb[25].mxu0  ;;  %v602_v19 = vpop.f32.mrb[25].mxu1 }
 0x150   : > { %v499_v20 = vpop.f32.mrb[26].mxu0  ;;  %v603_v21 = vpop.f32.mrb[26].mxu1 }
 0x151   : > { %v500_v23 = vadd.f32 %v2091_v33, %v499_v20  ;;  %v604_v24 = vadd.f32 %v2091_v33, %v603_v21  ;;  %v501_v25 = vpop.f32.mrb[27].mxu0  ;;  %v605_v26 = vpop.f32.mrb[27].mxu1  ;;  %v667_v27 = vmax.f32 %v497_v16, 0.0  ;;  %v693_v28 = vmax.f32 %v601_v17, 0.0 }
 0x153   : > { %v668_v29 = vmax.f32 %v500_v23, 0.0  ;;  %v694_v30 = vmax.f32 %v604_v24, 0.0 }
 0x155   : > { %v1561_v31 = vpack.c.bf16 %v668_v29, %v667_v27  ;;  %v1626_v32 = vpack.c.bf16 %v694_v30, %v693_v28 }
 0x156   : > { %v504_v34 = vpop.f32.mrb[28].mxu0  ;;  %v608_v35 = vpop.f32.mrb[28].mxu1 }
 0x157   : > { %1663 = vst [vmem:[%s2098_s12 + $0x30] sm:$0xff] %v1561_v31   ;;  %1676 = vst [vmem:[%s2098_s12 + $0x98] sm:$0xff] %v1626_v32   ;;  %v505_v7 = vadd.f32 %v2091_v33, %v504_v34  ;;  %v609_v36 = vadd.f32 %v2091_v33, %v608_v35  ;;  %v506_v37 = vpop.f32.mrb[29].mxu0  ;;  %v610_v38 = vpop.f32.mrb[29].mxu1 }
 0x158   : > { %v507_v39 = vpop.f32.mrb[30].mxu0  ;;  %v611_v22 = vpop.f32.mrb[30].mxu1 }
 0x159   : > { %v508_v40 = vadd.f32 %v2091_v33, %v507_v39  ;;  %v612_v41 = vadd.f32 %v2091_v33, %v611_v22  ;;  %v509_v42 = vpop.f32.mrb[31].mxu0  ;;  %v613_v43 = vpop.f32.mrb[31].mxu1  ;;  %v669_v44 = vmax.f32 %v505_v7, 0.0  ;;  %v695_v45 = vmax.f32 %v609_v36, 0.0 }
 0x15b   : > { %v670_v46 = vmax.f32 %v508_v40, 0.0  ;;  %v696_v47 = vmax.f32 %v612_v41, 0.0 }
 0x15d   : > { %v1566_v48 = vpack.c.bf16 %v670_v46, %v669_v44  ;;  %v1631_v49 = vpack.c.bf16 %v696_v47, %v695_v45 }
 0x15e   : > { %v512_v50 = vpop.f32.mrb[32].mxu0  ;;  %v616_v51 = vpop.f32.mrb[32].mxu1 }
 0x15f   : > { %1664 = vst [vmem:[%s2098_s12 + $0x38] sm:$0xff] %v1566_v48   ;;  %1677 = vst [vmem:[%s2098_s12 + $0xa0] sm:$0xff] %v1631_v49   ;;  %v513_v52 = vadd.f32 %v2091_v33, %v512_v50  ;;  %v617_v53 = vadd.f32 %v2091_v33, %v616_v51  ;;  %v514_v54 = vpop.f32.mrb[33].mxu0  ;;  %v618_v55 = vpop.f32.mrb[33].mxu1 }
 0x160   : > { %v515_v56 = vpop.f32.mrb[34].mxu0  ;;  %v619_v57 = vpop.f32.mrb[34].mxu1 }
 0x161   : > { %v516_v58 = vadd.f32 %v2091_v33, %v515_v56  ;;  %v620_v59 = vadd.f32 %v2091_v33, %v619_v57  ;;  %v517_v60 = vpop.f32.mrb[35].mxu0  ;;  %v621_v61 = vpop.f32.mrb[35].mxu1  ;;  %v671_v62 = vmax.f32 %v513_v52, 0.0  ;;  %v697_v63 = vmax.f32 %v617_v53, 0.0 }
 0x163   : > { %v672_v0 = vmax.f32 %v516_v58, 0.0  ;;  %v698_v1 = vmax.f32 %v620_v59, 0.0 }
 0x165   : > { %v1571_v2 = vpack.c.bf16 %v672_v0, %v671_v62  ;;  %v1636_v3 = vpack.c.bf16 %v698_v1, %v697_v63 }
 0x166   : > { %v520_v4 = vpop.f32.mrb[36].mxu0  ;;  %v624_v5 = vpop.f32.mrb[36].mxu1 }
 0x167   : > { %1665 = vst [vmem:[%s2098_s12 + $0x40] sm:$0xff] %v1571_v2   ;;  %1678 = vst [vmem:[%s2098_s12 + $0xa8] sm:$0xff] %v1636_v3   ;;  %v521_v6 = vadd.f32 %v2091_v33, %v520_v4  ;;  %v625_v8 = vadd.f32 %v2091_v33, %v624_v5  ;;  %v522_v9 = vpop.f32.mrb[37].mxu0  ;;  %v626_v10 = vpop.f32.mrb[37].mxu1 }
 0x168   : > { %v523_v11 = vpop.f32.mrb[38].mxu0  ;;  %v627_v12 = vpop.f32.mrb[38].mxu1 }
 0x169   : > { %v524_v13 = vadd.f32 %v2091_v33, %v523_v11  ;;  %v628_v14 = vadd.f32 %v2091_v33, %v627_v12  ;;  %v525_v15 = vpop.f32.mrb[39].mxu0  ;;  %v629_v16 = vpop.f32.mrb[39].mxu1  ;;  %v673_v17 = vmax.f32 %v521_v6, 0.0  ;;  %v699_v18 = vmax.f32 %v625_v8, 0.0 }
 0x16b   : > { %v674_v19 = vmax.f32 %v524_v13, 0.0  ;;  %v700_v20 = vmax.f32 %v628_v14, 0.0 }
 0x16d   : > { %v1576_v21 = vpack.c.bf16 %v674_v19, %v673_v17  ;;  %v1641_v23 = vpack.c.bf16 %v700_v20, %v699_v18 }
 0x16e   : > { %v528_v24 = vpop.f32.mrb[40].mxu0  ;;  %v632_v25 = vpop.f32.mrb[40].mxu1 }
 0x16f   : > { %1666 = vst [vmem:[%s2098_s12 + $0x48] sm:$0xff] %v1576_v21   ;;  %1679 = vst [vmem:[%s2098_s12 + $0xb0] sm:$0xff] %v1641_v23   ;;  %v529_v26 = vadd.f32 %v2091_v33, %v528_v24  ;;  %v633_v27 = vadd.f32 %v2091_v33, %v632_v25  ;;  %v530_v28 = vpop.f32.mrb[41].mxu0  ;;  %v634_v29 = vpop.f32.mrb[41].mxu1 }
 0x170   : > { %v531_v30 = vpop.f32.mrb[42].mxu0  ;;  %v635_v31 = vpop.f32.mrb[42].mxu1 }
 0x171   : > { %v532_v32 = vadd.f32 %v2091_v33, %v531_v30  ;;  %v636_v34 = vadd.f32 %v2091_v33, %v635_v31  ;;  %v533_v35 = vpop.f32.mrb[43].mxu0  ;;  %v637_v7 = vpop.f32.mrb[43].mxu1  ;;  %v675_v36 = vmax.f32 %v529_v26, 0.0  ;;  %v701_v37 = vmax.f32 %v633_v27, 0.0 }
 0x173   : > { %v676_v38 = vmax.f32 %v532_v32, 0.0  ;;  %v702_v39 = vmax.f32 %v636_v34, 0.0 }
 0x175   : > { %v1581_v22 = vpack.c.bf16 %v676_v38, %v675_v36  ;;  %v1646_v40 = vpack.c.bf16 %v702_v39, %v701_v37 }
 0x176   : > { %v536_v41 = vpop.f32.mrb[44].mxu0  ;;  %v640_v42 = vpop.f32.mrb[44].mxu1 }
 0x177   : > { %1667 = vst [vmem:[%s2098_s12 + $0x50] sm:$0xff] %v1581_v22   ;;  %1680 = vst [vmem:[%s2098_s12 + $0xb8] sm:$0xff] %v1646_v40   ;;  %v537_v43 = vadd.f32 %v2091_v33, %v536_v41  ;;  %v641_v44 = vadd.f32 %v2091_v33, %v640_v42  ;;  %v538_v45 = vpop.f32.mrb[45].mxu0  ;;  %v642_v46 = vpop.f32.mrb[45].mxu1 }
 0x178   : > { %v539_v47 = vpop.f32.mrb[46].mxu0  ;;  %v643_v48 = vpop.f32.mrb[46].mxu1 }
 0x179   : > { %v540_v49 = vadd.f32 %v2091_v33, %v539_v47  ;;  %v644_v50 = vadd.f32 %v2091_v33, %v643_v48  ;;  %v541_v51 = vpop.f32.mrb[47].mxu0  ;;  %v645_v52 = vpop.f32.mrb[47].mxu1  ;;  %v677_v53 = vmax.f32 %v537_v43, 0.0  ;;  %v703_v54 = vmax.f32 %v641_v44, 0.0 }
 0x17b   : > { %v678_v55 = vmax.f32 %v540_v49, 0.0  ;;  %v704_v56 = vmax.f32 %v644_v50, 0.0 }
 0x17d   : > { %v1586_v57 = vpack.c.bf16 %v678_v55, %v677_v53  ;;  %v1651_v58 = vpack.c.bf16 %v704_v56, %v703_v54 }
 0x17e   : > { %v544_v59 = vpop.f32.mrb[48].mxu0  ;;  %v648_v60 = vpop.f32.mrb[48].mxu1 }
 0x17f   : > { %1668 = vst [vmem:[%s2098_s12 + $0x58] sm:$0xff] %v1586_v57   ;;  %1681 = vst [vmem:[%s2098_s12 + $0xc0] sm:$0xff] %v1651_v58   ;;  %v545_v61 = vadd.f32 %v2091_v33, %v544_v59  ;;  %v649_v62 = vadd.f32 %v2091_v33, %v648_v60  ;;  %v546_v63 = vpop.f32.mrb[49].mxu0  ;;  %v650_v0 = vpop.f32.mrb[49].mxu1 }
 0x180   : > { %v547_v1 = vpop.f32.mrb[50].mxu0  ;;  %v651_v2 = vpop.f32.mrb[50].mxu1 }
 0x181   : > { %v548_v3 = vadd.f32 %v2091_v33, %v547_v1  ;;  %v652_v4 = vadd.f32 %v2091_v33, %v651_v2  ;;  %v549_v5 = vpop.f32.mrb[51].mxu0  ;;  %v653_v6 = vpop.f32.mrb[51].mxu1  ;;  %v679_v8 = vmax.f32 %v545_v61, 0.0  ;;  %v705_v9 = vmax.f32 %v649_v62, 0.0  ;;  %973 = sbr.rel (!%p1960_p4) target bundleno = 488 (0x1e8), region = 36 }
 0x183   : > { %v680_v10 = vmax.f32 %v548_v3, 0.0  ;;  %v706_v11 = vmax.f32 %v652_v4, 0.0 }
 0x185   : > { %v1591_v12 = vpack.c.bf16 %v680_v10, %v679_v8  ;;  %v1656_v13 = vpack.c.bf16 %v706_v11, %v705_v9 }
 0x187   : > { %1669 = vst [vmem:[%s2098_s12 + $0x60] sm:$0xff] %v1591_v12   ;;  %1682 = vst [vmem:[%s2098_s12 + $0xc8] sm:$0xff] %v1656_v13  }
 0x188   : > { %s2358_s22 = smov (!%p976_p8, %s975_s22), 52 }
 0x189   : > { %s1462_s26 = sshll.u32 %s2358_s22, 6 }
 0x18a   : > { %p1465_p9 = scmp.eq.s32.totalorder %s1462_s26, 0 }
 0x18b   : > { %1822 = sdivrem.u32 (!%p1465_p9), %s2358_s22, 52 }
 0x18c   : > { %984 = sbr.rel (%p1465_p9) target bundleno = 488 (0x1e8), region = 40 }
 0x194   : > { %s2187_s20 = spop.drf %1822 }
 0x195   : > { %p1466_p10 = scmp.le.s32.totalorder %s2187_s20, 0 }
 0x196   : > { %s2349_s15 = smov (!%p1466_p10), %s2181_s25  ;;  %s2350_s27 = smov (!%p1466_p10), %s2098_s12 }
 0x197   : > { %1343 = sbr.rel (%p1466_p10) target bundleno = 459 (0x1cb), region = 112  ;;  %s2196_s28 = smov (!%p1466_p10), 0  }
 0x198   : > { %s2198_s29 = smov (!%p1466_p10), 0  }
 0x19e LB: >> { %v1001_v33 = vld [vmem:[%s1888_s27] sm:$0xf]  ;;  %v1003_v14 = vld [vmem:[%s1888_s27 + $0x4] sm:$0xf]  ;;  %v1005_v15 = vld [vmem:[%s1888_s27 + $0x8] sm:$0xf]  ;;  %s1896_s29 = sphi %s2198_s29, %s995_s29   ;;  %s1892_s28 = sphi %s2196_s28, %s2351_s28   ;;  %s1888_s27 = sphi %s2350_s27, %s1110_s27   ;;  %s1884_s15 = sphi %s2349_s15, %s1111_s15  }
 0x19f   : >> { %1002 = vst [vmem:[%s1884_s15] sm:$0xf] %v1001_v33  ;;  %1004 = vst [vmem:[%s1884_s15 + $0x4] sm:$0xf] %v1003_v14  ;;  %v1007_v16 = vld [vmem:[%s1888_s27 + $0xc] sm:$0xf]  ;;  %s1105_s30 = sadd.s32 1, %s1892_s28 }
 0x1a0   : >> { %1006 = vst [vmem:[%s1884_s15 + $0x8] sm:$0xf] %v1005_v15  ;;  %v1009_v17 = vld [vmem:[%s1888_s27 + $0x10] sm:$0xf]  ;;  %v1011_v18 = vld [vmem:[%s1888_s27 + $0x14] sm:$0xf]  ;;  %p1106_p11 = scmp.ge.s32.totalorder %s1105_s30, %s2187_s20 }
 0x1a1   : >> { %1008 = vst [vmem:[%s1884_s15 + $0xc] sm:$0xf] %v1007_v16  ;;  %1010 = vst [vmem:[%s1884_s15 + $0x10] sm:$0xf] %v1009_v17  ;;  %v1013_v19 = vld [vmem:[%s1888_s27 + $0x18] sm:$0xf] }
 0x1a2   : >> { %1012 = vst [vmem:[%s1884_s15 + $0x14] sm:$0xf] %v1011_v18  ;;  %v1015_v20 = vld [vmem:[%s1888_s27 + $0x1c] sm:$0xf]  ;;  %v1017_v21 = vld [vmem:[%s1888_s27 + $0x20] sm:$0xf] }
 0x1a3   : >> { %1014 = vst [vmem:[%s1884_s15 + $0x18] sm:$0xf] %v1013_v19  ;;  %1016 = vst [vmem:[%s1884_s15 + $0x1c] sm:$0xf] %v1015_v20  ;;  %v1019_v23 = vld [vmem:[%s1888_s27 + $0x24] sm:$0xf] }
 0x1a4   : >> { %1018 = vst [vmem:[%s1884_s15 + $0x20] sm:$0xf] %v1017_v21  ;;  %v1021_v24 = vld [vmem:[%s1888_s27 + $0x28] sm:$0xf]  ;;  %v1023_v25 = vld [vmem:[%s1888_s27 + $0x2c] sm:$0xf] }
 0x1a5   : >> { %1020 = vst [vmem:[%s1884_s15 + $0x24] sm:$0xf] %v1019_v23  ;;  %1022 = vst [vmem:[%s1884_s15 + $0x28] sm:$0xf] %v1021_v24  ;;  %v1025_v26 = vld [vmem:[%s1888_s27 + $0x30] sm:$0xf] }
 0x1a6   : >> { %1024 = vst [vmem:[%s1884_s15 + $0x2c] sm:$0xf] %v1023_v25  ;;  %v1027_v27 = vld [vmem:[%s1888_s27 + $0x34] sm:$0xf]  ;;  %v1029_v28 = vld [vmem:[%s1888_s27 + $0x38] sm:$0xf] }
 0x1a7   : >> { %1026 = vst [vmem:[%s1884_s15 + $0x30] sm:$0xf] %v1025_v26  ;;  %1028 = vst [vmem:[%s1884_s15 + $0x34] sm:$0xf] %v1027_v27  ;;  %v1031_v29 = vld [vmem:[%s1888_s27 + $0x3c] sm:$0xf] }
 0x1a8   : >> { %1030 = vst [vmem:[%s1884_s15 + $0x38] sm:$0xf] %v1029_v28  ;;  %v1033_v30 = vld [vmem:[%s1888_s27 + $0x40] sm:$0xf]  ;;  %v1035_v31 = vld [vmem:[%s1888_s27 + $0x44] sm:$0xf] }
 0x1a9   : >> { %1032 = vst [vmem:[%s1884_s15 + $0x3c] sm:$0xf] %v1031_v29  ;;  %1034 = vst [vmem:[%s1884_s15 + $0x40] sm:$0xf] %v1033_v30  ;;  %v1037_v32 = vld [vmem:[%s1888_s27 + $0x48] sm:$0xf] }
 0x1aa   : >> { %1036 = vst [vmem:[%s1884_s15 + $0x44] sm:$0xf] %v1035_v31  ;;  %v1039_v34 = vld [vmem:[%s1888_s27 + $0x4c] sm:$0xf]  ;;  %v1041_v35 = vld [vmem:[%s1888_s27 + $0x50] sm:$0xf] }
 0x1ab   : >> { %1038 = vst [vmem:[%s1884_s15 + $0x48] sm:$0xf] %v1037_v32  ;;  %1040 = vst [vmem:[%s1884_s15 + $0x4c] sm:$0xf] %v1039_v34  ;;  %v1043_v7 = vld [vmem:[%s1888_s27 + $0x54] sm:$0xf] }
 0x1ac   : >> { %1042 = vst [vmem:[%s1884_s15 + $0x50] sm:$0xf] %v1041_v35  ;;  %v1045_v36 = vld [vmem:[%s1888_s27 + $0x58] sm:$0xf]  ;;  %v1047_v37 = vld [vmem:[%s1888_s27 + $0x5c] sm:$0xf] }
 0x1ad   : >> { %1044 = vst [vmem:[%s1884_s15 + $0x54] sm:$0xf] %v1043_v7  ;;  %1046 = vst [vmem:[%s1884_s15 + $0x58] sm:$0xf] %v1045_v36  ;;  %v1049_v38 = vld [vmem:[%s1888_s27 + $0x60] sm:$0xf] }
 0x1ae   : >> { %1048 = vst [vmem:[%s1884_s15 + $0x5c] sm:$0xf] %v1047_v37  ;;  %v1051_v39 = vld [vmem:[%s1888_s27 + $0x64] sm:$0xf]  ;;  %v1053_v22 = vld [vmem:[%s1888_s27 + $0x68] sm:$0xf] }
 0x1af   : >> { %1050 = vst [vmem:[%s1884_s15 + $0x60] sm:$0xf] %v1049_v38  ;;  %1052 = vst [vmem:[%s1884_s15 + $0x64] sm:$0xf] %v1051_v39  ;;  %v1055_v40 = vld [vmem:[%s1888_s27 + $0x6c] sm:$0xf] }
 0x1b0   : >> { %1054 = vst [vmem:[%s1884_s15 + $0x68] sm:$0xf] %v1053_v22  ;;  %v1057_v41 = vld [vmem:[%s1888_s27 + $0x70] sm:$0xf]  ;;  %v1059_v42 = vld [vmem:[%s1888_s27 + $0x74] sm:$0xf] }
 0x1b1   : >> { %1056 = vst [vmem:[%s1884_s15 + $0x6c] sm:$0xf] %v1055_v40  ;;  %1058 = vst [vmem:[%s1884_s15 + $0x70] sm:$0xf] %v1057_v41  ;;  %v1061_v43 = vld [vmem:[%s1888_s27 + $0x78] sm:$0xf] }
 0x1b2   : >> { %1060 = vst [vmem:[%s1884_s15 + $0x74] sm:$0xf] %v1059_v42  ;;  %v1063_v44 = vld [vmem:[%s1888_s27 + $0x7c] sm:$0xf]  ;;  %v1065_v45 = vld [vmem:[%s1888_s27 + $0x80] sm:$0xf] }
 0x1b3   : >> { %1062 = vst [vmem:[%s1884_s15 + $0x78] sm:$0xf] %v1061_v43  ;;  %1064 = vst [vmem:[%s1884_s15 + $0x7c] sm:$0xf] %v1063_v44  ;;  %v1067_v46 = vld [vmem:[%s1888_s27 + $0x84] sm:$0xf] }
 0x1b4   : >> { %1066 = vst [vmem:[%s1884_s15 + $0x80] sm:$0xf] %v1065_v45  ;;  %v1069_v47 = vld [vmem:[%s1888_s27 + $0x88] sm:$0xf]  ;;  %v1071_v48 = vld [vmem:[%s1888_s27 + $0x8c] sm:$0xf] }
 0x1b5   : >> { %1068 = vst [vmem:[%s1884_s15 + $0x84] sm:$0xf] %v1067_v46  ;;  %1070 = vst [vmem:[%s1884_s15 + $0x88] sm:$0xf] %v1069_v47  ;;  %v1073_v49 = vld [vmem:[%s1888_s27 + $0x90] sm:$0xf] }
 0x1b6   : >> { %1072 = vst [vmem:[%s1884_s15 + $0x8c] sm:$0xf] %v1071_v48  ;;  %v1075_v50 = vld [vmem:[%s1888_s27 + $0x94] sm:$0xf]  ;;  %v1077_v51 = vld [vmem:[%s1888_s27 + $0x98] sm:$0xf] }
 0x1b7   : >> { %1074 = vst [vmem:[%s1884_s15 + $0x90] sm:$0xf] %v1073_v49  ;;  %1076 = vst [vmem:[%s1884_s15 + $0x94] sm:$0xf] %v1075_v50  ;;  %v1079_v52 = vld [vmem:[%s1888_s27 + $0x9c] sm:$0xf] }
 0x1b8   : >> { %1078 = vst [vmem:[%s1884_s15 + $0x98] sm:$0xf] %v1077_v51  ;;  %v1081_v53 = vld [vmem:[%s1888_s27 + $0xa0] sm:$0xf]  ;;  %v1083_v54 = vld [vmem:[%s1888_s27 + $0xa4] sm:$0xf] }
 0x1b9   : >> { %1080 = vst [vmem:[%s1884_s15 + $0x9c] sm:$0xf] %v1079_v52  ;;  %1082 = vst [vmem:[%s1884_s15 + $0xa0] sm:$0xf] %v1081_v53  ;;  %v1085_v55 = vld [vmem:[%s1888_s27 + $0xa8] sm:$0xf] }
 0x1ba   : >> { %1084 = vst [vmem:[%s1884_s15 + $0xa4] sm:$0xf] %v1083_v54  ;;  %v1087_v56 = vld [vmem:[%s1888_s27 + $0xac] sm:$0xf]  ;;  %v1089_v57 = vld [vmem:[%s1888_s27 + $0xb0] sm:$0xf] }
 0x1bb   : >> { %1086 = vst [vmem:[%s1884_s15 + $0xa8] sm:$0xf] %v1085_v55  ;;  %1088 = vst [vmem:[%s1884_s15 + $0xac] sm:$0xf] %v1087_v56  ;;  %v1091_v58 = vld [vmem:[%s1888_s27 + $0xb4] sm:$0xf] }
 0x1bc   : >> { %1090 = vst [vmem:[%s1884_s15 + $0xb0] sm:$0xf] %v1089_v57  ;;  %v1093_v59 = vld [vmem:[%s1888_s27 + $0xb8] sm:$0xf]  ;;  %v1095_v60 = vld [vmem:[%s1888_s27 + $0xbc] sm:$0xf] }
 0x1bd   : >> { %1092 = vst [vmem:[%s1884_s15 + $0xb4] sm:$0xf] %v1091_v58  ;;  %1094 = vst [vmem:[%s1884_s15 + $0xb8] sm:$0xf] %v1093_v59  ;;  %v1097_v61 = vld [vmem:[%s1888_s27 + $0xc0] sm:$0xf] }
 0x1be   : >> { %1096 = vst [vmem:[%s1884_s15 + $0xbc] sm:$0xf] %v1095_v60  ;;  %v1099_v62 = vld [vmem:[%s1888_s27 + $0xc4] sm:$0xf]  ;;  %v1101_v63 = vld [vmem:[%s1888_s27 + $0xc8] sm:$0xf] }
 0x1bf   : >> { %1098 = vst [vmem:[%s1884_s15 + $0xc0] sm:$0xf] %v1097_v61  ;;  %1100 = vst [vmem:[%s1884_s15 + $0xc4] sm:$0xf] %v1099_v62  ;;  %v1103_v0 = vld [vmem:[%s1888_s27 + $0xcc] sm:$0xf] }
 0x1c0   : >> { %1102 = vst [vmem:[%s1884_s15 + $0xc8] sm:$0xf] %v1101_v63  ;;  %1104 = vst [vmem:[%s1884_s15 + $0xcc] sm:$0xf] %v1103_v0  ;;  %s2360_s30 = smov (%p1106_p11, %s1105_s30), 0  ;;  %s995_s29 = sadd.s32 1, %s1896_s29  }
 0x1c1   : >> { %s1108_s4 = smul.u32 208, %s2360_s30  ;;  %p994_p12 = scmp.ge.s32.totalorder %s995_s29, %s2187_s20 }
 0x1c2   : >> { %s2351_s28 = smov %s2360_s30 }
 0x1c3   : >> { %s1110_s27 = scalar_lea.vmem %s2098_s12, %s1108_s4 [#allocation2]   ;;  %s1111_s15 = scalar_lea.vmem %s2181_s25, %s1108_s4  }
 0x1c4   : > { %997 = sbr.rel (!%p994_p12) target bundleno = 414 (0x19e), region = 118 }
 0x1cb PF: > { %1824 = sdivrem.u32 %s2358_s22, 52 }
 0x1cc   : > { %s1467_s5 = smul.u32 208, %s2187_s20 }
 0x1ce   : > { %s1116_s7 = scalar_lea.vmem %s2098_s12, %s1467_s5 [#allocation2]   ;;  %s1118_s8 = scalar_lea.vmem %s2181_s25, %s1467_s5  }
 0x1d4   : > { %s1825_s9 = spop.drf %1824 }
 0x1d5   : > { %p1469_p13 = scmp.le.s32.totalorder %s1825_s9, 0 }
 0x1d6   : > { %s1898_s10 = smov (!%p1469_p13), %s1118_s8   ;;  %s1902_s11 = smov (!%p1469_p13), %s1116_s7  }
 0x1d7   : > { %1357 = sbr.rel (%p1469_p13) target bundleno = 488 (0x1e8), region = 123  ;;  %s1906_s14 = smov (!%p1469_p13), 0  }
 0x1d8   : > { %s1910_s6 = smov (!%p1469_p13), 0  }
 0x1de LB: >> { %v1128_v1 = vld [vmem:[%s1904_s11] sm:$0xf]  ;;  %s1130_s17 = sadd.s32 1, %s1908_s14  ;;  %s1122_s6 = sadd.s32 1, %s1912_s6   ;;  %s1912_s6 = sphi %s1910_s6, %s1122_s6   ;;  %s1908_s14 = sphi %s1906_s14, %s1907_s14   ;;  %s1904_s11 = sphi %s1902_s11, %s1135_s11   ;;  %s1900_s10 = sphi %s1898_s10, %s1136_s10  }
 0x1df   : >> { %1129 = vst [vmem:[%s1900_s10] sm:$0xf] %v1128_v1  ;;  %p1131_p0 = scmp.ge.s32.totalorder %s1130_s17, %s1825_s9  ;;  %p1121_p1 = scmp.ge.s32.totalorder %s1122_s6, %s1825_s9 }
 0x1e1   : >> { %s2362_s17 = smov (%p1131_p0, %s1130_s17), 0  ;;  %1124 = sbr.rel (!%p1121_p1) target bundleno = 478 (0x1de), region = 129 }
 0x1e2   : >> { %s1470_s12 = sshll.u32 %s2362_s17, 2  ;;  %s1907_s14 = smov %s2362_s17  }
 0x1e3   : >> { %s1135_s11 = scalar_lea.vmem %s1116_s7, %s1470_s12 [#allocation2]   ;;  %s1136_s10 = scalar_lea.vmem %s1118_s8, %s1470_s12  }
 0x1e8 PF: > { %p10_p2 = scmp.ge.s32.totalorder %s1950_s16, 4   ;;  %s2352_s12 = smov %s1876_s13 }
 0x1e9   : > { %s2353_s13 = smov %s1958_s19  ;;  %s2354_s14 = smov %s1950_s16 }
 0x1ea   :  { %12 = sbr.rel (!%p10_p2) target bundleno = 2 (0x2), region = 140 }

// kernel: dqn_forward.5
= control target key start
LH: loop header
LB: loop body
LE: loop exit
PB: predicated region body
PF: predicated region fallthrough
CT: control target
= control target key end

     0   :  { %s1612_s12 = smov 0   ;;  %s1614_s13 = smov 0   ;;  %s1856_s0 = inlined_call_operand.vmem [shape: bf16[176,512], index: 0, kind: input, shape index: {}]   ;;  %s1857_s1 = inlined_call_operand.vmem [shape: bf16[512,128], index: 1, kind: input, shape index: {}]   ;;  %s1858_s2 = inlined_call_operand.vmem [shape: f32[1,128], index: 2, kind: input, shape index: {}]   ;;  %s1859_s3 = inlined_call_operand.vmem [shape: bf16[176,128], index: 3, kind: output, shape index: {}]  }
   0x1   :  { %s1616_s14 = smov 0  }
   0x2 LB: > { %s1625_s15 = sadd.s32 4294967295, %s1558_s14   ;;  %s1627_s16 = sadd.s32 1, %s1558_s14   ;;  %s1558_s14 = sphi %s1616_s14, %s1866_s14   ;;  %s1554_s13 = sphi %s1614_s13, %s1865_s13   ;;  %s1550_s12 = sphi %s1612_s12, %s1864_s12  }
   0x3   : > { %s85_s17 = ssub.s32 %s1558_s14, %s1627_s16  ;;  %s88_s18 = sadd.s32 1, %s1554_s13 }
   0x4   : > { %p86_p0 = scmp.eq.s32.totalorder %s85_s17, 0  ;;  %p98_p1 = scmp.ne.s32.totalorder %s1554_s13, %s1550_s12 }
   0x5   : > { %p99_p2 = scmp.eq.s32.totalorder %s1625_s15, 1  ;;  %p1105_p3 = scmp.ge.s32.totalorder %s1558_s14, 1 }
   0x6   : > { %s1635_s19 = scalar_select %p86_p0, %s1554_s13, %s88_s18  }
   0x7   : > { %p1637_p4 = por %p99_p2, %p98_p1  ;;  %p149_p5 = scmp.lt.s32.totalorder %s1558_s14, 3 }
   0x9   : > { %p150_p6 = pnand %p1105_p3, %p149_p5 }
   0xa   : > { %v1432_v0 = vld [vmem:[%s1857_s1 + $0x40] sm:$0xff] (!%p150_p6)   ;;  %v1436_v4 = vld [vmem:[%s1857_s1 + $0x48] sm:$0xff] (!%p150_p6)   ;;  %v1440_v8 = vld [vmem:[%s1857_s1 + $0x50] sm:$0xff] (!%p150_p6)   ;;  %s1687_s30 = smul.u32 (!%p150_p6), 12, %s1625_s15  ;;  %s175_s5 = sand.u32 (!%p150_p6), 1, %s1550_s12  }
   0xb   : > { %153 = sbr.rel (%p150_p6) target bundleno = 379 (0x17b), region = 32  ;;  %v1433_v1 = vld [vmem:[%s1857_s1 + $0xc0] sm:$0xff] (!%p150_p6)   ;;  %1238 = vmatprep.subr.bf16.mxu0 (!%p150_p6), %v1432_v0  ;;  %v1437_v5 = vld [vmem:[%s1857_s1 + $0xc8] sm:$0xff] (!%p150_p6)   ;;  %v1441_v9 = vld [vmem:[%s1857_s1 + $0xd0] sm:$0xff] (!%p150_p6)  }
   0xc   : > { %v1434_v2 = vld [vmem:[%s1857_s1] sm:$0xff] (!%p150_p6)   ;;  %1290 = vmatprep.subr.bf16.mxu1 (!%p150_p6), %v1433_v1  ;;  %v1438_v6 = vld [vmem:[%s1857_s1 + $0x8] sm:$0xff] (!%p150_p6)   ;;  %v1442_v10 = vld [vmem:[%s1857_s1 + $0x10] sm:$0xff] (!%p150_p6)   ;;  %p184_p7 = scmp.lt.s32.totalorder (!%p150_p6), %s1687_s30, 21  ;;  %s1342_s6 = smul.u32 (!%p150_p6), 48, %s175_s5 }
   0xd   : > { %v1435_v3 = vld [vmem:[%s1857_s1 + $0x80] sm:$0xff] (!%p150_p6)   ;;  %1239 = vmatpush3.bf16.msra.mxu0 (!%p150_p6), %v1434_v2  ;;  %v1439_v7 = vld [vmem:[%s1857_s1 + $0x88] sm:$0xff] (!%p150_p6)   ;;  %v1443_v11 = vld [vmem:[%s1857_s1 + $0x90] sm:$0xff] (!%p150_p6)  }
   0xe   : > { %1291 = vmatpush3.bf16.msra.mxu1 (!%p150_p6), %v1435_v3  ;;  %1240 = vmatprep.subr.bf16.mxu0 (!%p150_p6), %v1436_v4  ;;  %v1444_v12 = vld [vmem:[%s1857_s1 + $0x58] sm:$0xff] (!%p150_p6)   ;;  %v1448_v16 = vld [vmem:[%s1857_s1 + $0x60] sm:$0xff] (!%p150_p6)   ;;  %v1452_v20 = vld [vmem:[%s1857_s1 + $0x68] sm:$0xff] (!%p150_p6)   ;;  %s1780_s12 = scalar_lea.vmem (!%p150_p6), [#allocation2], %s1342_s6  }
   0xf   : > { %1292 = vmatprep.subr.bf16.mxu1 (!%p150_p6), %v1437_v5  ;;  %v1445_v13 = vld [vmem:[%s1857_s1 + $0xd8] sm:$0xff] (!%p150_p6)   ;;  %v1449_v17 = vld [vmem:[%s1857_s1 + $0xe0] sm:$0xff] (!%p150_p6)   ;;  %v1453_v21 = vld [vmem:[%s1857_s1 + $0xe8] sm:$0xff] (!%p150_p6)  }
  0x10   : > { %v1446_v14 = vld [vmem:[%s1857_s1 + $0x18] sm:$0xff] (!%p150_p6)   ;;  %v1450_v18 = vld [vmem:[%s1857_s1 + $0x20] sm:$0xff] (!%p150_p6)   ;;  %v1454_v22 = vld [vmem:[%s1857_s1 + $0x28] sm:$0xff] (!%p150_p6)  }
  0x11   : > { %1241 = vmatpush3.bf16.msra.mxu0 (!%p150_p6), %v1438_v6  ;;  %v1447_v15 = vld [vmem:[%s1857_s1 + $0x98] sm:$0xff] (!%p150_p6)   ;;  %v1451_v19 = vld [vmem:[%s1857_s1 + $0xa0] sm:$0xff] (!%p150_p6)   ;;  %v1455_v23 = vld [vmem:[%s1857_s1 + $0xa8] sm:$0xff] (!%p150_p6)  }
  0x12   : > { %1293 = vmatpush3.bf16.msra.mxu1 %v1439_v7  ;;  %1242 = vmatprep.subr.bf16.mxu0 %v1440_v8  ;;  %s185_s26 = scalar_select %p184_p7, %s1687_s30, 21  ;;  %v1456_v24 = vld [vmem:[%s1857_s1 + $0x70] sm:$0xff]   ;;  %v1460_v28 = vld [vmem:[%s1857_s1 + $0x78] sm:$0xff]   ;;  %v1774_v58 = vld [vmem:[%s1858_s2] ss:$0 sm:$0xff] }
  0x13   : > { %1294 = vmatprep.subr.bf16.mxu1 %v1441_v9  ;;  %v1457_v25 = vld [vmem:[%s1857_s1 + $0xf0] sm:$0xff]   ;;  %v1461_v29 = vld [vmem:[%s1857_s1 + $0xf8] sm:$0xff]   ;;  %s850_s7 = ssub.s32 (%p1637_p4), 22, %s1687_s30  ;;  %s1202_s8 = smul.u32 (%p1637_p4), 48, %s1625_s15 }
  0x14   : > { %v1458_v26 = vld [vmem:[%s1857_s1 + $0x30] sm:$0xff]   ;;  %s1189_s9 = sshll.u32 %s185_s26, 4  ;;  %v1462_v30 = vld [vmem:[%s1857_s1 + $0x38] sm:$0xff]   ;;  %p851_p8 = scmp.lt.s32.totalorder (%p1637_p4), %s850_s7, 12 }
  0x15   : > { %1243 = vmatpush3.bf16.msra.mxu0 %v1442_v10  ;;  %v1459_v27 = vld [vmem:[%s1857_s1 + $0xb0] sm:$0xff]   ;;  %s1739_s24 = scalar_lea.vmem %s1856_s0, %s1189_s9  ;;  %v1463_v31 = vld [vmem:[%s1857_s1 + $0xb8] sm:$0xff]   ;;  %s1804_s11 = scalar_lea.vmem (%p1637_p4), %s1859_s3, %s1202_s8  }
  0x16   : > { %1295 = vmatpush3.bf16.msra.mxu1 %v1443_v11  ;;  %1244 = vmatprep.subr.bf16.mxu0 %v1444_v12  ;;  %v1464_v32 = vld [vmem:[%s1739_s24] ss:$16 sps:$4 sm:$0xff]   ;;  %v1466_v33 = vld [vmem:[%s1739_s24 + $0x4] ss:$16 sps:$4 sm:$0xff]   ;;  %v1467_v34 = vld [vmem:[%s1739_s24 + $0x8] ss:$16 sps:$4 sm:$0xff]  }
  0x17   : > { %1296 = vmatprep.subr.bf16.mxu1 %v1445_v13  ;;  %v1469_v35 = vld [vmem:[%s1739_s24 + $0xc] ss:$16 sps:$4 sm:$0xff]   ;;  %640 = vmatprep.mubr.bf16.mxu0 %v1466_v33  ;;  %v1470_v36 = vld [vmem:[%s1739_s24 + $0x24] ss:$16 sps:$4 sm:$0xff]   ;;  %v1474_v38 = vld [vmem:[%s1739_s24 + $0x20] ss:$16 sps:$4 sm:$0xff]  }
  0x18   : > { %721 = vmatprep.mubr.bf16.mxu1 %v1469_v35  ;;  %v1472_v37 = vld [vmem:[%s1739_s24 + $0x2c] ss:$16 sps:$4 sm:$0xff]   ;;  %v1475_v39 = vld [vmem:[%s1739_s24 + $0x28] ss:$16 sps:$4 sm:$0xff]   ;;  %v1476_v40 = vld [vmem:[%s1739_s24 + $0x44] ss:$16 sps:$4 sm:$0xff]  }
  0x19   : > { %1245 = vmatpush3.bf16.msra.mxu0 %v1446_v14  ;;  %v1478_v41 = vld [vmem:[%s1739_s24 + $0x4c] ss:$16 sps:$4 sm:$0xff]   ;;  %v1480_v42 = vld [vmem:[%s1739_s24 + $0x40] ss:$16 sps:$4 sm:$0xff]   ;;  %v1481_v43 = vld [vmem:[%s1739_s24 + $0x48] ss:$16 sps:$4 sm:$0xff]  }
  0x1a   : > { %1297 = vmatpush3.bf16.msra.mxu1 %v1447_v15  ;;  %1246 = vmatprep.subr.bf16.mxu0 %v1448_v16  ;;  %v1482_v44 = vld [vmem:[%s1739_s24 + $0x64] ss:$16 sps:$4 sm:$0xff]   ;;  %v1484_v45 = vld [vmem:[%s1739_s24 + $0x6c] ss:$16 sps:$4 sm:$0xff]   ;;  %v1486_v46 = vld [vmem:[%s1739_s24 + $0x60] ss:$16 sps:$4 sm:$0xff]  }
  0x1b   : > { %1298 = vmatprep.subr.bf16.mxu1 %v1449_v17  ;;  %v1487_v47 = vld [vmem:[%s1739_s24 + $0x68] ss:$16 sps:$4 sm:$0xff]   ;;  %v1488_v48 = vld [vmem:[%s1739_s24 + $0x84] ss:$16 sps:$4 sm:$0xff]   ;;  %v1490_v49 = vld [vmem:[%s1739_s24 + $0x8c] ss:$16 sps:$4 sm:$0xff]  }
  0x1c   : > { %v1492_v50 = vld [vmem:[%s1739_s24 + $0x80] ss:$16 sps:$4 sm:$0xff]   ;;  %v1493_v51 = vld [vmem:[%s1739_s24 + $0x88] ss:$16 sps:$4 sm:$0xff]   ;;  %v1494_v52 = vld [vmem:[%s1739_s24 + $0xa4] ss:$16 sps:$4 sm:$0xff]  }
  0x1d   : > { %1247 = vmatpush3.bf16.msra.mxu0 %v1450_v18  ;;  %v1496_v53 = vld [vmem:[%s1739_s24 + $0xac] ss:$16 sps:$4 sm:$0xff]   ;;  %v1498_v54 = vld [vmem:[%s1739_s24 + $0xa0] ss:$16 sps:$4 sm:$0xff]   ;;  %v1499_v55 = vld [vmem:[%s1739_s24 + $0xa8] ss:$16 sps:$4 sm:$0xff]  }
  0x1e   : > { %1299 = vmatpush3.bf16.msra.mxu1 %v1451_v19  ;;  %1248 = vmatprep.subr.bf16.mxu0 %v1452_v20 }
  0x1f   : > { %1300 = vmatprep.subr.bf16.mxu1 %v1453_v21 }
  0x21   : > { %1249 = vmatpush3.bf16.msra.mxu0 %v1454_v22 }
  0x22   : > { %1301 = vmatpush3.bf16.msra.mxu1 %v1455_v23  ;;  %1250 = vmatprep.subr.bf16.mxu0 %v1456_v24 }
  0x23   : > { %1302 = vmatprep.subr.bf16.mxu1 %v1457_v25 }
  0x25   : > { %1251 = vmatpush3.bf16.msra.mxu0 %v1458_v26 }
  0x26   : > { %1303 = vmatpush3.bf16.msra.mxu1 %v1459_v27  ;;  %1252 = vmatprep.subr.bf16.mxu0 %v1460_v28 }
  0x27   : > { %1304 = vmatprep.subr.bf16.mxu1 %v1461_v29 }
  0x29   : > { %1253 = vmatpush3.bf16.msra.mxu0 %v1462_v30 }
  0x2a   : > { %1305 = vmatpush3.bf16.msra.mxu1 %v1463_v31 }
  0x2c   : > { %641 = vmatmul.mubr.bf16.vlgmr.msra.gmra.mrb[0].mxu0 %v1464_v32 }
  0x2d   : > { %722 = vmatmul.mubr.bf16.vlgmr.msra.gmra.mrb[0].mxu1 %v1467_v34  ;;  %648 = vmatprep.mubr.bf16.mxu0 %v1470_v36 }
  0x2e   : > { %729 = vmatprep.mubr.bf16.mxu1 %v1472_v37 }
  0x34   : > { %649 = vmatmul.mubr.bf16.gmra.mrb[4].mxu0 %v1474_v38 }
  0x35   : > { %730 = vmatmul.mubr.bf16.gmra.mrb[4].mxu1 %v1475_v39  ;;  %656 = vmatprep.mubr.bf16.mxu0 %v1476_v40 }
  0x36   : > { %737 = vmatprep.mubr.bf16.mxu1 %v1478_v41 }
  0x3c   : > { %657 = vmatmul.mubr.bf16.gmra.mrb[8].mxu0 %v1480_v42 }
  0x3d   : > { %738 = vmatmul.mubr.bf16.gmra.mrb[8].mxu1 %v1481_v43  ;;  %664 = vmatprep.mubr.bf16.mxu0 %v1482_v44 }
  0x3e   : > { %745 = vmatprep.mubr.bf16.mxu1 %v1484_v45 }
  0x44   : > { %665 = vmatmul.mubr.bf16.gmra.mrb[12].mxu0 %v1486_v46 }
  0x45   : > { %746 = vmatmul.mubr.bf16.gmra.mrb[12].mxu1 %v1487_v47  ;;  %672 = vmatprep.mubr.bf16.mxu0 %v1488_v48 }
  0x46   : > { %753 = vmatprep.mubr.bf16.mxu1 %v1490_v49 }
  0x4c   : > { %673 = vmatmul.mubr.bf16.gmra.mrb[16].mxu0 %v1492_v50 }
  0x4d   : > { %754 = vmatmul.mubr.bf16.gmra.mrb[16].mxu1 %v1493_v51  ;;  %680 = vmatprep.mubr.bf16.mxu0 %v1494_v52 }
  0x4e   : > { %761 = vmatprep.mubr.bf16.mxu1 %v1496_v53 }
  0x54   : > { %681 = vmatmul.mubr.bf16.gmra.mrb[20].mxu0 %v1498_v54 }
  0x55   : > { %762 = vmatmul.mubr.bf16.gmra.mrb[20].mxu1 %v1499_v55 }
  0xff   : > { %v1254_v56 = vpop.f32.mrb[0].mxu0 }
 0x100   : > { %v1306_v57 = vpop.f32.mrb[0].mxu1  ;;  %v1255_v59 = vpop.f32.mrb[1].mxu0 }
 0x101   : > { %v1256_v60 = vadd.f32 %v1255_v59, %v1254_v56  ;;  %v1307_v61 = vpop.f32.mrb[1].mxu1  ;;  %v1257_v62 = vpop.f32.mrb[2].mxu0 }
 0x102   : > { %v1308_v63 = vadd.f32 %v1307_v61, %v1306_v57  ;;  %v1309_v0 = vpop.f32.mrb[2].mxu1  ;;  %v1258_v1 = vpop.f32.mrb[3].mxu0 }
 0x103   : > { %v643_v2 = vadd.f32 %v1256_v60, %v1774_v58  ;;  %v1259_v3 = vadd.f32 %v1258_v1, %v1257_v62  ;;  %v1310_v4 = vpop.f32.mrb[3].mxu1 }
 0x104   : > { %v1311_v5 = vadd.f32 %v1310_v4, %v1309_v0 }
 0x105   : > { %v724_v6 = vadd.f32 %v1308_v63, %v643_v2  ;;  %v646_v7 = vadd.f32 %v1259_v3, %v1774_v58 }
 0x107   : > { %v727_v8 = vadd.f32 %v1311_v5, %v646_v7  ;;  %v1260_v9 = vpop.f32.mrb[4].mxu0  ;;  %v770_v12 = vmax.f32 %v724_v6, 0.0 }
 0x108   : > { %v1312_v10 = vpop.f32.mrb[4].mxu1  ;;  %v1261_v11 = vpop.f32.mrb[5].mxu0 }
 0x109   : > { %v771_v13 = vmax.f32 %v727_v8, 0.0  ;;  %v1262_v14 = vadd.f32 %v1261_v11, %v1260_v9  ;;  %v1313_v15 = vpop.f32.mrb[5].mxu1  ;;  %v1263_v16 = vpop.f32.mrb[6].mxu0 }
 0x10a   : > { %v1314_v17 = vadd.f32 %v1313_v15, %v1312_v10  ;;  %v1315_v18 = vpop.f32.mrb[6].mxu1  ;;  %v1264_v19 = vpop.f32.mrb[7].mxu0 }
 0x10b   : > { %v1206_v20 = vpack.c.bf16 %v771_v13, %v770_v12  ;;  %v651_v21 = vadd.f32 %v1262_v14, %v1774_v58  ;;  %v1265_v22 = vadd.f32 %v1264_v19, %v1263_v16  ;;  %v1316_v23 = vpop.f32.mrb[7].mxu1 }
 0x10c   : > { %v1317_v24 = vadd.f32 %v1316_v23, %v1315_v18 }
 0x10d   : > { %1207 = vst [vmem:[%s1780_s12] sm:$0xff] %v1206_v20   ;;  %v732_v25 = vadd.f32 %v1314_v17, %v651_v21  ;;  %v654_v26 = vadd.f32 %v1265_v22, %v1774_v58 }
 0x10f   : > { %v735_v27 = vadd.f32 %v1317_v24, %v654_v26  ;;  %v1266_v28 = vpop.f32.mrb[8].mxu0  ;;  %v772_v31 = vmax.f32 %v732_v25, 0.0 }
 0x110   : > { %v1318_v29 = vpop.f32.mrb[8].mxu1  ;;  %v1267_v30 = vpop.f32.mrb[9].mxu0 }
 0x111   : > { %v773_v32 = vmax.f32 %v735_v27, 0.0  ;;  %v1268_v33 = vadd.f32 %v1267_v30, %v1266_v28  ;;  %v1319_v34 = vpop.f32.mrb[9].mxu1  ;;  %v1269_v35 = vpop.f32.mrb[10].mxu0 }
 0x112   : > { %v1320_v36 = vadd.f32 %v1319_v34, %v1318_v29  ;;  %v1321_v37 = vpop.f32.mrb[10].mxu1  ;;  %v1270_v38 = vpop.f32.mrb[11].mxu0 }
 0x113   : > { %v1211_v39 = vpack.c.bf16 %v773_v32, %v772_v31  ;;  %v659_v40 = vadd.f32 %v1268_v33, %v1774_v58  ;;  %v1271_v41 = vadd.f32 %v1270_v38, %v1269_v35  ;;  %v1322_v42 = vpop.f32.mrb[11].mxu1 }
 0x114   : > { %v1323_v43 = vadd.f32 %v1322_v42, %v1321_v37 }
 0x115   : > { %1233 = vst [vmem:[%s1780_s12 + $0x8] sm:$0xff] %v1211_v39   ;;  %v740_v44 = vadd.f32 %v1320_v36, %v659_v40  ;;  %v662_v45 = vadd.f32 %v1271_v41, %v1774_v58 }
 0x117   : > { %v743_v46 = vadd.f32 %v1323_v43, %v662_v45  ;;  %v1272_v47 = vpop.f32.mrb[12].mxu0  ;;  %v774_v50 = vmax.f32 %v740_v44, 0.0 }
 0x118   : > { %v1324_v48 = vpop.f32.mrb[12].mxu1  ;;  %v1273_v49 = vpop.f32.mrb[13].mxu0 }
 0x119   : > { %v775_v51 = vmax.f32 %v743_v46, 0.0  ;;  %v1274_v52 = vadd.f32 %v1273_v49, %v1272_v47  ;;  %v1325_v53 = vpop.f32.mrb[13].mxu1  ;;  %v1275_v54 = vpop.f32.mrb[14].mxu0 }
 0x11a   : > { %v1326_v55 = vadd.f32 %v1325_v53, %v1324_v48  ;;  %v1327_v56 = vpop.f32.mrb[14].mxu1  ;;  %v1276_v57 = vpop.f32.mrb[15].mxu0 }
 0x11b   : > { %v1216_v59 = vpack.c.bf16 %v775_v51, %v774_v50  ;;  %v667_v60 = vadd.f32 %v1274_v52, %v1774_v58  ;;  %v1277_v61 = vadd.f32 %v1276_v57, %v1275_v54  ;;  %v1328_v62 = vpop.f32.mrb[15].mxu1 }
 0x11c   : > { %v1329_v63 = vadd.f32 %v1328_v62, %v1327_v56 }
 0x11d   : > { %1234 = vst [vmem:[%s1780_s12 + $0x10] sm:$0xff] %v1216_v59   ;;  %v748_v0 = vadd.f32 %v1326_v55, %v667_v60  ;;  %v670_v1 = vadd.f32 %v1277_v61, %v1774_v58 }
 0x11f   : > { %v751_v2 = vadd.f32 %v1329_v63, %v670_v1  ;;  %v1278_v3 = vpop.f32.mrb[16].mxu0  ;;  %v776_v6 = vmax.f32 %v748_v0, 0.0 }
 0x120   : > { %v1330_v4 = vpop.f32.mrb[16].mxu1  ;;  %v1279_v5 = vpop.f32.mrb[17].mxu0 }
 0x121   : > { %v777_v7 = vmax.f32 %v751_v2, 0.0  ;;  %v1280_v8 = vadd.f32 %v1279_v5, %v1278_v3  ;;  %v1331_v9 = vpop.f32.mrb[17].mxu1  ;;  %v1281_v10 = vpop.f32.mrb[18].mxu0 }
 0x122   : > { %v1332_v11 = vadd.f32 %v1331_v9, %v1330_v4  ;;  %v1333_v12 = vpop.f32.mrb[18].mxu1  ;;  %v1282_v13 = vpop.f32.mrb[19].mxu0 }
 0x123   : > { %v1221_v14 = vpack.c.bf16 %v777_v7, %v776_v6  ;;  %v675_v15 = vadd.f32 %v1280_v8, %v1774_v58  ;;  %v1283_v16 = vadd.f32 %v1282_v13, %v1281_v10  ;;  %v1334_v17 = vpop.f32.mrb[19].mxu1 }
 0x124   : > { %v1335_v18 = vadd.f32 %v1334_v17, %v1333_v12 }
 0x125   : > { %1235 = vst [vmem:[%s1780_s12 + $0x18] sm:$0xff] %v1221_v14   ;;  %v756_v19 = vadd.f32 %v1332_v11, %v675_v15  ;;  %v678_v20 = vadd.f32 %v1283_v16, %v1774_v58 }
 0x127   : > { %v759_v21 = vadd.f32 %v1335_v18, %v678_v20  ;;  %v1284_v22 = vpop.f32.mrb[20].mxu0  ;;  %v778_v25 = vmax.f32 %v756_v19, 0.0 }
 0x128   : > { %v1336_v23 = vpop.f32.mrb[20].mxu1  ;;  %v1285_v24 = vpop.f32.mrb[21].mxu0 }
 0x129   : > { %v779_v26 = vmax.f32 %v759_v21, 0.0  ;;  %v1286_v27 = vadd.f32 %v1285_v24, %v1284_v22  ;;  %v1337_v28 = vpop.f32.mrb[21].mxu1  ;;  %v1287_v29 = vpop.f32.mrb[22].mxu0 }
 0x12a   : > { %v1338_v30 = vadd.f32 %v1337_v28, %v1336_v23  ;;  %v1339_v31 = vpop.f32.mrb[22].mxu1  ;;  %v1288_v32 = vpop.f32.mrb[23].mxu0 }
 0x12b   : > { %v1226_v33 = vpack.c.bf16 %v779_v26, %v778_v25  ;;  %v683_v34 = vadd.f32 %v1286_v27, %v1774_v58  ;;  %v1289_v35 = vadd.f32 %v1288_v32, %v1287_v29  ;;  %v1340_v36 = vpop.f32.mrb[23].mxu1 }
 0x12c   : > { %v1341_v37 = vadd.f32 %v1340_v36, %v1339_v31 }
 0x12d   : > { %1236 = vst [vmem:[%s1780_s12 + $0x20] sm:$0xff] %v1226_v33   ;;  %v764_v38 = vadd.f32 %v1338_v30, %v683_v34  ;;  %v686_v39 = vadd.f32 %v1289_v35, %v1774_v58 }
 0x12f   : > { %v767_v40 = vadd.f32 %v1341_v37, %v686_v39  ;;  %v780_v41 = vmax.f32 %v764_v38, 0.0  ;;  %848 = sbr.rel (!%p1637_p4) target bundleno = 379 (0x17b), region = 36 }
 0x131   : > { %v781_v42 = vmax.f32 %v767_v40, 0.0 }
 0x133   : > { %v1231_v43 = vpack.c.bf16 %v781_v42, %v780_v41 }
 0x135   : > { %1237 = vst [vmem:[%s1780_s12 + $0x28] sm:$0xff] %v1231_v43  }
 0x136   : > { %s1868_s7 = smov (!%p851_p8, %s850_s7), 12 }
 0x137   : > { %s1177_s14 = sshll.u32 %s1868_s7, 6 }
 0x138   : > { %p1180_p9 = scmp.eq.s32.totalorder %s1177_s14, 0 }
 0x139   : > { %1500 = sdivrem.u32 (!%p1180_p9), %s1868_s7, 12 }
 0x13a   : > { %859 = sbr.rel (%p1180_p9) target bundleno = 379 (0x17b), region = 40 }
 0x142   : > { %s1810_s20 = spop.drf %1500 }
 0x143   : > { %p1181_p10 = scmp.le.s32.totalorder %s1810_s20, 0 }
 0x144   : > { %s1861_s15 = smov (!%p1181_p10), %s1804_s11  ;;  %s1862_s30 = smov (!%p1181_p10), %s1780_s12 }
 0x145   : > { %1058 = sbr.rel (%p1181_p10) target bundleno = 350 (0x15e), region = 112  ;;  %s1819_s17 = smov (!%p1181_p10), 0  }
 0x146   : > { %s1821_s18 = smov (!%p1181_p10), 0  }
 0x14c LB: >> { %v876_v58 = vld [vmem:[%s1566_s30] sm:$0xf]  ;;  %v878_v44 = vld [vmem:[%s1566_s30 + $0x4] sm:$0xf]  ;;  %v880_v45 = vld [vmem:[%s1566_s30 + $0x8] sm:$0xf]  ;;  %s1574_s18 = sphi %s1821_s18, %s870_s18   ;;  %s1570_s17 = sphi %s1819_s17, %s1863_s17   ;;  %s1566_s30 = sphi %s1862_s30, %s905_s30   ;;  %s1562_s15 = sphi %s1861_s15, %s906_s15  }
 0x14d   : >> { %877 = vst [vmem:[%s1562_s15] sm:$0xf] %v876_v58  ;;  %879 = vst [vmem:[%s1562_s15 + $0x4] sm:$0xf] %v878_v44  ;;  %v882_v46 = vld [vmem:[%s1566_s30 + $0xc] sm:$0xf]  ;;  %s900_s21 = sadd.s32 1, %s1570_s17 }
 0x14e   : >> { %881 = vst [vmem:[%s1562_s15 + $0x8] sm:$0xf] %v880_v45  ;;  %v884_v47 = vld [vmem:[%s1566_s30 + $0x10] sm:$0xf]  ;;  %v886_v48 = vld [vmem:[%s1566_s30 + $0x14] sm:$0xf]  ;;  %p901_p11 = scmp.ge.s32.totalorder %s900_s21, %s1810_s20 }
 0x14f   : >> { %883 = vst [vmem:[%s1562_s15 + $0xc] sm:$0xf] %v882_v46  ;;  %885 = vst [vmem:[%s1562_s15 + $0x10] sm:$0xf] %v884_v47  ;;  %v888_v49 = vld [vmem:[%s1566_s30 + $0x18] sm:$0xf] }
 0x150   : >> { %887 = vst [vmem:[%s1562_s15 + $0x14] sm:$0xf] %v886_v48  ;;  %v890_v50 = vld [vmem:[%s1566_s30 + $0x1c] sm:$0xf]  ;;  %v892_v51 = vld [vmem:[%s1566_s30 + $0x20] sm:$0xf] }
 0x151   : >> { %889 = vst [vmem:[%s1562_s15 + $0x18] sm:$0xf] %v888_v49  ;;  %891 = vst [vmem:[%s1562_s15 + $0x1c] sm:$0xf] %v890_v50  ;;  %v894_v52 = vld [vmem:[%s1566_s30 + $0x24] sm:$0xf] }
 0x152   : >> { %893 = vst [vmem:[%s1562_s15 + $0x20] sm:$0xf] %v892_v51  ;;  %v896_v53 = vld [vmem:[%s1566_s30 + $0x28] sm:$0xf]  ;;  %v898_v54 = vld [vmem:[%s1566_s30 + $0x2c] sm:$0xf] }
 0x153   : >> { %895 = vst [vmem:[%s1562_s15 + $0x24] sm:$0xf] %v894_v52  ;;  %897 = vst [vmem:[%s1562_s15 + $0x28] sm:$0xf] %v896_v53  ;;  %s1870_s21 = smov (%p901_p11, %s900_s21), 0  ;;  %s870_s18 = sadd.s32 1, %s1574_s18  }
 0x154   : >> { %899 = vst [vmem:[%s1562_s15 + $0x2c] sm:$0xf] %v898_v54  ;;  %s903_s22 = smul.u32 48, %s1870_s21  ;;  %p869_p12 = scmp.ge.s32.totalorder %s870_s18, %s1810_s20 }
 0x155   : >> { %s1863_s17 = smov %s1870_s21 }
 0x156   : >> { %s905_s30 = scalar_lea.vmem %s1780_s12, %s903_s22 [#allocation2]   ;;  %s906_s15 = scalar_lea.vmem %s1804_s11, %s903_s22  }
 0x157   : > { %872 = sbr.rel (!%p869_p12) target bundleno = 332 (0x14c), region = 118 }
 0x15e PF: > { %1502 = sdivrem.u32 %s1868_s7, 12 }
 0x15f   : > { %s1182_s23 = smul.u32 48, %s1810_s20 }
 0x161   : > { %s911_s24 = scalar_lea.vmem %s1780_s12, %s1182_s23 [#allocation2]   ;;  %s913_s25 = scalar_lea.vmem %s1804_s11, %s1182_s23  }
 0x167   : > { %s1503_s26 = spop.drf %1502 }
 0x168   : > { %p1184_p13 = scmp.le.s32.totalorder %s1503_s26, 0 }
 0x169   : > { %s1576_s27 = smov (!%p1184_p13), %s913_s25   ;;  %s1580_s28 = smov (!%p1184_p13), %s911_s24  }
 0x16a   : > { %1072 = sbr.rel (%p1184_p13) target bundleno = 379 (0x17b), region = 123  ;;  %s1584_s29 = smov (!%p1184_p13), 0  }
 0x16b   : > { %s1588_s4 = smov (!%p1184_p13), 0  }
 0x171 LB: >> { %v923_v55 = vld [vmem:[%s1582_s28] sm:$0xf]  ;;  %s925_s5 = sadd.s32 1, %s1586_s29  ;;  %s917_s4 = sadd.s32 1, %s1590_s4   ;;  %s1590_s4 = sphi %s1588_s4, %s917_s4   ;;  %s1586_s29 = sphi %s1584_s29, %s1585_s29   ;;  %s1582_s28 = sphi %s1580_s28, %s930_s28   ;;  %s1578_s27 = sphi %s1576_s27, %s931_s27  }
 0x172   : >> { %924 = vst [vmem:[%s1578_s27] sm:$0xf] %v923_v55  ;;  %p926_p0 = scmp.ge.s32.totalorder %s925_s5, %s1503_s26  ;;  %p916_p1 = scmp.ge.s32.totalorder %s917_s4, %s1503_s26 }
 0x174   : >> { %s1872_s5 = smov (%p926_p0, %s925_s5), 0  ;;  %919 = sbr.rel (!%p916_p1) target bundleno = 369 (0x171), region = 129 }
 0x175   : >> { %s1185_s6 = sshll.u32 %s1872_s5, 2  ;;  %s1585_s29 = smov %s1872_s5  }
 0x176   : >> { %s930_s28 = scalar_lea.vmem %s911_s24, %s1185_s6 [#allocation2]   ;;  %s931_s27 = scalar_lea.vmem %s913_s25, %s1185_s6  }
 0x17b PF: > { %p10_p2 = scmp.ge.s32.totalorder %s1627_s16, 4   ;;  %s1864_s12 = smov %s1554_s13 }
 0x17c   : > { %s1865_s13 = smov %s1635_s19  ;;  %s1866_s14 = smov %s1627_s16 }
 0x17d   :  { %12 = sbr.rel (!%p10_p2) target bundleno = 2 (0x2), region = 140 }

// kernel: dqn_forward.6
= control target key start
LH: loop header
LB: loop body
LE: loop exit
PB: predicated region body
PF: predicated region fallthrough
CT: control target
= control target key end

     0   :  { %s1618_s12 = smov 0   ;;  %s1620_s13 = smov 0   ;;  %s1859_s0 = inlined_call_operand.vmem [shape: bf16[112,576], index: 0, kind: input, shape index: {}]   ;;  %s1860_s1 = inlined_call_operand.vmem [shape: bf16[576,128], index: 1, kind: input, shape index: {}]   ;;  %s1861_s2 = inlined_call_operand.vmem [shape: f32[1,128], index: 2, kind: input, shape index: {}]   ;;  %s1862_s3 = inlined_call_operand.vmem [shape: bf16[112,128], index: 3, kind: output, shape index: {}]  }
   0x1   :  { %s1622_s14 = smov 0  }
   0x2 LB: > { %s1631_s15 = sadd.s32 4294967295, %s1564_s14   ;;  %s1633_s16 = sadd.s32 1, %s1564_s14   ;;  %s1564_s14 = sphi %s1622_s14, %s1869_s14   ;;  %s1560_s13 = sphi %s1620_s13, %s1868_s13   ;;  %s1556_s12 = sphi %s1618_s12, %s1867_s12  }
   0x3   : > { %s85_s17 = ssub.s32 %s1564_s14, %s1633_s16  ;;  %s88_s18 = sadd.s32 1, %s1560_s13 }
   0x4   : > { %p86_p0 = scmp.eq.s32.totalorder %s85_s17, 0  ;;  %p98_p1 = scmp.ne.s32.totalorder %s1560_s13, %s1556_s12 }
   0x5   : > { %p99_p2 = scmp.eq.s32.totalorder %s1631_s15, 1  ;;  %p1121_p3 = scmp.ge.s32.totalorder %s1564_s14, 1 }
   0x6   : > { %s1641_s19 = scalar_select %p86_p0, %s1560_s13, %s88_s18  }
   0x7   : > { %p1643_p4 = por %p99_p2, %p98_p1  ;;  %p149_p5 = scmp.lt.s32.totalorder %s1564_s14, 3 }
   0x9   : > { %p150_p6 = pnand %p1121_p3, %p149_p5 }
   0xa   : > { %v1446_v0 = vld [vmem:[%s1860_s1 + $0x40] sm:$0xff] (!%p150_p6)   ;;  %v1450_v4 = vld [vmem:[%s1860_s1 + $0x48] sm:$0xff] (!%p150_p6)   ;;  %v1454_v8 = vld [vmem:[%s1860_s1 + $0x50] sm:$0xff] (!%p150_p6)   ;;  %s1693_s30 = sshll.u32 (!%p150_p6), %s1631_s15, 3  ;;  %vm620_vm0 = vcmask (!%p150_p6), 523264   ;;  %s175_s17 = sand.u32 (!%p150_p6), 1, %s1556_s12  }
   0xb   : > { %153 = sbr.rel (%p150_p6) target bundleno = 353 (0x161), region = 32  ;;  %v1447_v1 = vld [vmem:[%s1860_s1 + $0xc0] sm:$0xff] (!%p150_p6)   ;;  %1245 = vmatprep.subr.bf16.mxu0 (!%p150_p6), %v1446_v0  ;;  %v1451_v5 = vld [vmem:[%s1860_s1 + $0xc8] sm:$0xff] (!%p150_p6)   ;;  %v1455_v9 = vld [vmem:[%s1860_s1 + $0xd0] sm:$0xff] (!%p150_p6)   ;;  %p184_p7 = scmp.lt.s32.totalorder (!%p150_p6), %s1693_s30, 13 }
   0xc   : > { %v1448_v2 = vld [vmem:[%s1860_s1] sm:$0xff] (!%p150_p6)   ;;  %1285 = vmatprep.subr.bf16.mxu1 (!%p150_p6), %v1447_v1  ;;  %v1452_v6 = vld [vmem:[%s1860_s1 + $0x8] sm:$0xff] (!%p150_p6)   ;;  %v1456_v10 = vld [vmem:[%s1860_s1 + $0x10] sm:$0xff] (!%p150_p6)   ;;  %s1122_s18 = sshll.u32 (!%p150_p6), %s175_s17, 5 }
   0xd   : > { %v1449_v3 = vld [vmem:[%s1860_s1 + $0x80] sm:$0xff] (!%p150_p6)   ;;  %1246 = vmatpush3.bf16.msra.mxu0 (!%p150_p6), %v1448_v2  ;;  %v1453_v7 = vld [vmem:[%s1860_s1 + $0x88] sm:$0xff] (!%p150_p6)   ;;  %v1457_v11 = vld [vmem:[%s1860_s1 + $0x90] sm:$0xff] (!%p150_p6)   ;;  %s1792_s12 = scalar_lea.vmem (!%p150_p6), [#allocation2], %s1122_s18  }
   0xe   : > { %1286 = vmatpush3.bf16.msra.mxu1 (!%p150_p6), %v1449_v3  ;;  %1247 = vmatprep.subr.bf16.mxu0 (!%p150_p6), %v1450_v4  ;;  %v1458_v12 = vld [vmem:[%s1860_s1 + $0x58] sm:$0xff] (!%p150_p6)   ;;  %v1462_v16 = vld [vmem:[%s1860_s1 + $0x60] sm:$0xff] (!%p150_p6)   ;;  %v1466_v20 = vld [vmem:[%s1860_s1 + $0x68] sm:$0xff] (!%p150_p6)  }
   0xf   : > { %1287 = vmatprep.subr.bf16.mxu1 (!%p150_p6), %v1451_v5  ;;  %v1459_v13 = vld [vmem:[%s1860_s1 + $0xd8] sm:$0xff] (!%p150_p6)   ;;  %v1463_v17 = vld [vmem:[%s1860_s1 + $0xe0] sm:$0xff] (!%p150_p6)   ;;  %v1467_v21 = vld [vmem:[%s1860_s1 + $0xe8] sm:$0xff] (!%p150_p6)  }
  0x10   : > { %v1460_v14 = vld [vmem:[%s1860_s1 + $0x18] sm:$0xff] (!%p150_p6)   ;;  %v1464_v18 = vld [vmem:[%s1860_s1 + $0x20] sm:$0xff] (!%p150_p6)   ;;  %v1468_v22 = vld [vmem:[%s1860_s1 + $0x28] sm:$0xff] (!%p150_p6)  }
  0x11   : > { %1248 = vmatpush3.bf16.msra.mxu0 (!%p150_p6), %v1452_v6  ;;  %v1461_v15 = vld [vmem:[%s1860_s1 + $0x98] sm:$0xff] (!%p150_p6)   ;;  %v1465_v19 = vld [vmem:[%s1860_s1 + $0xa0] sm:$0xff] (!%p150_p6)   ;;  %v1469_v23 = vld [vmem:[%s1860_s1 + $0xa8] sm:$0xff] (!%p150_p6)  }
  0x12   : > { %1288 = vmatpush3.bf16.msra.mxu1 %v1453_v7  ;;  %1249 = vmatprep.subr.bf16.mxu0 %v1454_v8  ;;  %s185_s24 = scalar_select %p184_p7, %s1693_s30, 13  ;;  %v1470_v24 = vld [vmem:[%s1860_s1 + $0x70] sm:$0xff]   ;;  %v1474_v28 = vld [vmem:[%s1860_s1 + $0x78] sm:$0xff]   ;;  %v1484_v36 = vld [vmem:[%s1860_s1 + $0x100] sm:$0xff]  }
  0x13   : > { %1289 = vmatprep.subr.bf16.mxu1 %v1455_v9  ;;  %v1471_v25 = vld [vmem:[%s1860_s1 + $0xf0] sm:$0xff]   ;;  %v1475_v29 = vld [vmem:[%s1860_s1 + $0xf8] sm:$0xff]   ;;  %v1491_v39 = vld [vmem:[%s1860_s1 + $0x108] sm:$0xff]   ;;  %s884_s21 = ssub.s32 (%p1643_p4), 14, %s1693_s30  ;;  %s1219_s22 = sshll.u32 (%p1643_p4), %s1631_s15, 5 }
  0x14   : > { %s1357_s7 = smul.u32 20, %s185_s24  ;;  %v1472_v26 = vld [vmem:[%s1860_s1 + $0x30] sm:$0xff]   ;;  %v1476_v30 = vld [vmem:[%s1860_s1 + $0x38] sm:$0xff]   ;;  %v1125_v58 = vld [vmem:[%s1861_s2] ss:$0 sm:$0xff]  ;;  %p885_p8 = scmp.lt.s32.totalorder (%p1643_p4), %s884_s21, 8 }
  0x15   : > { %1250 = vmatpush3.bf16.msra.mxu0 %v1456_v10  ;;  %v1473_v27 = vld [vmem:[%s1860_s1 + $0xb0] sm:$0xff]   ;;  %v1477_v31 = vld [vmem:[%s1860_s1 + $0xb8] sm:$0xff]   ;;  %s1805_s25 = scalar_lea.vmem (%p1643_p4), %s1862_s3, %s1219_s22  }
  0x16   : > { %1290 = vmatpush3.bf16.msra.mxu1 %v1457_v11  ;;  %1251 = vmatprep.subr.bf16.mxu0 %v1458_v12  ;;  %s1745_s24 = scalar_lea.vmem %s1859_s0, %s1357_s7  ;;  %v1498_v44 = vld [vmem:[%s1860_s1 + $0x110] sm:$0xff]   ;;  %v1505_v45 = vld [vmem:[%s1860_s1 + $0x118] sm:$0xff]  }
  0x17   : > { %1291 = vmatprep.subr.bf16.mxu1 %v1459_v13  ;;  %v1478_v32 = vld [vmem:[%s1745_s24] ss:$20 sps:$4 sm:$0xff]   ;;  %v1480_v33 = vld [vmem:[%s1745_s24 + $0x4] ss:$20 sps:$4 sm:$0xff]   ;;  %v1481_v34 = vld [vmem:[%s1745_s24 + $0x8] ss:$20 sps:$4 sm:$0xff]  }
  0x18   : > { %v1483_v35 = vld [vmem:[%s1745_s24 + $0xc] ss:$20 sps:$4 sm:$0xff]   ;;  %665 = vmatprep.mubr.bf16.mxu0 %v1480_v33  ;;  %v1487_v38 = vld [vmem:[%s1745_s24 + $0x34] ss:$20 sps:$4 sm:$0xff]   ;;  %v1490_v41 = vld [vmem:[%s1745_s24 + $0x30] ss:$20 sps:$4 sm:$0xff]  }
  0x19   : > { %1252 = vmatpush3.bf16.msra.mxu0 %v1460_v14  ;;  %730 = vmatprep.mubr.bf16.mxu1 %v1483_v35  ;;  %v1485_v37 = vld [vmem:[%s1745_s24 + $0x2c] ss:$20 sps:$4 sm:$0xff]   ;;  %v1489_v40 = vld [vmem:[%s1745_s24 + $0x28] ss:$20 sps:$4 sm:$0xff]   ;;  %v1496_v46 = vld [vmem:[%s1745_s24 + $0x50] ss:$20 sps:$4 sm:$0xff]  }
  0x1a   : > { %1292 = vmatpush3.bf16.msra.mxu1 %v1461_v15  ;;  %1253 = vmatprep.subr.bf16.mxu0 %v1462_v16  ;;  %v1492_v42 = vld [vmem:[%s1745_s24 + $0x54] ss:$20 sps:$4 sm:$0xff]   ;;  %v1494_v43 = vld [vmem:[%s1745_s24 + $0x5c] ss:$20 sps:$4 sm:$0xff]   ;;  %v1497_v47 = vld [vmem:[%s1745_s24 + $0x58] ss:$20 sps:$4 sm:$0xff]  }
  0x1b   : > { %1293 = vmatprep.subr.bf16.mxu1 %v1463_v17  ;;  %v1499_v48 = vld [vmem:[%s1745_s24 + $0x7c] ss:$20 sps:$4 sm:$0xff]   ;;  %v1501_v49 = vld [vmem:[%s1745_s24 + $0x84] ss:$20 sps:$4 sm:$0xff]   ;;  %v1504_v51 = vld [vmem:[%s1745_s24 + $0x80] ss:$20 sps:$4 sm:$0xff]  }
  0x1c   : > { %v1503_v50 = vld [vmem:[%s1745_s24 + $0x78] ss:$20 sps:$4 sm:$0xff]   ;;  %v1506_v52 = vld [vmem:[%s1745_s24 + $0x10] ss:$20 sps:$4 sm:$0xff]   ;;  %v1507_v53 = vld [vmem:[%s1745_s24 + $0x60] ss:$20 sps:$4 sm:$0xff]  }
  0x1d   : > { %1254 = vmatpush3.bf16.msra.mxu0 %v1464_v18  ;;  %v1508_v54 = vld [vmem:[%s1745_s24 + $0x38] ss:$20 sps:$4 sm:$0xff]   ;;  %v1509_v55 = vld [vmem:[%s1745_s24 + $0x88] ss:$20 sps:$4 sm:$0xff]  }
  0x1e   : > { %1294 = vmatpush3.bf16.msra.mxu1 %v1465_v19  ;;  %1255 = vmatprep.subr.bf16.mxu0 %v1466_v20 }
  0x1f   : > { %1295 = vmatprep.subr.bf16.mxu1 %v1467_v21 }
  0x21   : > { %1256 = vmatpush3.bf16.msra.mxu0 %v1468_v22 }
  0x22   : > { %1296 = vmatpush3.bf16.msra.mxu1 %v1469_v23  ;;  %1257 = vmatprep.subr.bf16.mxu0 %v1470_v24 }
  0x23   : > { %1297 = vmatprep.subr.bf16.mxu1 %v1471_v25 }
  0x25   : > { %1258 = vmatpush3.bf16.msra.mxu0 %v1472_v26 }
  0x26   : > { %1298 = vmatpush3.bf16.msra.mxu1 %v1473_v27  ;;  %1259 = vmatprep.subr.bf16.mxu0 %v1474_v28 }
  0x27   : > { %1299 = vmatprep.subr.bf16.mxu1 %v1475_v29 }
  0x29   : > { %1260 = vmatpush3.bf16.msra.mxu0 %v1476_v30 }
  0x2a   : > { %1300 = vmatpush3.bf16.msra.mxu1 %v1477_v31  ;;  %1333 = vmatprep.subr.bf16.mxu0 %v1484_v36 }
  0x2b   : > { %1349 = vmatprep.subr.bf16.mxu1 %v1484_v36 }
  0x2c   : > { %666 = vmatmul.mubr.bf16.vlgmr.msra.gmra.mrb[0].mxu0 %v1478_v32 }
  0x2d   : > { %731 = vmatmul.mubr.bf16.vlgmr.msra.gmra.mrb[0].mxu1 %v1481_v34  ;;  %1334 = vmatpush3.bf16.msra.mxu0 %v1484_v36 }
  0x2e   : > { %1353 = vmatpush3.bf16.msra.mxu1 %v1484_v36  ;;  %673 = vmatprep.mubr.bf16.mxu0 %v1485_v37 }
  0x2f   : > { %738 = vmatprep.mubr.bf16.mxu1 %v1487_v38  ;;  %1335 = vmatprep.subr.bf16.mxu0 %v1491_v39 }
  0x30   : > { %1350 = vmatprep.subr.bf16.mxu1 %v1491_v39 }
  0x31   : > { %1336 = vmatpush3.bf16.msra.mxu0 %v1491_v39 }
  0x32   : > { %1354 = vmatpush3.bf16.msra.mxu1 %v1491_v39  ;;  %1337 = vmatprep.subr.bf16.mxu0 %v1498_v44 }
  0x33   : > { %1351 = vmatprep.subr.bf16.mxu1 %v1498_v44 }
  0x34   : > { %674 = vmatmul.mubr.bf16.gmra.mrb[4].mxu0 %v1489_v40 }
  0x35   : > { %739 = vmatmul.mubr.bf16.gmra.mrb[4].mxu1 %v1490_v41  ;;  %681 = vmatprep.mubr.bf16.mxu0 %v1492_v42 }
  0x36   : > { %746 = vmatprep.mubr.bf16.mxu1 %v1494_v43  ;;  %1338 = vmatpush3.bf16.msra.mxu0 %v1498_v44 }
  0x37   : > { %1355 = vmatpush3.bf16.msra.mxu1 %v1498_v44  ;;  %1339 = vmatprep.subr.bf16.mxu0 %v1505_v45 }
  0x38   : > { %1352 = vmatprep.subr.bf16.mxu1 %v1505_v45 }
  0x3a   : > { %1340 = vmatpush3.bf16.msra.mxu0 %v1505_v45 }
  0x3b   : > { %1356 = vmatpush3.bf16.msra.mxu1 %v1505_v45 }
  0x3c   : > { %682 = vmatmul.mubr.bf16.gmra.mrb[8].mxu0 %v1496_v46 }
  0x3d   : > { %747 = vmatmul.mubr.bf16.gmra.mrb[8].mxu1 %v1497_v47  ;;  %689 = vmatprep.mubr.bf16.mxu0 %v1499_v48 }
  0x3e   : > { %754 = vmatprep.mubr.bf16.mxu1 %v1501_v49 }
  0x44   : > { %690 = vmatmul.mubr.bf16.gmra.mrb[12].mxu0 %v1503_v50 }
  0x45   : > { %755 = vmatmul.mubr.bf16.gmra.mrb[12].mxu1 %v1504_v51  ;;  %1341 = vmatprep.mubr.msk.bf16.mxu0 %vm620_vm0, %v1506_v52 }
  0x46   : > { %1345 = vmatprep.mubr.msk.bf16.mxu1 %vm620_vm0, %v1507_v53 }
  0x4c   : > { %1342 = vmatmul.mubr.msk.bf16.vlgmr.msra.gmra.mrb[16].mxu0 %vm620_vm0, %v1508_v54 }
  0x4d   : > { %1346 = vmatmul.mubr.msk.bf16.vlgmr.msra.gmra.mrb[16].mxu1 %vm620_vm0, %v1509_v55 }
  0xff   : > { %v1261_v56 = vpop.f32.mrb[0].mxu0 }
 0x100   : > { %v1301_v57 = vpop.f32.mrb[0].mxu1  ;;  %v1262_v59 = vpop.f32.mrb[1].mxu0 }
 0x101   : > { %v1263_v60 = vadd.f32 %v1262_v59, %v1261_v56  ;;  %v1302_v61 = vpop.f32.mrb[1].mxu1  ;;  %v1264_v62 = vpop.f32.mrb[2].mxu0 }
 0x102   : > { %v1303_v63 = vadd.f32 %v1302_v61, %v1301_v57  ;;  %v1304_v0 = vpop.f32.mrb[2].mxu1  ;;  %v1265_v1 = vpop.f32.mrb[3].mxu0 }
 0x103   : > { %v668_v2 = vadd.f32 %v1263_v60, %v1125_v58  ;;  %v1266_v3 = vadd.f32 %v1265_v1, %v1264_v62  ;;  %v1305_v4 = vpop.f32.mrb[3].mxu1 }
 0x104   : > { %v1306_v5 = vadd.f32 %v1305_v4, %v1304_v0 }
 0x105   : > { %v671_v6 = vadd.f32 %v1266_v3, %v1125_v58  ;;  %v733_v7 = vadd.f32 %v1303_v63, %v668_v2 }
 0x107   : > { %v1267_v8 = vpop.f32.mrb[4].mxu0  ;;  %v1788_v9 = vadd.f32 %v1306_v5, %v671_v6 }
 0x108   : > { %v1307_v10 = vpop.f32.mrb[4].mxu1  ;;  %v1268_v11 = vpop.f32.mrb[5].mxu0 }
 0x109   : > { %v1269_v12 = vadd.f32 %v1268_v11, %v1267_v8  ;;  %v1308_v13 = vpop.f32.mrb[5].mxu1  ;;  %v1270_v14 = vpop.f32.mrb[6].mxu0 }
 0x10a   : > { %v1309_v15 = vadd.f32 %v1308_v13, %v1307_v10  ;;  %v1310_v16 = vpop.f32.mrb[6].mxu1  ;;  %v1271_v17 = vpop.f32.mrb[7].mxu0 }
 0x10b   : > { %v676_v18 = vadd.f32 %v1269_v12, %v1125_v58  ;;  %v1272_v19 = vadd.f32 %v1271_v17, %v1270_v14  ;;  %v1311_v20 = vpop.f32.mrb[7].mxu1 }
 0x10c   : > { %v1312_v21 = vadd.f32 %v1311_v20, %v1310_v16 }
 0x10d   : > { %v679_v22 = vadd.f32 %v1272_v19, %v1125_v58  ;;  %v741_v23 = vadd.f32 %v1309_v15, %v676_v18 }
 0x10f   : > { %v1273_v24 = vpop.f32.mrb[8].mxu0  ;;  %v744_v25 = vadd.f32 %v1312_v21, %v679_v22 }
 0x110   : > { %v1313_v26 = vpop.f32.mrb[8].mxu1  ;;  %v1274_v27 = vpop.f32.mrb[9].mxu0 }
 0x111   : > { %v1275_v28 = vadd.f32 %v1274_v27, %v1273_v24  ;;  %v1314_v29 = vpop.f32.mrb[9].mxu1  ;;  %v1276_v30 = vpop.f32.mrb[10].mxu0 }
 0x112   : > { %v1315_v31 = vadd.f32 %v1314_v29, %v1313_v26  ;;  %v1316_v32 = vpop.f32.mrb[10].mxu1  ;;  %v1277_v33 = vpop.f32.mrb[11].mxu0 }
 0x113   : > { %v684_v34 = vadd.f32 %v1275_v28, %v1125_v58  ;;  %v1278_v35 = vadd.f32 %v1277_v33, %v1276_v30  ;;  %v1317_v36 = vpop.f32.mrb[11].mxu1 }
 0x114   : > { %v1318_v37 = vadd.f32 %v1317_v36, %v1316_v32 }
 0x115   : > { %v687_v38 = vadd.f32 %v1278_v35, %v1125_v58  ;;  %v749_v39 = vadd.f32 %v1315_v31, %v684_v34 }
 0x117   : > { %v1279_v40 = vpop.f32.mrb[12].mxu0  ;;  %v752_v41 = vadd.f32 %v1318_v37, %v687_v38 }
 0x118   : > { %v1319_v42 = vpop.f32.mrb[12].mxu1  ;;  %v1280_v43 = vpop.f32.mrb[13].mxu0 }
 0x119   : > { %v1281_v44 = vadd.f32 %v1280_v43, %v1279_v40  ;;  %v1320_v45 = vpop.f32.mrb[13].mxu1  ;;  %v1282_v46 = vpop.f32.mrb[14].mxu0 }
 0x11a   : > { %v1321_v47 = vadd.f32 %v1320_v45, %v1319_v42  ;;  %v1322_v48 = vpop.f32.mrb[14].mxu1  ;;  %v1283_v49 = vpop.f32.mrb[15].mxu0 }
 0x11b   : > { %v692_v50 = vadd.f32 %v1281_v44, %v1125_v58  ;;  %v1284_v51 = vadd.f32 %v1283_v49, %v1282_v46  ;;  %v1323_v52 = vpop.f32.mrb[15].mxu1 }
 0x11c   : > { %v1324_v53 = vadd.f32 %v1323_v52, %v1322_v48 }
 0x11d   : > { %v695_v54 = vadd.f32 %v1284_v51, %v1125_v58  ;;  %v757_v55 = vadd.f32 %v1321_v47, %v692_v50 }
 0x11f   : > { %v1343_v56 = vpop.f32.mrb[16].mxu0  ;;  %v760_v57 = vadd.f32 %v1324_v53, %v695_v54 }
 0x120   : > { %v806_v59 = vadd.f32 %v1343_v56, %v741_v23  ;;  %v1347_v60 = vpop.f32.mrb[16].mxu1  ;;  %v797_v61 = vpop.f32.mrb[17].mxu0 }
 0x121   : > { %v822_v62 = vadd.f32 %v1347_v60, %v757_v55  ;;  %v798_v63 = vadd.f32 %v797_v61, %v733_v7  ;;  %v813_v0 = vpop.f32.mrb[17].mxu1  ;;  %v1344_v1 = vpop.f32.mrb[18].mxu0 }
 0x122   : > { %v814_v2 = vadd.f32 %v813_v0, %v749_v39  ;;  %v809_v3 = vadd.f32 %v1344_v1, %v744_v25  ;;  %v1348_v4 = vpop.f32.mrb[18].mxu1  ;;  %v800_v5 = vpop.f32.mrb[19].mxu0  ;;  %v830_v10 = vmax.f32 %v806_v59, 0.0 }
 0x123   : > { %v825_v6 = vadd.f32 %v1348_v4, %v760_v57  ;;  %v801_v8 = vadd.f32 %v800_v5, %v1788_v9  ;;  %v816_v58 = vpop.f32.mrb[19].mxu1  ;;  %v834_v13 = vmax.f32 %v822_v62, 0.0  ;;  %v828_v14 = vmax.f32 %v798_v63, 0.0 }
 0x124   : > { %v831_v11 = vmax.f32 %v809_v3, 0.0  ;;  %v817_v12 = vadd.f32 %v816_v58, %v752_v41  ;;  %v832_v17 = vmax.f32 %v814_v2, 0.0  ;;  %882 = sbr.rel (!%p1643_p4) target bundleno = 353 (0x161), region = 36 }
 0x125   : > { %v835_v15 = vmax.f32 %v825_v6, 0.0  ;;  %v829_v16 = vmax.f32 %v801_v8, 0.0 }
 0x126   : > { %v1230_v7 = vpack.c.bf16 %v831_v11, %v830_v10  ;;  %v833_v18 = vmax.f32 %v817_v12, 0.0 }
 0x127   : > { %v1240_v19 = vpack.c.bf16 %v835_v15, %v834_v13  ;;  %v1225_v20 = vpack.c.bf16 %v829_v16, %v828_v14 }
 0x128   : > { %1242 = vst [vmem:[%s1792_s12 + $0x8] sm:$0xff] %v1230_v7   ;;  %v1235_v9 = vpack.c.bf16 %v833_v18, %v832_v17 }
 0x129   : > { %1244 = vst [vmem:[%s1792_s12 + $0x18] sm:$0xff] %v1240_v19   ;;  %1226 = vst [vmem:[%s1792_s12] sm:$0xff] %v1225_v20  }
 0x12a   : > { %1243 = vst [vmem:[%s1792_s12 + $0x10] sm:$0xff] %v1235_v9  }
 0x12b   : > { %s1871_s21 = smov (!%p885_p8, %s884_s21), 8 }
 0x12c   : > { %s1196_s26 = sshll.u32 %s1871_s21, 6 }
 0x12d   : > { %p1199_p9 = scmp.eq.s32.totalorder %s1196_s26, 0 }
 0x12e   : > { %s1811_s27 = sshrl.u32 (!%p1199_p9), %s1871_s21, 3 }
 0x12f   : > { %893 = sbr.rel (%p1199_p9) target bundleno = 353 (0x161), region = 40  ;;  %p1200_p10 = scmp.le.s32.totalorder (!%p1199_p9), %s1811_s27, 0 }
 0x136   : > { %1074 = sbr.rel (%p1200_p10) target bundleno = 332 (0x14c), region = 112  ;;  %s1864_s15 = smov (!%p1200_p10), %s1805_s25 }
 0x137   : > { %s1865_s20 = smov (!%p1200_p10), %s1792_s12  ;;  %s1820_s30 = smov (!%p1200_p10), 0  }
 0x138   : > { %s1822_s28 = smov (!%p1200_p10), 0  }
 0x13d LB: >> { %v909_v21 = vld [vmem:[%s1572_s20] sm:$0xf]  ;;  %v911_v22 = vld [vmem:[%s1572_s20 + $0x4] sm:$0xf]  ;;  %v913_v23 = vld [vmem:[%s1572_s20 + $0x8] sm:$0xf]  ;;  %s1580_s28 = sphi %s1822_s28, %s903_s28   ;;  %s1576_s30 = sphi %s1820_s30, %s1866_s30   ;;  %s1572_s20 = sphi %s1865_s20, %s930_s20   ;;  %s1568_s15 = sphi %s1864_s15, %s931_s15  }
 0x13e   : >> { %910 = vst [vmem:[%s1568_s15] sm:$0xf] %v909_v21  ;;  %912 = vst [vmem:[%s1568_s15 + $0x4] sm:$0xf] %v911_v22  ;;  %v915_v24 = vld [vmem:[%s1572_s20 + $0xc] sm:$0xf]  ;;  %s925_s29 = sadd.s32 1, %s1576_s30 }
 0x13f   : >> { %914 = vst [vmem:[%s1568_s15 + $0x8] sm:$0xf] %v913_v23  ;;  %v917_v25 = vld [vmem:[%s1572_s20 + $0x10] sm:$0xf]  ;;  %v919_v26 = vld [vmem:[%s1572_s20 + $0x14] sm:$0xf]  ;;  %p926_p11 = scmp.ge.s32.totalorder %s925_s29, %s1811_s27 }
 0x140   : >> { %916 = vst [vmem:[%s1568_s15 + $0xc] sm:$0xf] %v915_v24  ;;  %918 = vst [vmem:[%s1568_s15 + $0x10] sm:$0xf] %v917_v25  ;;  %v921_v27 = vld [vmem:[%s1572_s20 + $0x18] sm:$0xf] }
 0x141   : >> { %920 = vst [vmem:[%s1568_s15 + $0x14] sm:$0xf] %v919_v26  ;;  %v923_v28 = vld [vmem:[%s1572_s20 + $0x1c] sm:$0xf]  ;;  %922 = vst [vmem:[%s1568_s15 + $0x18] sm:$0xf] %v921_v27 }
 0x142   : >> { %924 = vst [vmem:[%s1568_s15 + $0x1c] sm:$0xf] %v923_v28  ;;  %s1873_s29 = smov (%p926_p11, %s925_s29), 0  ;;  %s903_s28 = sadd.s32 1, %s1580_s28  }
 0x143   : >> { %s1201_s4 = sshll.u32 %s1873_s29, 5  ;;  %p902_p12 = scmp.ge.s32.totalorder %s903_s28, %s1811_s27 }
 0x144   : >> { %s930_s20 = scalar_lea.vmem %s1792_s12, %s1201_s4 [#allocation2]   ;;  %s931_s15 = scalar_lea.vmem %s1805_s25, %s1201_s4  }
 0x145   : >> { %s1866_s30 = smov %s1873_s29  ;;  %905 = sbr.rel (!%p902_p12) target bundleno = 317 (0x13d), region = 118 }
 0x14c PF: > { %s1841_s5 = sand.u32 7, %s1871_s21   ;;  %s1220_s6 = sshll.u32 %s1811_s27, 5 }
 0x14d   : > { %s936_s7 = scalar_lea.vmem %s1792_s12, %s1220_s6 [#allocation2]   ;;  %s938_s8 = scalar_lea.vmem %s1805_s25, %s1220_s6  }
 0x14e   : > { %p1206_p13 = scmp.le.s32.totalorder %s1841_s5, 0 }
 0x14f   : > { %s1582_s9 = smov (!%p1206_p13), %s938_s8   ;;  %s1586_s10 = smov (!%p1206_p13), %s936_s7  }
 0x150   : > { %1088 = sbr.rel (%p1206_p13) target bundleno = 353 (0x161), region = 123  ;;  %s1590_s11 = smov (!%p1206_p13), 0  }
 0x151   : > { %s1594_s14 = smov (!%p1206_p13), 0  }
 0x157 LB: >> { %v948_v29 = vld [vmem:[%s1588_s10] sm:$0xf]  ;;  %s950_s17 = sadd.s32 1, %s1592_s11  ;;  %s942_s14 = sadd.s32 1, %s1596_s14   ;;  %s1596_s14 = sphi %s1594_s14, %s942_s14   ;;  %s1592_s11 = sphi %s1590_s11, %s1591_s11   ;;  %s1588_s10 = sphi %s1586_s10, %s955_s10   ;;  %s1584_s9 = sphi %s1582_s9, %s956_s9  }
 0x158   : >> { %949 = vst [vmem:[%s1584_s9] sm:$0xf] %v948_v29  ;;  %p951_p0 = scmp.ge.s32.totalorder %s950_s17, %s1841_s5  ;;  %p941_p1 = scmp.ge.s32.totalorder %s942_s14, %s1841_s5 }
 0x15a   : >> { %s1875_s17 = smov (%p951_p0, %s950_s17), 0  ;;  %944 = sbr.rel (!%p941_p1) target bundleno = 343 (0x157), region = 129 }
 0x15b   : >> { %s1207_s18 = sshll.u32 %s1875_s17, 2  ;;  %s1591_s11 = smov %s1875_s17  }
 0x15c   : >> { %s955_s10 = scalar_lea.vmem %s936_s7, %s1207_s18 [#allocation2]   ;;  %s956_s9 = scalar_lea.vmem %s938_s8, %s1207_s18  }
 0x161 PF: > { %p10_p2 = scmp.ge.s32.totalorder %s1633_s16, 4   ;;  %s1867_s12 = smov %s1560_s13 }
 0x162   : > { %s1868_s13 = smov %s1641_s19  ;;  %s1869_s14 = smov %s1633_s16 }
 0x163   :  { %12 = sbr.rel (!%p10_p2) target bundleno = 2 (0x2), region = 140 }

// kernel: dqn_forward.7
= control target key start
LH: loop header
LB: loop body
LE: loop exit
PB: predicated region body
PF: predicated region fallthrough
CT: control target
= control target key end

     0   :  { %vm4898_vm0 = vcmask 523264   ;;  %s11187_s1 = inlined_call_operand.vmem [shape: bf16[3136,512], index: 1, kind: input, shape index: {}]   ;;  %s11188_s0 = inlined_call_operand.vmem [shape: bf16[16,3136], index: 0, kind: input, shape index: {}]   ;;  %s11189_s3 = inlined_call_operand.vmem [shape: bf16[512,128], index: 3, kind: input, shape index: {}]   ;;  %s11190_s2 = inlined_call_operand.vmem [shape: f32[1,512], index: 2, kind: input, shape index: {}]   ;;  %s11191_s4 = inlined_call_operand.vmem [shape: f32[1,128], index: 4, kind: input, shape index: {}]   ;;  %s11192_s5 = inlined_call_operand.vmem [shape: f32[16,128], index: 5, kind: output, shape index: {}]  }
   0x1   :  { %v7376_v0 = vld [vmem:[%s11187_s1 + $0x4] ss:$16 sps:$4 sm:$0xff]   ;;  %v7378_v1 = vld [vmem:[%s11187_s1 + $0xc] ss:$16 sps:$4 sm:$0xff]   ;;  %v7380_v2 = vld [vmem:[%s11187_s1] ss:$16 sps:$4 sm:$0xff]  }
   0x2   :  { %4902 = vmatprep.subr.bf16.mxu0 %v7376_v0  ;;  %v7381_v3 = vld [vmem:[%s11187_s1 + $0x8] ss:$16 sps:$4 sm:$0xff]   ;;  %5461 = vmatprep.subr.bf16.mxu1 %v7378_v1  ;;  %v7382_v4 = vld [vmem:[%s11187_s1 + $0x24] ss:$16 sps:$4 sm:$0xff]   ;;  %v7384_v5 = vld [vmem:[%s11187_s1 + $0x2c] ss:$16 sps:$4 sm:$0xff]  }
   0x3   :  { %4903 = vmatpush1.bf16.msra.mxu0 %v7380_v2  ;;  %5462 = vmatpush1.bf16.msra.mxu1 %v7381_v3  ;;  %v7386_v6 = vld [vmem:[%s11187_s1 + $0x20] ss:$16 sps:$4 sm:$0xff]   ;;  %v7387_v7 = vld [vmem:[%s11187_s1 + $0x28] ss:$16 sps:$4 sm:$0xff]   ;;  %v7388_v8 = vld [vmem:[%s11187_s1 + $0x44] ss:$16 sps:$4 sm:$0xff]  }
   0x4   :  { %4904 = vmatprep.subr.bf16.mxu0 %v7382_v4  ;;  %5463 = vmatprep.subr.bf16.mxu1 %v7384_v5  ;;  %v7390_v9 = vld [vmem:[%s11187_s1 + $0x4c] ss:$16 sps:$4 sm:$0xff]   ;;  %v7392_v10 = vld [vmem:[%s11187_s1 + $0x40] ss:$16 sps:$4 sm:$0xff]   ;;  %v7393_v11 = vld [vmem:[%s11187_s1 + $0x48] ss:$16 sps:$4 sm:$0xff]  }
   0x5   :  { %v7394_v12 = vld [vmem:[%s11187_s1 + $0x64] ss:$16 sps:$4 sm:$0xff]   ;;  %v7396_v13 = vld [vmem:[%s11187_s1 + $0x6c] ss:$16 sps:$4 sm:$0xff]   ;;  %v7398_v14 = vld [vmem:[%s11187_s1 + $0x60] ss:$16 sps:$4 sm:$0xff]  }
   0x6   :  { %v7399_v15 = vld [vmem:[%s11187_s1 + $0x68] ss:$16 sps:$4 sm:$0xff]   ;;  %v7400_v16 = vld [vmem:[%s11187_s1 + $0x84] ss:$16 sps:$4 sm:$0xff]   ;;  %v7402_v17 = vld [vmem:[%s11187_s1 + $0x8c] ss:$16 sps:$4 sm:$0xff]  }
   0x7   :  { %4905 = vmatpush1.bf16.msra.mxu0 %v7386_v6  ;;  %5464 = vmatpush1.bf16.msra.mxu1 %v7387_v7  ;;  %v7404_v18 = vld [vmem:[%s11187_s1 + $0x80] ss:$16 sps:$4 sm:$0xff]   ;;  %v7405_v19 = vld [vmem:[%s11187_s1 + $0x88] ss:$16 sps:$4 sm:$0xff]   ;;  %v7406_v20 = vld [vmem:[%s11187_s1 + $0xa4] ss:$16 sps:$4 sm:$0xff]  }
   0x8   :  { %4906 = vmatprep.subr.bf16.mxu0 %v7388_v8  ;;  %5465 = vmatprep.subr.bf16.mxu1 %v7390_v9  ;;  %v7408_v21 = vld [vmem:[%s11187_s1 + $0xac] ss:$16 sps:$4 sm:$0xff]   ;;  %v7410_v22 = vld [vmem:[%s11187_s1 + $0xa0] ss:$16 sps:$4 sm:$0xff]   ;;  %v7411_v23 = vld [vmem:[%s11187_s1 + $0xa8] ss:$16 sps:$4 sm:$0xff]  }
   0x9   :  { %v7412_v24 = vld [vmem:[%s11187_s1 + $0xc4] ss:$16 sps:$4 sm:$0xff]   ;;  %v7414_v25 = vld [vmem:[%s11187_s1 + $0xcc] ss:$16 sps:$4 sm:$0xff]   ;;  %v7416_v26 = vld [vmem:[%s11187_s1 + $0xc0] ss:$16 sps:$4 sm:$0xff]  }
   0xa   :  { %v7417_v27 = vld [vmem:[%s11187_s1 + $0xc8] ss:$16 sps:$4 sm:$0xff]   ;;  %v7418_v28 = vld [vmem:[%s11187_s1 + $0xe4] ss:$16 sps:$4 sm:$0xff]   ;;  %v7420_v29 = vld [vmem:[%s11187_s1 + $0xec] ss:$16 sps:$4 sm:$0xff]  }
   0xb   :  { %4907 = vmatpush1.bf16.msra.mxu0 %v7392_v10  ;;  %5466 = vmatpush1.bf16.msra.mxu1 %v7393_v11  ;;  %v7422_v30 = vld [vmem:[%s11187_s1 + $0xe0] ss:$16 sps:$4 sm:$0xff]   ;;  %v7423_v31 = vld [vmem:[%s11187_s1 + $0xe8] ss:$16 sps:$4 sm:$0xff]   ;;  %v7424_v32 = vld [vmem:[%s11187_s1 + $0x104] ss:$16 sps:$4 sm:$0xff]  }
   0xc   :  { %4908 = vmatprep.subr.bf16.mxu0 %v7394_v12  ;;  %5467 = vmatprep.subr.bf16.mxu1 %v7396_v13  ;;  %v7426_v33 = vld [vmem:[%s11187_s1 + $0x10c] ss:$16 sps:$4 sm:$0xff]   ;;  %v7428_v34 = vld [vmem:[%s11187_s1 + $0x100] ss:$16 sps:$4 sm:$0xff]   ;;  %v7429_v35 = vld [vmem:[%s11187_s1 + $0x108] ss:$16 sps:$4 sm:$0xff]  }
   0xd   :  { %v7430_v36 = vld [vmem:[%s11187_s1 + $0x124] ss:$16 sps:$4 sm:$0xff]   ;;  %v7432_v37 = vld [vmem:[%s11187_s1 + $0x12c] ss:$16 sps:$4 sm:$0xff]   ;;  %v7434_v38 = vld [vmem:[%s11187_s1 + $0x120] ss:$16 sps:$4 sm:$0xff]  }
   0xe   :  { %v7435_v39 = vld [vmem:[%s11187_s1 + $0x128] ss:$16 sps:$4 sm:$0xff]   ;;  %v7436_v40 = vld [vmem:[%s11187_s1 + $0x144] ss:$16 sps:$4 sm:$0xff]   ;;  %v7438_v41 = vld [vmem:[%s11187_s1 + $0x14c] ss:$16 sps:$4 sm:$0xff]  }
   0xf   :  { %4909 = vmatpush1.bf16.msra.mxu0 %v7398_v14  ;;  %5468 = vmatpush1.bf16.msra.mxu1 %v7399_v15  ;;  %v7440_v42 = vld [vmem:[%s11187_s1 + $0x140] ss:$16 sps:$4 sm:$0xff]   ;;  %v7441_v43 = vld [vmem:[%s11187_s1 + $0x148] ss:$16 sps:$4 sm:$0xff]   ;;  %v7442_v44 = vld [vmem:[%s11187_s1 + $0x164] ss:$16 sps:$4 sm:$0xff]  }
  0x10   :  { %4910 = vmatprep.subr.bf16.mxu0 %v7400_v16  ;;  %5469 = vmatprep.subr.bf16.mxu1 %v7402_v17  ;;  %v7444_v45 = vld [vmem:[%s11187_s1 + $0x16c] ss:$16 sps:$4 sm:$0xff]   ;;  %v7446_v46 = vld [vmem:[%s11187_s1 + $0x160] ss:$16 sps:$4 sm:$0xff]   ;;  %v7447_v47 = vld [vmem:[%s11187_s1 + $0x168] ss:$16 sps:$4 sm:$0xff]  }
  0x11   :  { %v7474_v48 = vld [vmem:[%s11188_s0 + $0x4] ss:$100 sps:$4 sm:$0xff]   ;;  %v7450_v50 = vld [vmem:[%s11187_s1 + $0x18c] ss:$16 sps:$4 sm:$0xff]   ;;  %v7452_v51 = vld [vmem:[%s11187_s1 + $0x180] ss:$16 sps:$4 sm:$0xff]  }
  0x12   :  { %v7448_v49 = vld [vmem:[%s11187_s1 + $0x184] ss:$16 sps:$4 sm:$0xff]   ;;  %4934 = vmatprep.mubr.bf16.mxu0 %v7474_v48  ;;  %5493 = vmatprep.mubr.bf16.mxu1 %v7474_v48  ;;  %v7453_v52 = vld [vmem:[%s11187_s1 + $0x188] ss:$16 sps:$4 sm:$0xff]   ;;  %v7456_v54 = vld [vmem:[%s11187_s1 + $0x1ac] ss:$16 sps:$4 sm:$0xff]  }
  0x13   :  { %4911 = vmatpush1.bf16.msra.mxu0 %v7404_v18  ;;  %5470 = vmatpush1.bf16.msra.mxu1 %v7405_v19  ;;  %v7454_v53 = vld [vmem:[%s11187_s1 + $0x1a4] ss:$16 sps:$4 sm:$0xff]   ;;  %v7458_v55 = vld [vmem:[%s11187_s1 + $0x1a0] ss:$16 sps:$4 sm:$0xff]   ;;  %v7459_v56 = vld [vmem:[%s11187_s1 + $0x1a8] ss:$16 sps:$4 sm:$0xff]  }
  0x14   :  { %4912 = vmatprep.subr.bf16.mxu0 %v7406_v20  ;;  %5471 = vmatprep.subr.bf16.mxu1 %v7408_v21  ;;  %v7460_v57 = vld [vmem:[%s11187_s1 + $0x1c4] ss:$16 sps:$4 sm:$0xff]   ;;  %v7462_v58 = vld [vmem:[%s11187_s1 + $0x1cc] ss:$16 sps:$4 sm:$0xff]   ;;  %v7464_v59 = vld [vmem:[%s11187_s1 + $0x1c0] ss:$16 sps:$4 sm:$0xff]  }
  0x15   :  { %v7465_v60 = vld [vmem:[%s11187_s1 + $0x1c8] ss:$16 sps:$4 sm:$0xff]   ;;  %v7466_v61 = vld [vmem:[%s11187_s1 + $0x1e4] ss:$16 sps:$4 sm:$0xff]   ;;  %v7468_v62 = vld [vmem:[%s11187_s1 + $0x1ec] ss:$16 sps:$4 sm:$0xff]  }
  0x16   :  { %v7470_v63 = vld [vmem:[%s11187_s1 + $0x1e0] ss:$16 sps:$4 sm:$0xff]   ;;  %v7471_v0 = vld [vmem:[%s11187_s1 + $0x1e8] ss:$16 sps:$4 sm:$0xff]   ;;  %v7477_v1 = vld [vmem:[%s11187_s1 + $0x204] ss:$16 sps:$4 sm:$0xff]  }
  0x17   :  { %4913 = vmatpush1.bf16.msra.mxu0 %v7410_v22  ;;  %5472 = vmatpush1.bf16.msra.mxu1 %v7411_v23  ;;  %v7480_v2 = vld [vmem:[%s11187_s1 + $0x20c] ss:$16 sps:$4 sm:$0xff]   ;;  %v7472_v3 = vld [vmem:[%s11188_s0] ss:$100 sps:$4 sm:$0xff]   ;;  %v7478_v5 = vld [vmem:[%s11187_s1 + $0x208] ss:$16 sps:$4 sm:$0xff]  }
  0x18   :  { %4914 = vmatprep.subr.bf16.mxu0 %v7412_v24  ;;  %5473 = vmatprep.subr.bf16.mxu1 %v7414_v25  ;;  %v7475_v4 = vld [vmem:[%s11187_s1 + $0x200] ss:$16 sps:$4 sm:$0xff]   ;;  %v7483_v6 = vld [vmem:[%s11187_s1 + $0x224] ss:$16 sps:$4 sm:$0xff]   ;;  %v7486_v7 = vld [vmem:[%s11187_s1 + $0x22c] ss:$16 sps:$4 sm:$0xff]  }
  0x19   :  { %v7481_v8 = vld [vmem:[%s11187_s1 + $0x220] ss:$16 sps:$4 sm:$0xff]   ;;  %v7484_v9 = vld [vmem:[%s11187_s1 + $0x228] ss:$16 sps:$4 sm:$0xff]   ;;  %v7489_v10 = vld [vmem:[%s11187_s1 + $0x244] ss:$16 sps:$4 sm:$0xff]  }
  0x1a   :  { %v7492_v11 = vld [vmem:[%s11187_s1 + $0x24c] ss:$16 sps:$4 sm:$0xff]   ;;  %v7487_v12 = vld [vmem:[%s11187_s1 + $0x240] ss:$16 sps:$4 sm:$0xff]   ;;  %v7490_v13 = vld [vmem:[%s11187_s1 + $0x248] ss:$16 sps:$4 sm:$0xff]  }
  0x1b   :  { %4915 = vmatpush1.bf16.msra.mxu0 %v7416_v26  ;;  %5474 = vmatpush1.bf16.msra.mxu1 %v7417_v27  ;;  %v7495_v14 = vld [vmem:[%s11187_s1 + $0x264] ss:$16 sps:$4 sm:$0xff]   ;;  %v7498_v15 = vld [vmem:[%s11187_s1 + $0x26c] ss:$16 sps:$4 sm:$0xff]   ;;  %v7493_v16 = vld [vmem:[%s11187_s1 + $0x260] ss:$16 sps:$4 sm:$0xff]  }
  0x1c   :  { %4916 = vmatprep.subr.bf16.mxu0 %v7418_v28  ;;  %5475 = vmatprep.subr.bf16.mxu1 %v7420_v29  ;;  %v7496_v17 = vld [vmem:[%s11187_s1 + $0x268] ss:$16 sps:$4 sm:$0xff]   ;;  %v7501_v18 = vld [vmem:[%s11187_s1 + $0x284] ss:$16 sps:$4 sm:$0xff]   ;;  %v7504_v19 = vld [vmem:[%s11187_s1 + $0x28c] ss:$16 sps:$4 sm:$0xff]  }
  0x1d   :  { %v7499_v20 = vld [vmem:[%s11187_s1 + $0x280] ss:$16 sps:$4 sm:$0xff]   ;;  %v7502_v21 = vld [vmem:[%s11187_s1 + $0x288] ss:$16 sps:$4 sm:$0xff]   ;;  %v7507_v22 = vld [vmem:[%s11187_s1 + $0x2a4] ss:$16 sps:$4 sm:$0xff]  }
  0x1e   :  { %v7510_v23 = vld [vmem:[%s11187_s1 + $0x2ac] ss:$16 sps:$4 sm:$0xff]   ;;  %v7505_v24 = vld [vmem:[%s11187_s1 + $0x2a0] ss:$16 sps:$4 sm:$0xff]   ;;  %v7508_v25 = vld [vmem:[%s11187_s1 + $0x2a8] ss:$16 sps:$4 sm:$0xff]  }
  0x1f   :  { %4917 = vmatpush1.bf16.msra.mxu0 %v7422_v30  ;;  %5476 = vmatpush1.bf16.msra.mxu1 %v7423_v31  ;;  %v7513_v26 = vld [vmem:[%s11187_s1 + $0x2c4] ss:$16 sps:$4 sm:$0xff]   ;;  %v7516_v27 = vld [vmem:[%s11187_s1 + $0x2cc] ss:$16 sps:$4 sm:$0xff]   ;;  %v7511_v28 = vld [vmem:[%s11187_s1 + $0x2c0] ss:$16 sps:$4 sm:$0xff]  }
  0x20   :  { %4918 = vmatprep.subr.bf16.mxu0 %v7424_v32  ;;  %5477 = vmatprep.subr.bf16.mxu1 %v7426_v33  ;;  %v7514_v29 = vld [vmem:[%s11187_s1 + $0x2c8] ss:$16 sps:$4 sm:$0xff]   ;;  %v7573_v30 = vld [vmem:[%s11188_s0 + $0xc] ss:$100 sps:$4 sm:$0xff]   ;;  %v7519_v31 = vld [vmem:[%s11187_s1 + $0x2e4] ss:$16 sps:$4 sm:$0xff]  }
  0x21   :  { %v7522_v32 = vld [vmem:[%s11187_s1 + $0x2ec] ss:$16 sps:$4 sm:$0xff]   ;;  %v7517_v33 = vld [vmem:[%s11187_s1 + $0x2e0] ss:$16 sps:$4 sm:$0xff]  }
  0x22   :  { %v7546_v48 = vld [vmem:[%s11187_s1 + $0x36c] ss:$16 sps:$4 sm:$0xff]  }
  0x23   :  { %4919 = vmatpush1.bf16.msra.mxu0 %v7428_v34  ;;  %5478 = vmatpush1.bf16.msra.mxu1 %v7429_v35  ;;  %v7520_v34 = vld [vmem:[%s11187_s1 + $0x2e8] ss:$16 sps:$4 sm:$0xff]   ;;  %v7525_v35 = vld [vmem:[%s11187_s1 + $0x304] ss:$16 sps:$4 sm:$0xff]  }
  0x24   :  { %4920 = vmatprep.subr.bf16.mxu0 %v7430_v36  ;;  %5479 = vmatprep.subr.bf16.mxu1 %v7432_v37  ;;  %v7528_v36 = vld [vmem:[%s11187_s1 + $0x30c] ss:$16 sps:$4 sm:$0xff]   ;;  %v7523_v37 = vld [vmem:[%s11187_s1 + $0x300] ss:$16 sps:$4 sm:$0xff]  }
  0x27   :  { %4921 = vmatpush1.bf16.msra.mxu0 %v7434_v38  ;;  %5480 = vmatpush1.bf16.msra.mxu1 %v7435_v39  ;;  %v7526_v38 = vld [vmem:[%s11187_s1 + $0x308] ss:$16 sps:$4 sm:$0xff]   ;;  %v7531_v39 = vld [vmem:[%s11187_s1 + $0x324] ss:$16 sps:$4 sm:$0xff]  }
  0x28   :  { %4922 = vmatprep.subr.bf16.mxu0 %v7436_v40  ;;  %5481 = vmatprep.subr.bf16.mxu1 %v7438_v41  ;;  %v7534_v40 = vld [vmem:[%s11187_s1 + $0x32c] ss:$16 sps:$4 sm:$0xff]   ;;  %v7529_v41 = vld [vmem:[%s11187_s1 + $0x320] ss:$16 sps:$4 sm:$0xff]  }
  0x2b   :  { %4923 = vmatpush1.bf16.msra.mxu0 %v7440_v42  ;;  %5482 = vmatpush1.bf16.msra.mxu1 %v7441_v43  ;;  %v7532_v42 = vld [vmem:[%s11187_s1 + $0x328] ss:$16 sps:$4 sm:$0xff]   ;;  %v7537_v43 = vld [vmem:[%s11187_s1 + $0x344] ss:$16 sps:$4 sm:$0xff]  }
  0x2c   :  { %4924 = vmatprep.subr.bf16.mxu0 %v7442_v44  ;;  %5483 = vmatprep.subr.bf16.mxu1 %v7444_v45  ;;  %v7540_v44 = vld [vmem:[%s11187_s1 + $0x34c] ss:$16 sps:$4 sm:$0xff]   ;;  %v7535_v45 = vld [vmem:[%s11187_s1 + $0x340] ss:$16 sps:$4 sm:$0xff]  }
  0x2f   :  { %4925 = vmatpush1.bf16.msra.mxu0 %v7446_v46  ;;  %5484 = vmatpush1.bf16.msra.mxu1 %v7447_v47  ;;  %v7538_v46 = vld [vmem:[%s11187_s1 + $0x348] ss:$16 sps:$4 sm:$0xff]   ;;  %v7543_v47 = vld [vmem:[%s11187_s1 + $0x364] ss:$16 sps:$4 sm:$0xff]  }
  0x30   :  { %4926 = vmatprep.subr.bf16.mxu0 %v7448_v49  ;;  %5485 = vmatprep.subr.bf16.mxu1 %v7450_v50  ;;  %v7541_v49 = vld [vmem:[%s11187_s1 + $0x360] ss:$16 sps:$4 sm:$0xff]   ;;  %v7544_v50 = vld [vmem:[%s11187_s1 + $0x368] ss:$16 sps:$4 sm:$0xff]  }
  0x33   :  { %4927 = vmatpush1.bf16.msra.mxu0 %v7452_v51  ;;  %5486 = vmatpush1.bf16.msra.mxu1 %v7453_v52  ;;  %v7549_v51 = vld [vmem:[%s11187_s1 + $0x384] ss:$16 sps:$4 sm:$0xff]   ;;  %v7552_v52 = vld [vmem:[%s11187_s1 + $0x38c] ss:$16 sps:$4 sm:$0xff]  }
  0x34   :  { %4928 = vmatprep.subr.bf16.mxu0 %v7454_v53  ;;  %5487 = vmatprep.subr.bf16.mxu1 %v7456_v54  ;;  %v7547_v53 = vld [vmem:[%s11187_s1 + $0x380] ss:$16 sps:$4 sm:$0xff]   ;;  %v7550_v54 = vld [vmem:[%s11187_s1 + $0x388] ss:$16 sps:$4 sm:$0xff]  }
  0x37   :  { %4929 = vmatpush1.bf16.msra.mxu0 %v7458_v55  ;;  %5488 = vmatpush1.bf16.msra.mxu1 %v7459_v56  ;;  %v7555_v55 = vld [vmem:[%s11187_s1 + $0x3a4] ss:$16 sps:$4 sm:$0xff]   ;;  %v7558_v56 = vld [vmem:[%s11187_s1 + $0x3ac] ss:$16 sps:$4 sm:$0xff]  }
  0x38   :  { %4930 = vmatprep.subr.bf16.mxu0 %v7460_v57  ;;  %5489 = vmatprep.subr.bf16.mxu1 %v7462_v58  ;;  %v7553_v57 = vld [vmem:[%s11187_s1 + $0x3a0] ss:$16 sps:$4 sm:$0xff]   ;;  %v7556_v58 = vld [vmem:[%s11187_s1 + $0x3a8] ss:$16 sps:$4 sm:$0xff]  }
  0x3b   :  { %4931 = vmatpush1.bf16.msra.mxu0 %v7464_v59  ;;  %5490 = vmatpush1.bf16.msra.mxu1 %v7465_v60  ;;  %v7561_v59 = vld [vmem:[%s11187_s1 + $0x3c4] ss:$16 sps:$4 sm:$0xff]   ;;  %v7564_v60 = vld [vmem:[%s11187_s1 + $0x3cc] ss:$16 sps:$4 sm:$0xff]  }
  0x3c   :  { %4932 = vmatprep.subr.bf16.mxu0 %v7466_v61  ;;  %5491 = vmatprep.subr.bf16.mxu1 %v7468_v62  ;;  %v7559_v61 = vld [vmem:[%s11187_s1 + $0x3c0] ss:$16 sps:$4 sm:$0xff]   ;;  %v7562_v62 = vld [vmem:[%s11187_s1 + $0x3c8] ss:$16 sps:$4 sm:$0xff]  }
  0x3f   :  { %4933 = vmatpush1.bf16.msra.mxu0 %v7470_v63  ;;  %5492 = vmatpush1.bf16.msra.mxu1 %v7471_v0  ;;  %v7567_v63 = vld [vmem:[%s11187_s1 + $0x3e4] ss:$16 sps:$4 sm:$0xff]   ;;  %v7570_v0 = vld [vmem:[%s11187_s1 + $0x3ec] ss:$16 sps:$4 sm:$0xff]  }
  0x40   :  { %4945 = vmatprep.subr.bf16.mxu0 %v7477_v1  ;;  %5504 = vmatprep.subr.bf16.mxu1 %v7480_v2  ;;  %v7565_v1 = vld [vmem:[%s11187_s1 + $0x3e0] ss:$16 sps:$4 sm:$0xff]   ;;  %v7568_v2 = vld [vmem:[%s11187_s1 + $0x3e8] ss:$16 sps:$4 sm:$0xff]  }
  0x42   :  { %4935 = vmatmul.mubr.bf16.vlgmr.msra.gmra.mrb[0].mxu0 %v7472_v3  ;;  %5494 = vmatmul.mubr.bf16.vlgmr.msra.gmra.mrb[0].mxu1 %v7472_v3  ;;  %v7576_v3 = vld [vmem:[%s11187_s1 + $0x404] ss:$16 sps:$4 sm:$0xff]  }
  0x43   :  { %4946 = vmatpush1.bf16.msra.mxu0 %v7475_v4  ;;  %5505 = vmatpush1.bf16.msra.mxu1 %v7478_v5  ;;  %v7579_v4 = vld [vmem:[%s11187_s1 + $0x40c] ss:$16 sps:$4 sm:$0xff]  }
  0x44   :  { %4947 = vmatprep.subr.bf16.mxu0 %v7483_v6  ;;  %5506 = vmatprep.subr.bf16.mxu1 %v7486_v7  ;;  %v7571_v5 = vld [vmem:[%s11188_s0 + $0x8] ss:$100 sps:$4 sm:$0xff]   ;;  %v7574_v6 = vld [vmem:[%s11187_s1 + $0x400] ss:$16 sps:$4 sm:$0xff]  }
  0x45   :  { %4977 = vmatprep.mubr.bf16.mxu0 %v7573_v30  ;;  %5536 = vmatprep.mubr.bf16.mxu1 %v7573_v30  ;;  %v7577_v7 = vld [vmem:[%s11187_s1 + $0x408] ss:$16 sps:$4 sm:$0xff]   ;;  %v7615_v30 = vld [vmem:[%s11187_s1 + $0x4cc] ss:$16 sps:$4 sm:$0xff]  }
  0x47   :  { %4948 = vmatpush1.bf16.msra.mxu0 %v7481_v8  ;;  %5507 = vmatpush1.bf16.msra.mxu1 %v7484_v9  ;;  %v7582_v8 = vld [vmem:[%s11187_s1 + $0x424] ss:$16 sps:$4 sm:$0xff]   ;;  %v7585_v9 = vld [vmem:[%s11187_s1 + $0x42c] ss:$16 sps:$4 sm:$0xff]  }
  0x48   :  { %4949 = vmatprep.subr.bf16.mxu0 %v7489_v10  ;;  %5508 = vmatprep.subr.bf16.mxu1 %v7492_v11  ;;  %v7580_v10 = vld [vmem:[%s11187_s1 + $0x420] ss:$16 sps:$4 sm:$0xff]   ;;  %v7583_v11 = vld [vmem:[%s11187_s1 + $0x428] ss:$16 sps:$4 sm:$0xff]  }
  0x4b   :  { %4950 = vmatpush1.bf16.msra.mxu0 %v7487_v12  ;;  %5509 = vmatpush1.bf16.msra.mxu1 %v7490_v13  ;;  %v7672_v12 = vld [vmem:[%s11188_s0 + $0x14] ss:$100 sps:$4 sm:$0xff]  }
  0x4c   :  { %4951 = vmatprep.subr.bf16.mxu0 %v7495_v14  ;;  %5510 = vmatprep.subr.bf16.mxu1 %v7498_v15  ;;  %v7588_v13 = vld [vmem:[%s11187_s1 + $0x444] ss:$16 sps:$4 sm:$0xff]   ;;  %v7591_v14 = vld [vmem:[%s11187_s1 + $0x44c] ss:$16 sps:$4 sm:$0xff]   ;;  %v7586_v15 = vld [vmem:[%s11187_s1 + $0x440] ss:$16 sps:$4 sm:$0xff]  }
  0x4f   :  { %4952 = vmatpush1.bf16.msra.mxu0 %v7493_v16  ;;  %5511 = vmatpush1.bf16.msra.mxu1 %v7496_v17  ;;  %v7589_v16 = vld [vmem:[%s11187_s1 + $0x448] ss:$16 sps:$4 sm:$0xff]   ;;  %v7594_v17 = vld [vmem:[%s11187_s1 + $0x464] ss:$16 sps:$4 sm:$0xff]  }
  0x50   :  { %4953 = vmatprep.subr.bf16.mxu0 %v7501_v18  ;;  %5512 = vmatprep.subr.bf16.mxu1 %v7504_v19  ;;  %v7597_v18 = vld [vmem:[%s11187_s1 + $0x46c] ss:$16 sps:$4 sm:$0xff]   ;;  %v7592_v19 = vld [vmem:[%s11187_s1 + $0x460] ss:$16 sps:$4 sm:$0xff]  }
  0x53   :  { %4954 = vmatpush1.bf16.msra.mxu0 %v7499_v20  ;;  %5513 = vmatpush1.bf16.msra.mxu1 %v7502_v21  ;;  %v7595_v20 = vld [vmem:[%s11187_s1 + $0x468] ss:$16 sps:$4 sm:$0xff]   ;;  %v7600_v21 = vld [vmem:[%s11187_s1 + $0x484] ss:$16 sps:$4 sm:$0xff]  }
  0x54   :  { %4955 = vmatprep.subr.bf16.mxu0 %v7507_v22  ;;  %5514 = vmatprep.subr.bf16.mxu1 %v7510_v23  ;;  %v7603_v22 = vld [vmem:[%s11187_s1 + $0x48c] ss:$16 sps:$4 sm:$0xff]   ;;  %v7598_v23 = vld [vmem:[%s11187_s1 + $0x480] ss:$16 sps:$4 sm:$0xff]  }
  0x57   :  { %4956 = vmatpush1.bf16.msra.mxu0 %v7505_v24  ;;  %5515 = vmatpush1.bf16.msra.mxu1 %v7508_v25  ;;  %v7601_v24 = vld [vmem:[%s11187_s1 + $0x488] ss:$16 sps:$4 sm:$0xff]   ;;  %v7606_v25 = vld [vmem:[%s11187_s1 + $0x4a4] ss:$16 sps:$4 sm:$0xff]  }
  0x58   :  { %4957 = vmatprep.subr.bf16.mxu0 %v7513_v26  ;;  %5516 = vmatprep.subr.bf16.mxu1 %v7516_v27  ;;  %v7609_v26 = vld [vmem:[%s11187_s1 + $0x4ac] ss:$16 sps:$4 sm:$0xff]   ;;  %v7604_v27 = vld [vmem:[%s11187_s1 + $0x4a0] ss:$16 sps:$4 sm:$0xff]  }
  0x5b   :  { %4958 = vmatpush1.bf16.msra.mxu0 %v7511_v28  ;;  %5517 = vmatpush1.bf16.msra.mxu1 %v7514_v29  ;;  %v7607_v28 = vld [vmem:[%s11187_s1 + $0x4a8] ss:$16 sps:$4 sm:$0xff]   ;;  %v7612_v29 = vld [vmem:[%s11187_s1 + $0x4c4] ss:$16 sps:$4 sm:$0xff]  }
  0x5c   :  { %4959 = vmatprep.subr.bf16.mxu0 %v7519_v31  ;;  %5518 = vmatprep.subr.bf16.mxu1 %v7522_v32  ;;  %v7610_v31 = vld [vmem:[%s11187_s1 + $0x4c0] ss:$16 sps:$4 sm:$0xff]   ;;  %v7613_v32 = vld [vmem:[%s11187_s1 + $0x4c8] ss:$16 sps:$4 sm:$0xff]  }
  0x5f   :  { %4960 = vmatpush1.bf16.msra.mxu0 %v7517_v33  ;;  %5519 = vmatpush1.bf16.msra.mxu1 %v7520_v34  ;;  %v7618_v33 = vld [vmem:[%s11187_s1 + $0x4e4] ss:$16 sps:$4 sm:$0xff]   ;;  %v7621_v34 = vld [vmem:[%s11187_s1 + $0x4ec] ss:$16 sps:$4 sm:$0xff]  }
  0x60   :  { %4961 = vmatprep.subr.bf16.mxu0 %v7525_v35  ;;  %5520 = vmatprep.subr.bf16.mxu1 %v7528_v36  ;;  %v7616_v35 = vld [vmem:[%s11187_s1 + $0x4e0] ss:$16 sps:$4 sm:$0xff]   ;;  %v7619_v36 = vld [vmem:[%s11187_s1 + $0x4e8] ss:$16 sps:$4 sm:$0xff]  }
  0x63   :  { %4962 = vmatpush1.bf16.msra.mxu0 %v7523_v37  ;;  %5521 = vmatpush1.bf16.msra.mxu1 %v7526_v38  ;;  %v7624_v37 = vld [vmem:[%s11187_s1 + $0x504] ss:$16 sps:$4 sm:$0xff]   ;;  %v7627_v38 = vld [vmem:[%s11187_s1 + $0x50c] ss:$16 sps:$4 sm:$0xff]  }
  0x64   :  { %4963 = vmatprep.subr.bf16.mxu0 %v7531_v39  ;;  %5522 = vmatprep.subr.bf16.mxu1 %v7534_v40  ;;  %v7622_v39 = vld [vmem:[%s11187_s1 + $0x500] ss:$16 sps:$4 sm:$0xff]   ;;  %v7625_v40 = vld [vmem:[%s11187_s1 + $0x508] ss:$16 sps:$4 sm:$0xff]  }
  0x67   :  { %4964 = vmatpush1.bf16.msra.mxu0 %v7529_v41  ;;  %5523 = vmatpush1.bf16.msra.mxu1 %v7532_v42  ;;  %v7630_v41 = vld [vmem:[%s11187_s1 + $0x524] ss:$16 sps:$4 sm:$0xff]   ;;  %v7633_v42 = vld [vmem:[%s11187_s1 + $0x52c] ss:$16 sps:$4 sm:$0xff]  }
  0x68   :  { %4965 = vmatprep.subr.bf16.mxu0 %v7537_v43  ;;  %5524 = vmatprep.subr.bf16.mxu1 %v7540_v44  ;;  %v7628_v43 = vld [vmem:[%s11187_s1 + $0x520] ss:$16 sps:$4 sm:$0xff]   ;;  %v7631_v44 = vld [vmem:[%s11187_s1 + $0x528] ss:$16 sps:$4 sm:$0xff]  }
  0x6b   :  { %4966 = vmatpush1.bf16.msra.mxu0 %v7535_v45  ;;  %5525 = vmatpush1.bf16.msra.mxu1 %v7538_v46  ;;  %v7636_v45 = vld [vmem:[%s11187_s1 + $0x544] ss:$16 sps:$4 sm:$0xff]   ;;  %v7639_v46 = vld [vmem:[%s11187_s1 + $0x54c] ss:$16 sps:$4 sm:$0xff]  }
  0x6c   :  { %4967 = vmatprep.subr.bf16.mxu0 %v7543_v47  ;;  %5526 = vmatprep.subr.bf16.mxu1 %v7546_v48  ;;  %v7634_v47 = vld [vmem:[%s11187_s1 + $0x540] ss:$16 sps:$4 sm:$0xff]   ;;  %v7637_v48 = vld [vmem:[%s11187_s1 + $0x548] ss:$16 sps:$4 sm:$0xff]  }
  0x6f   :  { %4968 = vmatpush1.bf16.msra.mxu0 %v7541_v49  ;;  %5527 = vmatpush1.bf16.msra.mxu1 %v7544_v50  ;;  %v7642_v49 = vld [vmem:[%s11187_s1 + $0x564] ss:$16 sps:$4 sm:$0xff]   ;;  %v7645_v50 = vld [vmem:[%s11187_s1 + $0x56c] ss:$16 sps:$4 sm:$0xff]  }
  0x70   :  { %4969 = vmatprep.subr.bf16.mxu0 %v7549_v51  ;;  %5528 = vmatprep.subr.bf16.mxu1 %v7552_v52  ;;  %v7640_v51 = vld [vmem:[%s11187_s1 + $0x560] ss:$16 sps:$4 sm:$0xff]   ;;  %v7643_v52 = vld [vmem:[%s11187_s1 + $0x568] ss:$16 sps:$4 sm:$0xff]  }
  0x73   :  { %4970 = vmatpush1.bf16.msra.mxu0 %v7547_v53  ;;  %5529 = vmatpush1.bf16.msra.mxu1 %v7550_v54  ;;  %v7648_v53 = vld [vmem:[%s11187_s1 + $0x584] ss:$16 sps:$4 sm:$0xff]   ;;  %v7651_v54 = vld [vmem:[%s11187_s1 + $0x58c] ss:$16 sps:$4 sm:$0xff]  }
  0x74   :  { %4971 = vmatprep.subr.bf16.mxu0 %v7555_v55  ;;  %5530 = vmatprep.subr.bf16.mxu1 %v7558_v56  ;;  %v7646_v55 = vld [vmem:[%s11187_s1 + $0x580] ss:$16 sps:$4 sm:$0xff]   ;;  %v7649_v56 = vld [vmem:[%s11187_s1 + $0x588] ss:$16 sps:$4 sm:$0xff]  }
  0x77   :  { %4972 = vmatpush1.bf16.msra.mxu0 %v7553_v57  ;;  %5531 = vmatpush1.bf16.msra.mxu1 %v7556_v58  ;;  %v7654_v57 = vld [vmem:[%s11187_s1 + $0x5a4] ss:$16 sps:$4 sm:$0xff]   ;;  %v7657_v58 = vld [vmem:[%s11187_s1 + $0x5ac] ss:$16 sps:$4 sm:$0xff]  }
  0x78   :  { %4973 = vmatprep.subr.bf16.mxu0 %v7561_v59  ;;  %5532 = vmatprep.subr.bf16.mxu1 %v7564_v60  ;;  %v7652_v59 = vld [vmem:[%s11187_s1 + $0x5a0] ss:$16 sps:$4 sm:$0xff]   ;;  %v7655_v60 = vld [vmem:[%s11187_s1 + $0x5a8] ss:$16 sps:$4 sm:$0xff]  }
  0x7b   :  { %4974 = vmatpush1.bf16.msra.mxu0 %v7559_v61  ;;  %5533 = vmatpush1.bf16.msra.mxu1 %v7562_v62  ;;  %v7660_v61 = vld [vmem:[%s11187_s1 + $0x5c4] ss:$16 sps:$4 sm:$0xff]   ;;  %v7663_v62 = vld [vmem:[%s11187_s1 + $0x5cc] ss:$16 sps:$4 sm:$0xff]  }
  0x7c   :  { %4975 = vmatprep.subr.bf16.mxu0 %v7567_v63  ;;  %5534 = vmatprep.subr.bf16.mxu1 %v7570_v0  ;;  %v7658_v63 = vld [vmem:[%s11187_s1 + $0x5c0] ss:$16 sps:$4 sm:$0xff]   ;;  %v7661_v0 = vld [vmem:[%s11187_s1 + $0x5c8] ss:$16 sps:$4 sm:$0xff]  }
  0x7f   :  { %4976 = vmatpush1.bf16.msra.mxu0 %v7565_v1  ;;  %5535 = vmatpush1.bf16.msra.mxu1 %v7568_v2  ;;  %v7666_v1 = vld [vmem:[%s11187_s1 + $0x5e4] ss:$16 sps:$4 sm:$0xff]   ;;  %v7669_v2 = vld [vmem:[%s11187_s1 + $0x5ec] ss:$16 sps:$4 sm:$0xff]  }
  0x80   :  { %4988 = vmatprep.subr.bf16.mxu0 %v7576_v3  ;;  %5547 = vmatprep.subr.bf16.mxu1 %v7579_v4  ;;  %v7664_v3 = vld [vmem:[%s11187_s1 + $0x5e0] ss:$16 sps:$4 sm:$0xff]   ;;  %v7667_v4 = vld [vmem:[%s11187_s1 + $0x5e8] ss:$16 sps:$4 sm:$0xff]  }
  0x82   :  { %4978 = vmatmul.mubr.bf16.vlgmr.msra.gmra.mrb[0].mxu0 %v7571_v5  ;;  %5537 = vmatmul.mubr.bf16.vlgmr.msra.gmra.mrb[0].mxu1 %v7571_v5  ;;  %v7675_v5 = vld [vmem:[%s11187_s1 + $0x604] ss:$16 sps:$4 sm:$0xff]  }
  0x83   :  { %4989 = vmatpush1.bf16.msra.mxu0 %v7574_v6  ;;  %5548 = vmatpush1.bf16.msra.mxu1 %v7577_v7  ;;  %v7678_v6 = vld [vmem:[%s11187_s1 + $0x60c] ss:$16 sps:$4 sm:$0xff]   ;;  %v7670_v7 = vld [vmem:[%s11188_s0 + $0x10] ss:$100 sps:$4 sm:$0xff]  }
  0x84   :  { %4990 = vmatprep.subr.bf16.mxu0 %v7582_v8  ;;  %5549 = vmatprep.subr.bf16.mxu1 %v7585_v9  ;;  %v7673_v8 = vld [vmem:[%s11187_s1 + $0x600] ss:$16 sps:$4 sm:$0xff]   ;;  %v7676_v9 = vld [vmem:[%s11187_s1 + $0x608] ss:$16 sps:$4 sm:$0xff]  }
  0x85   :  { %5020 = vmatprep.mubr.bf16.mxu0 %v7672_v12  ;;  %5579 = vmatprep.mubr.bf16.mxu1 %v7672_v12  ;;  %v7771_v12 = vld [vmem:[%s11188_s0 + $0x1c] ss:$100 sps:$4 sm:$0xff]  }
  0x87   :  { %4991 = vmatpush1.bf16.msra.mxu0 %v7580_v10  ;;  %5550 = vmatpush1.bf16.msra.mxu1 %v7583_v11  ;;  %v7681_v10 = vld [vmem:[%s11187_s1 + $0x624] ss:$16 sps:$4 sm:$0xff]   ;;  %v7684_v11 = vld [vmem:[%s11187_s1 + $0x62c] ss:$16 sps:$4 sm:$0xff]  }
  0x88   :  { %4992 = vmatprep.subr.bf16.mxu0 %v7588_v13  ;;  %5551 = vmatprep.subr.bf16.mxu1 %v7591_v14  ;;  %v7679_v13 = vld [vmem:[%s11187_s1 + $0x620] ss:$16 sps:$4 sm:$0xff]   ;;  %v7682_v14 = vld [vmem:[%s11187_s1 + $0x628] ss:$16 sps:$4 sm:$0xff]  }
  0x8b   :  { %4993 = vmatpush1.bf16.msra.mxu0 %v7586_v15  ;;  %5552 = vmatpush1.bf16.msra.mxu1 %v7589_v16  ;;  %v7687_v15 = vld [vmem:[%s11187_s1 + $0x644] ss:$16 sps:$4 sm:$0xff]   ;;  %v7690_v16 = vld [vmem:[%s11187_s1 + $0x64c] ss:$16 sps:$4 sm:$0xff]  }
  0x8c   :  { %4994 = vmatprep.subr.bf16.mxu0 %v7594_v17  ;;  %5553 = vmatprep.subr.bf16.mxu1 %v7597_v18  ;;  %v7685_v17 = vld [vmem:[%s11187_s1 + $0x640] ss:$16 sps:$4 sm:$0xff]   ;;  %v7688_v18 = vld [vmem:[%s11187_s1 + $0x648] ss:$16 sps:$4 sm:$0xff]  }
  0x8f   :  { %4995 = vmatpush1.bf16.msra.mxu0 %v7592_v19  ;;  %5554 = vmatpush1.bf16.msra.mxu1 %v7595_v20  ;;  %v7693_v19 = vld [vmem:[%s11187_s1 + $0x664] ss:$16 sps:$4 sm:$0xff]   ;;  %v7696_v20 = vld [vmem:[%s11187_s1 + $0x66c] ss:$16 sps:$4 sm:$0xff]  }
  0x90   :  { %4996 = vmatprep.subr.bf16.mxu0 %v7600_v21  ;;  %5555 = vmatprep.subr.bf16.mxu1 %v7603_v22  ;;  %v7691_v21 = vld [vmem:[%s11187_s1 + $0x660] ss:$16 sps:$4 sm:$0xff]   ;;  %v7694_v22 = vld [vmem:[%s11187_s1 + $0x668] ss:$16 sps:$4 sm:$0xff]  }
  0x93   :  { %4997 = vmatpush1.bf16.msra.mxu0 %v7598_v23  ;;  %5556 = vmatpush1.bf16.msra.mxu1 %v7601_v24  ;;  %v7699_v23 = vld [vmem:[%s11187_s1 + $0x684] ss:$16 sps:$4 sm:$0xff]   ;;  %v7702_v24 = vld [vmem:[%s11187_s1 + $0x68c] ss:$16 sps:$4 sm:$0xff]  }
  0x94   :  { %4998 = vmatprep.subr.bf16.mxu0 %v7606_v25  ;;  %5557 = vmatprep.subr.bf16.mxu1 %v7609_v26  ;;  %v7697_v25 = vld [vmem:[%s11187_s1 + $0x680] ss:$16 sps:$4 sm:$0xff]   ;;  %v7700_v26 = vld [vmem:[%s11187_s1 + $0x688] ss:$16 sps:$4 sm:$0xff]  }
  0x97   :  { %4999 = vmatpush1.bf16.msra.mxu0 %v7604_v27  ;;  %5558 = vmatpush1.bf16.msra.mxu1 %v7607_v28  ;;  %v7705_v27 = vld [vmem:[%s11187_s1 + $0x6a4] ss:$16 sps:$4 sm:$0xff]   ;;  %v7708_v28 = vld [vmem:[%s11187_s1 + $0x6ac] ss:$16 sps:$4 sm:$0xff]  }
  0x98   :  { %5000 = vmatprep.subr.bf16.mxu0 %v7612_v29  ;;  %5559 = vmatprep.subr.bf16.mxu1 %v7615_v30  ;;  %v7703_v29 = vld [vmem:[%s11187_s1 + $0x6a0] ss:$16 sps:$4 sm:$0xff]   ;;  %v7706_v30 = vld [vmem:[%s11187_s1 + $0x6a8] ss:$16 sps:$4 sm:$0xff]  }
  0x9b   :  { %5001 = vmatpush1.bf16.msra.mxu0 %v7610_v31  ;;  %5560 = vmatpush1.bf16.msra.mxu1 %v7613_v32  ;;  %v7711_v31 = vld [vmem:[%s11187_s1 + $0x6c4] ss:$16 sps:$4 sm:$0xff]   ;;  %v7714_v32 = vld [vmem:[%s11187_s1 + $0x6cc] ss:$16 sps:$4 sm:$0xff]  }
  0x9c   :  { %5002 = vmatprep.subr.bf16.mxu0 %v7618_v33  ;;  %5561 = vmatprep.subr.bf16.mxu1 %v7621_v34  ;;  %v7709_v33 = vld [vmem:[%s11187_s1 + $0x6c0] ss:$16 sps:$4 sm:$0xff]   ;;  %v7712_v34 = vld [vmem:[%s11187_s1 + $0x6c8] ss:$16 sps:$4 sm:$0xff]  }
  0x9f   :  { %5003 = vmatpush1.bf16.msra.mxu0 %v7616_v35  ;;  %5562 = vmatpush1.bf16.msra.mxu1 %v7619_v36  ;;  %v7717_v35 = vld [vmem:[%s11187_s1 + $0x6e4] ss:$16 sps:$4 sm:$0xff]   ;;  %v7720_v36 = vld [vmem:[%s11187_s1 + $0x6ec] ss:$16 sps:$4 sm:$0xff]  }
  0xa0   :  { %5004 = vmatprep.subr.bf16.mxu0 %v7624_v37  ;;  %5563 = vmatprep.subr.bf16.mxu1 %v7627_v38  ;;  %v7715_v37 = vld [vmem:[%s11187_s1 + $0x6e0] ss:$16 sps:$4 sm:$0xff]   ;;  %v7718_v38 = vld [vmem:[%s11187_s1 + $0x6e8] ss:$16 sps:$4 sm:$0xff]  }
  0xa3   :  { %5005 = vmatpush1.bf16.msra.mxu0 %v7622_v39  ;;  %5564 = vmatpush1.bf16.msra.mxu1 %v7625_v40  ;;  %v7723_v39 = vld [vmem:[%s11187_s1 + $0x704] ss:$16 sps:$4 sm:$0xff]   ;;  %v7726_v40 = vld [vmem:[%s11187_s1 + $0x70c] ss:$16 sps:$4 sm:$0xff]  }
  0xa4   :  { %5006 = vmatprep.subr.bf16.mxu0 %v7630_v41  ;;  %5565 = vmatprep.subr.bf16.mxu1 %v7633_v42  ;;  %v7721_v41 = vld [vmem:[%s11187_s1 + $0x700] ss:$16 sps:$4 sm:$0xff]   ;;  %v7724_v42 = vld [vmem:[%s11187_s1 + $0x708] ss:$16 sps:$4 sm:$0xff]  }
  0xa7   :  { %5007 = vmatpush1.bf16.msra.mxu0 %v7628_v43  ;;  %5566 = vmatpush1.bf16.msra.mxu1 %v7631_v44  ;;  %v7729_v43 = vld [vmem:[%s11187_s1 + $0x724] ss:$16 sps:$4 sm:$0xff]   ;;  %v7732_v44 = vld [vmem:[%s11187_s1 + $0x72c] ss:$16 sps:$4 sm:$0xff]  }
  0xa8   :  { %5008 = vmatprep.subr.bf16.mxu0 %v7636_v45  ;;  %5567 = vmatprep.subr.bf16.mxu1 %v7639_v46  ;;  %v7727_v45 = vld [vmem:[%s11187_s1 + $0x720] ss:$16 sps:$4 sm:$0xff]   ;;  %v7730_v46 = vld [vmem:[%s11187_s1 + $0x728] ss:$16 sps:$4 sm:$0xff]  }
  0xab   :  { %5009 = vmatpush1.bf16.msra.mxu0 %v7634_v47  ;;  %5568 = vmatpush1.bf16.msra.mxu1 %v7637_v48  ;;  %v7735_v47 = vld [vmem:[%s11187_s1 + $0x744] ss:$16 sps:$4 sm:$0xff]   ;;  %v7738_v48 = vld [vmem:[%s11187_s1 + $0x74c] ss:$16 sps:$4 sm:$0xff]  }
  0xac   :  { %5010 = vmatprep.subr.bf16.mxu0 %v7642_v49  ;;  %5569 = vmatprep.subr.bf16.mxu1 %v7645_v50  ;;  %v7733_v49 = vld [vmem:[%s11187_s1 + $0x740] ss:$16 sps:$4 sm:$0xff]   ;;  %v7736_v50 = vld [vmem:[%s11187_s1 + $0x748] ss:$16 sps:$4 sm:$0xff]  }
  0xaf   :  { %5011 = vmatpush1.bf16.msra.mxu0 %v7640_v51  ;;  %5570 = vmatpush1.bf16.msra.mxu1 %v7643_v52  ;;  %v7741_v51 = vld [vmem:[%s11187_s1 + $0x764] ss:$16 sps:$4 sm:$0xff]   ;;  %v7744_v52 = vld [vmem:[%s11187_s1 + $0x76c] ss:$16 sps:$4 sm:$0xff]  }
  0xb0   :  { %5012 = vmatprep.subr.bf16.mxu0 %v7648_v53  ;;  %5571 = vmatprep.subr.bf16.mxu1 %v7651_v54  ;;  %v7739_v53 = vld [vmem:[%s11187_s1 + $0x760] ss:$16 sps:$4 sm:$0xff]   ;;  %v7742_v54 = vld [vmem:[%s11187_s1 + $0x768] ss:$16 sps:$4 sm:$0xff]  }
  0xb3   :  { %5013 = vmatpush1.bf16.msra.mxu0 %v7646_v55  ;;  %5572 = vmatpush1.bf16.msra.mxu1 %v7649_v56  ;;  %v7747_v55 = vld [vmem:[%s11187_s1 + $0x784] ss:$16 sps:$4 sm:$0xff]   ;;  %v7750_v56 = vld [vmem:[%s11187_s1 + $0x78c] ss:$16 sps:$4 sm:$0xff]  }
  0xb4   :  { %5014 = vmatprep.subr.bf16.mxu0 %v7654_v57  ;;  %5573 = vmatprep.subr.bf16.mxu1 %v7657_v58  ;;  %v7745_v57 = vld [vmem:[%s11187_s1 + $0x780] ss:$16 sps:$4 sm:$0xff]   ;;  %v7748_v58 = vld [vmem:[%s11187_s1 + $0x788] ss:$16 sps:$4 sm:$0xff]  }
  0xb7   :  { %5015 = vmatpush1.bf16.msra.mxu0 %v7652_v59  ;;  %5574 = vmatpush1.bf16.msra.mxu1 %v7655_v60  ;;  %v7753_v59 = vld [vmem:[%s11187_s1 + $0x7a4] ss:$16 sps:$4 sm:$0xff]   ;;  %v7756_v60 = vld [vmem:[%s11187_s1 + $0x7ac] ss:$16 sps:$4 sm:$0xff]  }
  0xb8   :  { %5016 = vmatprep.subr.bf16.mxu0 %v7660_v61  ;;  %5575 = vmatprep.subr.bf16.mxu1 %v7663_v62  ;;  %v7751_v61 = vld [vmem:[%s11187_s1 + $0x7a0] ss:$16 sps:$4 sm:$0xff]   ;;  %v7754_v62 = vld [vmem:[%s11187_s1 + $0x7a8] ss:$16 sps:$4 sm:$0xff]  }
  0xbb   :  { %5017 = vmatpush1.bf16.msra.mxu0 %v7658_v63  ;;  %5576 = vmatpush1.bf16.msra.mxu1 %v7661_v0  ;;  %v7759_v63 = vld [vmem:[%s11187_s1 + $0x7c4] ss:$16 sps:$4 sm:$0xff]   ;;  %v7762_v0 = vld [vmem:[%s11187_s1 + $0x7cc] ss:$16 sps:$4 sm:$0xff]  }
  0xbc   :  { %5018 = vmatprep.subr.bf16.mxu0 %v7666_v1  ;;  %5577 = vmatprep.subr.bf16.mxu1 %v7669_v2  ;;  %v7757_v1 = vld [vmem:[%s11187_s1 + $0x7c0] ss:$16 sps:$4 sm:$0xff]   ;;  %v7760_v2 = vld [vmem:[%s11187_s1 + $0x7c8] ss:$16 sps:$4 sm:$0xff]  }
  0xbf   :  { %5019 = vmatpush1.bf16.msra.mxu0 %v7664_v3  ;;  %5578 = vmatpush1.bf16.msra.mxu1 %v7667_v4  ;;  %v7765_v3 = vld [vmem:[%s11187_s1 + $0x7e4] ss:$16 sps:$4 sm:$0xff]   ;;  %v7768_v4 = vld [vmem:[%s11187_s1 + $0x7ec] ss:$16 sps:$4 sm:$0xff]  }
  0xc0   :  { %5031 = vmatprep.subr.bf16.mxu0 %v7675_v5  ;;  %5590 = vmatprep.subr.bf16.mxu1 %v7678_v6  ;;  %v7763_v5 = vld [vmem:[%s11187_s1 + $0x7e0] ss:$16 sps:$4 sm:$0xff]   ;;  %v7766_v6 = vld [vmem:[%s11187_s1 + $0x7e8] ss:$16 sps:$4 sm:$0xff]  }
  0xc2   :  { %5021 = vmatmul.mubr.bf16.vlgmr.msra.gmra.mrb[0].mxu0 %v7670_v7  ;;  %5580 = vmatmul.mubr.bf16.vlgmr.msra.gmra.mrb[0].mxu1 %v7670_v7  ;;  %v7774_v7 = vld [vmem:[%s11187_s1 + $0x804] ss:$16 sps:$4 sm:$0xff]  }
  0xc3   :  { %5032 = vmatpush1.bf16.msra.mxu0 %v7673_v8  ;;  %5591 = vmatpush1.bf16.msra.mxu1 %v7676_v9  ;;  %v7777_v8 = vld [vmem:[%s11187_s1 + $0x80c] ss:$16 sps:$4 sm:$0xff]  }
  0xc4   :  { %5033 = vmatprep.subr.bf16.mxu0 %v7681_v10  ;;  %5592 = vmatprep.subr.bf16.mxu1 %v7684_v11  ;;  %v7769_v9 = vld [vmem:[%s11188_s0 + $0x18] ss:$100 sps:$4 sm:$0xff]   ;;  %v7772_v10 = vld [vmem:[%s11187_s1 + $0x800] ss:$16 sps:$4 sm:$0xff]  }
  0xc5   :  { %5063 = vmatprep.mubr.bf16.mxu0 %v7771_v12  ;;  %5622 = vmatprep.mubr.bf16.mxu1 %v7771_v12  ;;  %v7775_v11 = vld [vmem:[%s11187_s1 + $0x808] ss:$16 sps:$4 sm:$0xff]   ;;  %v7780_v12 = vld [vmem:[%s11187_s1 + $0x824] ss:$16 sps:$4 sm:$0xff]  }
  0xc7   :  { %5034 = vmatpush1.bf16.msra.mxu0 %v7679_v13  ;;  %5593 = vmatpush1.bf16.msra.mxu1 %v7682_v14  ;;  %v7783_v13 = vld [vmem:[%s11187_s1 + $0x82c] ss:$16 sps:$4 sm:$0xff]   ;;  %v7870_v14 = vld [vmem:[%s11188_s0 + $0x24] ss:$100 sps:$4 sm:$0xff]  }
  0xc8   :  { %5035 = vmatprep.subr.bf16.mxu0 %v7687_v15  ;;  %5594 = vmatprep.subr.bf16.mxu1 %v7690_v16  ;;  %v7778_v15 = vld [vmem:[%s11187_s1 + $0x820] ss:$16 sps:$4 sm:$0xff]   ;;  %v7781_v16 = vld [vmem:[%s11187_s1 + $0x828] ss:$16 sps:$4 sm:$0xff]  }
  0xcb   :  { %5036 = vmatpush1.bf16.msra.mxu0 %v7685_v17  ;;  %5595 = vmatpush1.bf16.msra.mxu1 %v7688_v18  ;;  %v7786_v17 = vld [vmem:[%s11187_s1 + $0x844] ss:$16 sps:$4 sm:$0xff]   ;;  %v7789_v18 = vld [vmem:[%s11187_s1 + $0x84c] ss:$16 sps:$4 sm:$0xff]  }
  0xcc   :  { %5037 = vmatprep.subr.bf16.mxu0 %v7693_v19  ;;  %5596 = vmatprep.subr.bf16.mxu1 %v7696_v20  ;;  %v7784_v19 = vld [vmem:[%s11187_s1 + $0x840] ss:$16 sps:$4 sm:$0xff]   ;;  %v7787_v20 = vld [vmem:[%s11187_s1 + $0x848] ss:$16 sps:$4 sm:$0xff]  }
  0xcf   :  { %5038 = vmatpush1.bf16.msra.mxu0 %v7691_v21  ;;  %5597 = vmatpush1.bf16.msra.mxu1 %v7694_v22  ;;  %v7792_v21 = vld [vmem:[%s11187_s1 + $0x864] ss:$16 sps:$4 sm:$0xff]   ;;  %v7795_v22 = vld [vmem:[%s11187_s1 + $0x86c] ss:$16 sps:$4 sm:$0xff]  }
  0xd0   :  { %5039 = vmatprep.subr.bf16.mxu0 %v7699_v23  ;;  %5598 = vmatprep.subr.bf16.mxu1 %v7702_v24  ;;  %v7790_v23 = vld [vmem:[%s11187_s1 + $0x860] ss:$16 sps:$4 sm:$0xff]   ;;  %v7793_v24 = vld [vmem:[%s11187_s1 + $0x868] ss:$16 sps:$4 sm:$0xff]  }
  0xd3   :  { %5040 = vmatpush1.bf16.msra.mxu0 %v7697_v25  ;;  %5599 = vmatpush1.bf16.msra.mxu1 %v7700_v26  ;;  %v7798_v25 = vld [vmem:[%s11187_s1 + $0x884] ss:$16 sps:$4 sm:$0xff]   ;;  %v7801_v26 = vld [vmem:[%s11187_s1 + $0x88c] ss:$16 sps:$4 sm:$0xff]  }
  0xd4   :  { %5041 = vmatprep.subr.bf16.mxu0 %v7705_v27  ;;  %5600 = vmatprep.subr.bf16.mxu1 %v7708_v28  ;;  %v7796_v27 = vld [vmem:[%s11187_s1 + $0x880] ss:$16 sps:$4 sm:$0xff]   ;;  %v7799_v28 = vld [vmem:[%s11187_s1 + $0x888] ss:$16 sps:$4 sm:$0xff]  }
  0xd7   :  { %5042 = vmatpush1.bf16.msra.mxu0 %v7703_v29  ;;  %5601 = vmatpush1.bf16.msra.mxu1 %v7706_v30  ;;  %v7804_v29 = vld [vmem:[%s11187_s1 + $0x8a4] ss:$16 sps:$4 sm:$0xff]   ;;  %v7807_v30 = vld [vmem:[%s11187_s1 + $0x8ac] ss:$16 sps:$4 sm:$0xff]  }
  0xd8   :  { %5043 = vmatprep.subr.bf16.mxu0 %v7711_v31  ;;  %5602 = vmatprep.subr.bf16.mxu1 %v7714_v32  ;;  %v7802_v31 = vld [vmem:[%s11187_s1 + $0x8a0] ss:$16 sps:$4 sm:$0xff]   ;;  %v7805_v32 = vld [vmem:[%s11187_s1 + $0x8a8] ss:$16 sps:$4 sm:$0xff]  }
  0xdb   :  { %5044 = vmatpush1.bf16.msra.mxu0 %v7709_v33  ;;  %5603 = vmatpush1.bf16.msra.mxu1 %v7712_v34  ;;  %v7810_v33 = vld [vmem:[%s11187_s1 + $0x8c4] ss:$16 sps:$4 sm:$0xff]   ;;  %v7813_v34 = vld [vmem:[%s11187_s1 + $0x8cc] ss:$16 sps:$4 sm:$0xff]  }
  0xdc   :  { %5045 = vmatprep.subr.bf16.mxu0 %v7717_v35  ;;  %5604 = vmatprep.subr.bf16.mxu1 %v7720_v36  ;;  %v7808_v35 = vld [vmem:[%s11187_s1 + $0x8c0] ss:$16 sps:$4 sm:$0xff]   ;;  %v7811_v36 = vld [vmem:[%s11187_s1 + $0x8c8] ss:$16 sps:$4 sm:$0xff]  }
  0xdf   :  { %5046 = vmatpush1.bf16.msra.mxu0 %v7715_v37  ;;  %5605 = vmatpush1.bf16.msra.mxu1 %v7718_v38  ;;  %v7816_v37 = vld [vmem:[%s11187_s1 + $0x8e4] ss:$16 sps:$4 sm:$0xff]   ;;  %v7819_v38 = vld [vmem:[%s11187_s1 + $0x8ec] ss:$16 sps:$4 sm:$0xff]  }
  0xe0   :  { %5047 = vmatprep.subr.bf16.mxu0 %v7723_v39  ;;  %5606 = vmatprep.subr.bf16.mxu1 %v7726_v40  ;;  %v7814_v39 = vld [vmem:[%s11187_s1 + $0x8e0] ss:$16 sps:$4 sm:$0xff]   ;;  %v7817_v40 = vld [vmem:[%s11187_s1 + $0x8e8] ss:$16 sps:$4 sm:$0xff]  }
  0xe3   :  { %5048 = vmatpush1.bf16.msra.mxu0 %v7721_v41  ;;  %5607 = vmatpush1.bf16.msra.mxu1 %v7724_v42  ;;  %v7822_v41 = vld [vmem:[%s11187_s1 + $0x904] ss:$16 sps:$4 sm:$0xff]   ;;  %v7825_v42 = vld [vmem:[%s11187_s1 + $0x90c] ss:$16 sps:$4 sm:$0xff]  }
  0xe4   :  { %5049 = vmatprep.subr.bf16.mxu0 %v7729_v43  ;;  %5608 = vmatprep.subr.bf16.mxu1 %v7732_v44  ;;  %v7820_v43 = vld [vmem:[%s11187_s1 + $0x900] ss:$16 sps:$4 sm:$0xff]   ;;  %v7823_v44 = vld [vmem:[%s11187_s1 + $0x908] ss:$16 sps:$4 sm:$0xff]  }
  0xe7   :  { %5050 = vmatpush1.bf16.msra.mxu0 %v7727_v45  ;;  %5609 = vmatpush1.bf16.msra.mxu1 %v7730_v46  ;;  %v7828_v45 = vld [vmem:[%s11187_s1 + $0x924] ss:$16 sps:$4 sm:$0xff]   ;;  %v7831_v46 = vld [vmem:[%s11187_s1 + $0x92c] ss:$16 sps:$4 sm:$0xff]  }
  0xe8   :  { %5051 = vmatprep.subr.bf16.mxu0 %v7735_v47  ;;  %5610 = vmatprep.subr.bf16.mxu1 %v7738_v48  ;;  %v7826_v47 = vld [vmem:[%s11187_s1 + $0x920] ss:$16 sps:$4 sm:$0xff]   ;;  %v7829_v48 = vld [vmem:[%s11187_s1 + $0x928] ss:$16 sps:$4 sm:$0xff]  }
  0xeb   :  { %5052 = vmatpush1.bf16.msra.mxu0 %v7733_v49  ;;  %5611 = vmatpush1.bf16.msra.mxu1 %v7736_v50  ;;  %v7834_v49 = vld [vmem:[%s11187_s1 + $0x944] ss:$16 sps:$4 sm:$0xff]   ;;  %v7837_v50 = vld [vmem:[%s11187_s1 + $0x94c] ss:$16 sps:$4 sm:$0xff]  }
  0xec   :  { %5053 = vmatprep.subr.bf16.mxu0 %v7741_v51  ;;  %5612 = vmatprep.subr.bf16.mxu1 %v7744_v52  ;;  %v7832_v51 = vld [vmem:[%s11187_s1 + $0x940] ss:$16 sps:$4 sm:$0xff]   ;;  %v7835_v52 = vld [vmem:[%s11187_s1 + $0x948] ss:$16 sps:$4 sm:$0xff]  }
  0xef   :  { %5054 = vmatpush1.bf16.msra.mxu0 %v7739_v53  ;;  %5613 = vmatpush1.bf16.msra.mxu1 %v7742_v54  ;;  %v7840_v53 = vld [vmem:[%s11187_s1 + $0x964] ss:$16 sps:$4 sm:$0xff]   ;;  %v7843_v54 = vld [vmem:[%s11187_s1 + $0x96c] ss:$16 sps:$4 sm:$0xff]  }
  0xf0   :  { %5055 = vmatprep.subr.bf16.mxu0 %v7747_v55  ;;  %5614 = vmatprep.subr.bf16.mxu1 %v7750_v56  ;;  %v7838_v55 = vld [vmem:[%s11187_s1 + $0x960] ss:$16 sps:$4 sm:$0xff]   ;;  %v7841_v56 = vld [vmem:[%s11187_s1 + $0x968] ss:$16 sps:$4 sm:$0xff]  }
  0xf3   :  { %5056 = vmatpush1.bf16.msra.mxu0 %v7745_v57  ;;  %5615 = vmatpush1.bf16.msra.mxu1 %v7748_v58  ;;  %v7846_v57 = vld [vmem:[%s11187_s1 + $0x984] ss:$16 sps:$4 sm:$0xff]   ;;  %v7849_v58 = vld [vmem:[%s11187_s1 + $0x98c] ss:$16 sps:$4 sm:$0xff]  }
  0xf4   :  { %5057 = vmatprep.subr.bf16.mxu0 %v7753_v59  ;;  %5616 = vmatprep.subr.bf16.mxu1 %v7756_v60  ;;  %v7844_v59 = vld [vmem:[%s11187_s1 + $0x980] ss:$16 sps:$4 sm:$0xff]   ;;  %v7847_v60 = vld [vmem:[%s11187_s1 + $0x988] ss:$16 sps:$4 sm:$0xff]  }
  0xf7   :  { %5058 = vmatpush1.bf16.msra.mxu0 %v7751_v61  ;;  %5617 = vmatpush1.bf16.msra.mxu1 %v7754_v62  ;;  %v7852_v61 = vld [vmem:[%s11187_s1 + $0x9a4] ss:$16 sps:$4 sm:$0xff]   ;;  %v7855_v62 = vld [vmem:[%s11187_s1 + $0x9ac] ss:$16 sps:$4 sm:$0xff]  }
  0xf8   :  { %5059 = vmatprep.subr.bf16.mxu0 %v7759_v63  ;;  %5618 = vmatprep.subr.bf16.mxu1 %v7762_v0  ;;  %v7850_v63 = vld [vmem:[%s11187_s1 + $0x9a0] ss:$16 sps:$4 sm:$0xff]   ;;  %v7853_v0 = vld [vmem:[%s11187_s1 + $0x9a8] ss:$16 sps:$4 sm:$0xff]  }
  0xfb   :  { %5060 = vmatpush1.bf16.msra.mxu0 %v7757_v1  ;;  %5619 = vmatpush1.bf16.msra.mxu1 %v7760_v2  ;;  %v7858_v1 = vld [vmem:[%s11187_s1 + $0x9c4] ss:$16 sps:$4 sm:$0xff]   ;;  %v7861_v2 = vld [vmem:[%s11187_s1 + $0x9cc] ss:$16 sps:$4 sm:$0xff]  }
  0xfc   :  { %5061 = vmatprep.subr.bf16.mxu0 %v7765_v3  ;;  %5620 = vmatprep.subr.bf16.mxu1 %v7768_v4  ;;  %v7856_v3 = vld [vmem:[%s11187_s1 + $0x9c0] ss:$16 sps:$4 sm:$0xff]   ;;  %v7859_v4 = vld [vmem:[%s11187_s1 + $0x9c8] ss:$16 sps:$4 sm:$0xff]  }
  0xff   :  { %5062 = vmatpush1.bf16.msra.mxu0 %v7763_v5  ;;  %5621 = vmatpush1.bf16.msra.mxu1 %v7766_v6  ;;  %v7864_v5 = vld [vmem:[%s11187_s1 + $0x9e4] ss:$16 sps:$4 sm:$0xff]   ;;  %v7867_v6 = vld [vmem:[%s11187_s1 + $0x9ec] ss:$16 sps:$4 sm:$0xff]  }
 0x100   :  { %5074 = vmatprep.subr.bf16.mxu0 %v7774_v7  ;;  %5633 = vmatprep.subr.bf16.mxu1 %v7777_v8  ;;  %v7862_v7 = vld [vmem:[%s11187_s1 + $0x9e0] ss:$16 sps:$4 sm:$0xff]   ;;  %v7865_v8 = vld [vmem:[%s11187_s1 + $0x9e8] ss:$16 sps:$4 sm:$0xff]  }
 0x102   :  { %5064 = vmatmul.mubr.bf16.vlgmr.msra.gmra.mrb[0].mxu0 %v7769_v9  ;;  %5623 = vmatmul.mubr.bf16.vlgmr.msra.gmra.mrb[0].mxu1 %v7769_v9  ;;  %v7868_v9 = vld [vmem:[%s11188_s0 + $0x20] ss:$100 sps:$4 sm:$0xff]  }
 0x103   :  { %5075 = vmatpush1.bf16.msra.mxu0 %v7772_v10  ;;  %5634 = vmatpush1.bf16.msra.mxu1 %v7775_v11  ;;  %v7873_v10 = vld [vmem:[%s11187_s1 + $0xa04] ss:$16 sps:$4 sm:$0xff]   ;;  %v7876_v11 = vld [vmem:[%s11187_s1 + $0xa0c] ss:$16 sps:$4 sm:$0xff]  }
 0x104   :  { %5076 = vmatprep.subr.bf16.mxu0 %v7780_v12  ;;  %5635 = vmatprep.subr.bf16.mxu1 %v7783_v13  ;;  %v7871_v12 = vld [vmem:[%s11187_s1 + $0xa00] ss:$16 sps:$4 sm:$0xff]   ;;  %v7874_v13 = vld [vmem:[%s11187_s1 + $0xa08] ss:$16 sps:$4 sm:$0xff]  }
 0x105   :  { %5106 = vmatprep.mubr.bf16.mxu0 %v7870_v14  ;;  %5665 = vmatprep.mubr.bf16.mxu1 %v7870_v14  ;;  %v7879_v14 = vld [vmem:[%s11187_s1 + $0xa24] ss:$16 sps:$4 sm:$0xff]  }
 0x107   :  { %5077 = vmatpush1.bf16.msra.mxu0 %v7778_v15  ;;  %5636 = vmatpush1.bf16.msra.mxu1 %v7781_v16  ;;  %v7882_v15 = vld [vmem:[%s11187_s1 + $0xa2c] ss:$16 sps:$4 sm:$0xff]  }
 0x108   :  { %5078 = vmatprep.subr.bf16.mxu0 %v7786_v17  ;;  %5637 = vmatprep.subr.bf16.mxu1 %v7789_v18  ;;  %v7969_v16 = vld [vmem:[%s11188_s0 + $0x2c] ss:$100 sps:$4 sm:$0xff]   ;;  %v7880_v18 = vld [vmem:[%s11187_s1 + $0xa28] ss:$16 sps:$4 sm:$0xff]  }
 0x109   :  { %v7877_v17 = vld [vmem:[%s11187_s1 + $0xa20] ss:$16 sps:$4 sm:$0xff]  }
 0x10b   :  { %5079 = vmatpush1.bf16.msra.mxu0 %v7784_v19  ;;  %5638 = vmatpush1.bf16.msra.mxu1 %v7787_v20  ;;  %v7885_v19 = vld [vmem:[%s11187_s1 + $0xa44] ss:$16 sps:$4 sm:$0xff]   ;;  %v7888_v20 = vld [vmem:[%s11187_s1 + $0xa4c] ss:$16 sps:$4 sm:$0xff]  }
 0x10c   :  { %5080 = vmatprep.subr.bf16.mxu0 %v7792_v21  ;;  %5639 = vmatprep.subr.bf16.mxu1 %v7795_v22  ;;  %v7883_v21 = vld [vmem:[%s11187_s1 + $0xa40] ss:$16 sps:$4 sm:$0xff]   ;;  %v7886_v22 = vld [vmem:[%s11187_s1 + $0xa48] ss:$16 sps:$4 sm:$0xff]  }
 0x10f   :  { %5081 = vmatpush1.bf16.msra.mxu0 %v7790_v23  ;;  %5640 = vmatpush1.bf16.msra.mxu1 %v7793_v24  ;;  %v7891_v23 = vld [vmem:[%s11187_s1 + $0xa64] ss:$16 sps:$4 sm:$0xff]   ;;  %v7894_v24 = vld [vmem:[%s11187_s1 + $0xa6c] ss:$16 sps:$4 sm:$0xff]  }
 0x110   :  { %5082 = vmatprep.subr.bf16.mxu0 %v7798_v25  ;;  %5641 = vmatprep.subr.bf16.mxu1 %v7801_v26  ;;  %v7889_v25 = vld [vmem:[%s11187_s1 + $0xa60] ss:$16 sps:$4 sm:$0xff]   ;;  %v7892_v26 = vld [vmem:[%s11187_s1 + $0xa68] ss:$16 sps:$4 sm:$0xff]  }
 0x113   :  { %5083 = vmatpush1.bf16.msra.mxu0 %v7796_v27  ;;  %5642 = vmatpush1.bf16.msra.mxu1 %v7799_v28  ;;  %v7897_v27 = vld [vmem:[%s11187_s1 + $0xa84] ss:$16 sps:$4 sm:$0xff]   ;;  %v7900_v28 = vld [vmem:[%s11187_s1 + $0xa8c] ss:$16 sps:$4 sm:$0xff]  }
 0x114   :  { %5084 = vmatprep.subr.bf16.mxu0 %v7804_v29  ;;  %5643 = vmatprep.subr.bf16.mxu1 %v7807_v30  ;;  %v7895_v29 = vld [vmem:[%s11187_s1 + $0xa80] ss:$16 sps:$4 sm:$0xff]   ;;  %v7898_v30 = vld [vmem:[%s11187_s1 + $0xa88] ss:$16 sps:$4 sm:$0xff]  }
 0x117   :  { %5085 = vmatpush1.bf16.msra.mxu0 %v7802_v31  ;;  %5644 = vmatpush1.bf16.msra.mxu1 %v7805_v32  ;;  %v7903_v31 = vld [vmem:[%s11187_s1 + $0xaa4] ss:$16 sps:$4 sm:$0xff]   ;;  %v7906_v32 = vld [vmem:[%s11187_s1 + $0xaac] ss:$16 sps:$4 sm:$0xff]  }
 0x118   :  { %5086 = vmatprep.subr.bf16.mxu0 %v7810_v33  ;;  %5645 = vmatprep.subr.bf16.mxu1 %v7813_v34  ;;  %v7901_v33 = vld [vmem:[%s11187_s1 + $0xaa0] ss:$16 sps:$4 sm:$0xff]   ;;  %v7904_v34 = vld [vmem:[%s11187_s1 + $0xaa8] ss:$16 sps:$4 sm:$0xff]  }
 0x11b   :  { %5087 = vmatpush1.bf16.msra.mxu0 %v7808_v35  ;;  %5646 = vmatpush1.bf16.msra.mxu1 %v7811_v36  ;;  %v7909_v35 = vld [vmem:[%s11187_s1 + $0xac4] ss:$16 sps:$4 sm:$0xff]   ;;  %v7912_v36 = vld [vmem:[%s11187_s1 + $0xacc] ss:$16 sps:$4 sm:$0xff]  }
 0x11c   :  { %5088 = vmatprep.subr.bf16.mxu0 %v7816_v37  ;;  %5647 = vmatprep.subr.bf16.mxu1 %v7819_v38  ;;  %v7907_v37 = vld [vmem:[%s11187_s1 + $0xac0] ss:$16 sps:$4 sm:$0xff]   ;;  %v7910_v38 = vld [vmem:[%s11187_s1 + $0xac8] ss:$16 sps:$4 sm:$0xff]  }
 0x11f   :  { %5089 = vmatpush1.bf16.msra.mxu0 %v7814_v39  ;;  %5648 = vmatpush1.bf16.msra.mxu1 %v7817_v40  ;;  %v7915_v39 = vld [vmem:[%s11187_s1 + $0xae4] ss:$16 sps:$4 sm:$0xff]   ;;  %v7918_v40 = vld [vmem:[%s11187_s1 + $0xaec] ss:$16 sps:$4 sm:$0xff]  }
 0x120   :  { %5090 = vmatprep.subr.bf16.mxu0 %v7822_v41  ;;  %5649 = vmatprep.subr.bf16.mxu1 %v7825_v42  ;;  %v7913_v41 = vld [vmem:[%s11187_s1 + $0xae0] ss:$16 sps:$4 sm:$0xff]   ;;  %v7916_v42 = vld [vmem:[%s11187_s1 + $0xae8] ss:$16 sps:$4 sm:$0xff]  }
 0x123   :  { %5091 = vmatpush1.bf16.msra.mxu0 %v7820_v43  ;;  %5650 = vmatpush1.bf16.msra.mxu1 %v7823_v44  ;;  %v7921_v43 = vld [vmem:[%s11187_s1 + $0xb04] ss:$16 sps:$4 sm:$0xff]   ;;  %v7924_v44 = vld [vmem:[%s11187_s1 + $0xb0c] ss:$16 sps:$4 sm:$0xff]  }
 0x124   :  { %5092 = vmatprep.subr.bf16.mxu0 %v7828_v45  ;;  %5651 = vmatprep.subr.bf16.mxu1 %v7831_v46  ;;  %v7919_v45 = vld [vmem:[%s11187_s1 + $0xb00] ss:$16 sps:$4 sm:$0xff]   ;;  %v7922_v46 = vld [vmem:[%s11187_s1 + $0xb08] ss:$16 sps:$4 sm:$0xff]  }
 0x127   :  { %5093 = vmatpush1.bf16.msra.mxu0 %v7826_v47  ;;  %5652 = vmatpush1.bf16.msra.mxu1 %v7829_v48  ;;  %v7927_v47 = vld [vmem:[%s11187_s1 + $0xb24] ss:$16 sps:$4 sm:$0xff]   ;;  %v7930_v48 = vld [vmem:[%s11187_s1 + $0xb2c] ss:$16 sps:$4 sm:$0xff]  }
 0x128   :  { %5094 = vmatprep.subr.bf16.mxu0 %v7834_v49  ;;  %5653 = vmatprep.subr.bf16.mxu1 %v7837_v50  ;;  %v7925_v49 = vld [vmem:[%s11187_s1 + $0xb20] ss:$16 sps:$4 sm:$0xff]   ;;  %v7928_v50 = vld [vmem:[%s11187_s1 + $0xb28] ss:$16 sps:$4 sm:$0xff]  }
 0x12b   :  { %5095 = vmatpush1.bf16.msra.mxu0 %v7832_v51  ;;  %5654 = vmatpush1.bf16.msra.mxu1 %v7835_v52  ;;  %v7933_v51 = vld [vmem:[%s11187_s1 + $0xb44] ss:$16 sps:$4 sm:$0xff]   ;;  %v7936_v52 = vld [vmem:[%s11187_s1 + $0xb4c] ss:$16 sps:$4 sm:$0xff]  }
 0x12c   :  { %5096 = vmatprep.subr.bf16.mxu0 %v7840_v53  ;;  %5655 = vmatprep.subr.bf16.mxu1 %v7843_v54  ;;  %v7931_v53 = vld [vmem:[%s11187_s1 + $0xb40] ss:$16 sps:$4 sm:$0xff]   ;;  %v7934_v54 = vld [vmem:[%s11187_s1 + $0xb48] ss:$16 sps:$4 sm:$0xff]  }
 0x12f   :  { %5097 = vmatpush1.bf16.msra.mxu0 %v7838_v55  ;;  %5656 = vmatpush1.bf16.msra.mxu1 %v7841_v56  ;;  %v7939_v55 = vld [vmem:[%s11187_s1 + $0xb64] ss:$16 sps:$4 sm:$0xff]   ;;  %v7942_v56 = vld [vmem:[%s11187_s1 + $0xb6c] ss:$16 sps:$4 sm:$0xff]  }
 0x130   :  { %5098 = vmatprep.subr.bf16.mxu0 %v7846_v57  ;;  %5657 = vmatprep.subr.bf16.mxu1 %v7849_v58  ;;  %v7937_v57 = vld [vmem:[%s11187_s1 + $0xb60] ss:$16 sps:$4 sm:$0xff]   ;;  %v7940_v58 = vld [vmem:[%s11187_s1 + $0xb68] ss:$16 sps:$4 sm:$0xff]  }
 0x133   :  { %5099 = vmatpush1.bf16.msra.mxu0 %v7844_v59  ;;  %5658 = vmatpush1.bf16.msra.mxu1 %v7847_v60  ;;  %v7945_v59 = vld [vmem:[%s11187_s1 + $0xb84] ss:$16 sps:$4 sm:$0xff]   ;;  %v7948_v60 = vld [vmem:[%s11187_s1 + $0xb8c] ss:$16 sps:$4 sm:$0xff]  }
 0x134   :  { %5100 = vmatprep.subr.bf16.mxu0 %v7852_v61  ;;  %5659 = vmatprep.subr.bf16.mxu1 %v7855_v62  ;;  %v7943_v61 = vld [vmem:[%s11187_s1 + $0xb80] ss:$16 sps:$4 sm:$0xff]   ;;  %v7946_v62 = vld [vmem:[%s11187_s1 + $0xb88] ss:$16 sps:$4 sm:$0xff]  }
 0x137   :  { %5101 = vmatpush1.bf16.msra.mxu0 %v7850_v63  ;;  %5660 = vmatpush1.bf16.msra.mxu1 %v7853_v0  ;;  %v7951_v63 = vld [vmem:[%s11187_s1 + $0xba4] ss:$16 sps:$4 sm:$0xff]   ;;  %v7954_v0 = vld [vmem:[%s11187_s1 + $0xbac] ss:$16 sps:$4 sm:$0xff]  }
 0x138   :  { %5102 = vmatprep.subr.bf16.mxu0 %v7858_v1  ;;  %5661 = vmatprep.subr.bf16.mxu1 %v7861_v2  ;;  %v7949_v1 = vld [vmem:[%s11187_s1 + $0xba0] ss:$16 sps:$4 sm:$0xff]   ;;  %v7952_v2 = vld [vmem:[%s11187_s1 + $0xba8] ss:$16 sps:$4 sm:$0xff]  }
 0x13b   :  { %5103 = vmatpush1.bf16.msra.mxu0 %v7856_v3  ;;  %5662 = vmatpush1.bf16.msra.mxu1 %v7859_v4  ;;  %v7957_v3 = vld [vmem:[%s11187_s1 + $0xbc4] ss:$16 sps:$4 sm:$0xff]   ;;  %v7960_v4 = vld [vmem:[%s11187_s1 + $0xbcc] ss:$16 sps:$4 sm:$0xff]  }
 0x13c   :  { %5104 = vmatprep.subr.bf16.mxu0 %v7864_v5  ;;  %5663 = vmatprep.subr.bf16.mxu1 %v7867_v6  ;;  %v7955_v5 = vld [vmem:[%s11187_s1 + $0xbc0] ss:$16 sps:$4 sm:$0xff]   ;;  %v7958_v6 = vld [vmem:[%s11187_s1 + $0xbc8] ss:$16 sps:$4 sm:$0xff]  }
 0x13f   :  { %5105 = vmatpush1.bf16.msra.mxu0 %v7862_v7  ;;  %5664 = vmatpush1.bf16.msra.mxu1 %v7865_v8  ;;  %v7963_v7 = vld [vmem:[%s11187_s1 + $0xbe4] ss:$16 sps:$4 sm:$0xff]   ;;  %v7966_v8 = vld [vmem:[%s11187_s1 + $0xbec] ss:$16 sps:$4 sm:$0xff]  }
 0x140   :  { %5117 = vmatprep.subr.bf16.mxu0 %v7873_v10  ;;  %5676 = vmatprep.subr.bf16.mxu1 %v7876_v11  ;;  %v7964_v10 = vld [vmem:[%s11187_s1 + $0xbe8] ss:$16 sps:$4 sm:$0xff]  }
 0x141   :  { %v7967_v11 = vld [vmem:[%s11188_s0 + $0x28] ss:$100 sps:$4 sm:$0xff]  }
 0x142   :  { %5107 = vmatmul.mubr.bf16.vlgmr.msra.gmra.mrb[0].mxu0 %v7868_v9  ;;  %5666 = vmatmul.mubr.bf16.vlgmr.msra.gmra.mrb[0].mxu1 %v7868_v9  ;;  %v7961_v9 = vld [vmem:[%s11187_s1 + $0xbe0] ss:$16 sps:$4 sm:$0xff]  }
 0x143   :  { %5118 = vmatpush1.bf16.msra.mxu0 %v7871_v12  ;;  %5677 = vmatpush1.bf16.msra.mxu1 %v7874_v13  ;;  %v7972_v12 = vld [vmem:[%s11187_s1 + $0xc04] ss:$16 sps:$4 sm:$0xff]   ;;  %v7975_v13 = vld [vmem:[%s11187_s1 + $0xc0c] ss:$16 sps:$4 sm:$0xff]  }
 0x144   :  { %5119 = vmatprep.subr.bf16.mxu0 %v7879_v14  ;;  %5678 = vmatprep.subr.bf16.mxu1 %v7882_v15  ;;  %v7970_v14 = vld [vmem:[%s11187_s1 + $0xc00] ss:$16 sps:$4 sm:$0xff]   ;;  %v7973_v15 = vld [vmem:[%s11187_s1 + $0xc08] ss:$16 sps:$4 sm:$0xff]  }
 0x145   :  { %5149 = vmatprep.mubr.bf16.mxu0 %v7969_v16  ;;  %5708 = vmatprep.mubr.bf16.mxu1 %v7969_v16  ;;  %v7978_v16 = vld [vmem:[%s11187_s1 + $0xc24] ss:$16 sps:$4 sm:$0xff]  }
 0x147   :  { %5120 = vmatpush1.bf16.msra.mxu0 %v7877_v17  ;;  %5679 = vmatpush1.bf16.msra.mxu1 %v7880_v18  ;;  %v7981_v17 = vld [vmem:[%s11187_s1 + $0xc2c] ss:$16 sps:$4 sm:$0xff]   ;;  %v8068_v18 = vld [vmem:[%s11188_s0 + $0x34] ss:$100 sps:$4 sm:$0xff]  }
 0x148   :  { %5121 = vmatprep.subr.bf16.mxu0 %v7885_v19  ;;  %5680 = vmatprep.subr.bf16.mxu1 %v7888_v20  ;;  %v7976_v19 = vld [vmem:[%s11187_s1 + $0xc20] ss:$16 sps:$4 sm:$0xff]   ;;  %v7979_v20 = vld [vmem:[%s11187_s1 + $0xc28] ss:$16 sps:$4 sm:$0xff]  }
 0x14b   :  { %5122 = vmatpush1.bf16.msra.mxu0 %v7883_v21  ;;  %5681 = vmatpush1.bf16.msra.mxu1 %v7886_v22  ;;  %v7984_v21 = vld [vmem:[%s11187_s1 + $0xc44] ss:$16 sps:$4 sm:$0xff]   ;;  %v7987_v22 = vld [vmem:[%s11187_s1 + $0xc4c] ss:$16 sps:$4 sm:$0xff]  }
 0x14c   :  { %5123 = vmatprep.subr.bf16.mxu0 %v7891_v23  ;;  %5682 = vmatprep.subr.bf16.mxu1 %v7894_v24  ;;  %v7982_v23 = vld [vmem:[%s11187_s1 + $0xc40] ss:$16 sps:$4 sm:$0xff]   ;;  %v7985_v24 = vld [vmem:[%s11187_s1 + $0xc48] ss:$16 sps:$4 sm:$0xff]  }
 0x14f   :  { %5124 = vmatpush1.bf16.msra.mxu0 %v7889_v25  ;;  %5683 = vmatpush1.bf16.msra.mxu1 %v7892_v26  ;;  %v7990_v25 = vld [vmem:[%s11187_s1 + $0xc64] ss:$16 sps:$4 sm:$0xff]   ;;  %v7993_v26 = vld [vmem:[%s11187_s1 + $0xc6c] ss:$16 sps:$4 sm:$0xff]  }
 0x150   :  { %5125 = vmatprep.subr.bf16.mxu0 %v7897_v27  ;;  %5684 = vmatprep.subr.bf16.mxu1 %v7900_v28  ;;  %v7988_v27 = vld [vmem:[%s11187_s1 + $0xc60] ss:$16 sps:$4 sm:$0xff]   ;;  %v7991_v28 = vld [vmem:[%s11187_s1 + $0xc68] ss:$16 sps:$4 sm:$0xff]  }
 0x153   :  { %5126 = vmatpush1.bf16.msra.mxu0 %v7895_v29  ;;  %5685 = vmatpush1.bf16.msra.mxu1 %v7898_v30  ;;  %v7996_v29 = vld [vmem:[%s11187_s1 + $0xc84] ss:$16 sps:$4 sm:$0xff]   ;;  %v7999_v30 = vld [vmem:[%s11187_s1 + $0xc8c] ss:$16 sps:$4 sm:$0xff]  }
 0x154   :  { %5127 = vmatprep.subr.bf16.mxu0 %v7903_v31  ;;  %5686 = vmatprep.subr.bf16.mxu1 %v7906_v32  ;;  %v7994_v31 = vld [vmem:[%s11187_s1 + $0xc80] ss:$16 sps:$4 sm:$0xff]   ;;  %v7997_v32 = vld [vmem:[%s11187_s1 + $0xc88] ss:$16 sps:$4 sm:$0xff]  }
 0x157   :  { %5128 = vmatpush1.bf16.msra.mxu0 %v7901_v33  ;;  %5687 = vmatpush1.bf16.msra.mxu1 %v7904_v34  ;;  %v8002_v33 = vld [vmem:[%s11187_s1 + $0xca4] ss:$16 sps:$4 sm:$0xff]   ;;  %v8005_v34 = vld [vmem:[%s11187_s1 + $0xcac] ss:$16 sps:$4 sm:$0xff]  }
 0x158   :  { %5129 = vmatprep.subr.bf16.mxu0 %v7909_v35  ;;  %5688 = vmatprep.subr.bf16.mxu1 %v7912_v36  ;;  %v8000_v35 = vld [vmem:[%s11187_s1 + $0xca0] ss:$16 sps:$4 sm:$0xff]   ;;  %v8003_v36 = vld [vmem:[%s11187_s1 + $0xca8] ss:$16 sps:$4 sm:$0xff]  }
 0x15b   :  { %5130 = vmatpush1.bf16.msra.mxu0 %v7907_v37  ;;  %5689 = vmatpush1.bf16.msra.mxu1 %v7910_v38  ;;  %v8008_v37 = vld [vmem:[%s11187_s1 + $0xcc4] ss:$16 sps:$4 sm:$0xff]   ;;  %v8011_v38 = vld [vmem:[%s11187_s1 + $0xccc] ss:$16 sps:$4 sm:$0xff]  }
 0x15c   :  { %5131 = vmatprep.subr.bf16.mxu0 %v7915_v39  ;;  %5690 = vmatprep.subr.bf16.mxu1 %v7918_v40  ;;  %v8006_v39 = vld [vmem:[%s11187_s1 + $0xcc0] ss:$16 sps:$4 sm:$0xff]   ;;  %v8009_v40 = vld [vmem:[%s11187_s1 + $0xcc8] ss:$16 sps:$4 sm:$0xff]  }
 0x15f   :  { %5132 = vmatpush1.bf16.msra.mxu0 %v7913_v41  ;;  %5691 = vmatpush1.bf16.msra.mxu1 %v7916_v42  ;;  %v8014_v41 = vld [vmem:[%s11187_s1 + $0xce4] ss:$16 sps:$4 sm:$0xff]   ;;  %v8017_v42 = vld [vmem:[%s11187_s1 + $0xcec] ss:$16 sps:$4 sm:$0xff]  }
 0x160   :  { %5133 = vmatprep.subr.bf16.mxu0 %v7921_v43  ;;  %5692 = vmatprep.subr.bf16.mxu1 %v7924_v44  ;;  %v8012_v43 = vld [vmem:[%s11187_s1 + $0xce0] ss:$16 sps:$4 sm:$0xff]   ;;  %v8015_v44 = vld [vmem:[%s11187_s1 + $0xce8] ss:$16 sps:$4 sm:$0xff]  }
 0x163   :  { %5134 = vmatpush1.bf16.msra.mxu0 %v7919_v45  ;;  %5693 = vmatpush1.bf16.msra.mxu1 %v7922_v46  ;;  %v8020_v45 = vld [vmem:[%s11187_s1 + $0xd04] ss:$16 sps:$4 sm:$0xff]   ;;  %v8023_v46 = vld [vmem:[%s11187_s1 + $0xd0c] ss:$16 sps:$4 sm:$0xff]  }
 0x164   :  { %5135 = vmatprep.subr.bf16.mxu0 %v7927_v47  ;;  %5694 = vmatprep.subr.bf16.mxu1 %v7930_v48  ;;  %v8018_v47 = vld [vmem:[%s11187_s1 + $0xd00] ss:$16 sps:$4 sm:$0xff]   ;;  %v8021_v48 = vld [vmem:[%s11187_s1 + $0xd08] ss:$16 sps:$4 sm:$0xff]  }
 0x167   :  { %5136 = vmatpush1.bf16.msra.mxu0 %v7925_v49  ;;  %5695 = vmatpush1.bf16.msra.mxu1 %v7928_v50  ;;  %v8026_v49 = vld [vmem:[%s11187_s1 + $0xd24] ss:$16 sps:$4 sm:$0xff]   ;;  %v8029_v50 = vld [vmem:[%s11187_s1 + $0xd2c] ss:$16 sps:$4 sm:$0xff]  }
 0x168   :  { %5137 = vmatprep.subr.bf16.mxu0 %v7933_v51  ;;  %5696 = vmatprep.subr.bf16.mxu1 %v7936_v52  ;;  %v8024_v51 = vld [vmem:[%s11187_s1 + $0xd20] ss:$16 sps:$4 sm:$0xff]   ;;  %v8027_v52 = vld [vmem:[%s11187_s1 + $0xd28] ss:$16 sps:$4 sm:$0xff]  }
 0x16b   :  { %5138 = vmatpush1.bf16.msra.mxu0 %v7931_v53  ;;  %5697 = vmatpush1.bf16.msra.mxu1 %v7934_v54  ;;  %v8032_v53 = vld [vmem:[%s11187_s1 + $0xd44] ss:$16 sps:$4 sm:$0xff]   ;;  %v8035_v54 = vld [vmem:[%s11187_s1 + $0xd4c] ss:$16 sps:$4 sm:$0xff]  }
 0x16c   :  { %5139 = vmatprep.subr.bf16.mxu0 %v7939_v55  ;;  %5698 = vmatprep.subr.bf16.mxu1 %v7942_v56  ;;  %v8030_v55 = vld [vmem:[%s11187_s1 + $0xd40] ss:$16 sps:$4 sm:$0xff]   ;;  %v8033_v56 = vld [vmem:[%s11187_s1 + $0xd48] ss:$16 sps:$4 sm:$0xff]  }
 0x16f   :  { %5140 = vmatpush1.bf16.msra.mxu0 %v7937_v57  ;;  %5699 = vmatpush1.bf16.msra.mxu1 %v7940_v58  ;;  %v8038_v57 = vld [vmem:[%s11187_s1 + $0xd64] ss:$16 sps:$4 sm:$0xff]   ;;  %v8041_v58 = vld [vmem:[%s11187_s1 + $0xd6c] ss:$16 sps:$4 sm:$0xff]  }
 0x170   :  { %5141 = vmatprep.subr.bf16.mxu0 %v7945_v59  ;;  %5700 = vmatprep.subr.bf16.mxu1 %v7948_v60  ;;  %v8036_v59 = vld [vmem:[%s11187_s1 + $0xd60] ss:$16 sps:$4 sm:$0xff]   ;;  %v8039_v60 = vld [vmem:[%s11187_s1 + $0xd68] ss:$16 sps:$4 sm:$0xff]  }
 0x173   :  { %5142 = vmatpush1.bf16.msra.mxu0 %v7943_v61  ;;  %5701 = vmatpush1.bf16.msra.mxu1 %v7946_v62  ;;  %v8044_v61 = vld [vmem:[%s11187_s1 + $0xd84] ss:$16 sps:$4 sm:$0xff]   ;;  %v8047_v62 = vld [vmem:[%s11187_s1 + $0xd8c] ss:$16 sps:$4 sm:$0xff]  }
 0x174   :  { %5143 = vmatprep.subr.bf16.mxu0 %v7951_v63  ;;  %5702 = vmatprep.subr.bf16.mxu1 %v7954_v0  ;;  %v8042_v63 = vld [vmem:[%s11187_s1 + $0xd80] ss:$16 sps:$4 sm:$0xff]   ;;  %v8045_v0 = vld [vmem:[%s11187_s1 + $0xd88] ss:$16 sps:$4 sm:$0xff]  }
 0x177   :  { %5144 = vmatpush1.bf16.msra.mxu0 %v7949_v1  ;;  %5703 = vmatpush1.bf16.msra.mxu1 %v7952_v2  ;;  %v8050_v1 = vld [vmem:[%s11187_s1 + $0xda4] ss:$16 sps:$4 sm:$0xff]   ;;  %v8053_v2 = vld [vmem:[%s11187_s1 + $0xdac] ss:$16 sps:$4 sm:$0xff]  }
 0x178   :  { %5145 = vmatprep.subr.bf16.mxu0 %v7957_v3  ;;  %5704 = vmatprep.subr.bf16.mxu1 %v7960_v4  ;;  %v8048_v3 = vld [vmem:[%s11187_s1 + $0xda0] ss:$16 sps:$4 sm:$0xff]   ;;  %v8051_v4 = vld [vmem:[%s11187_s1 + $0xda8] ss:$16 sps:$4 sm:$0xff]  }
 0x17b   :  { %5146 = vmatpush1.bf16.msra.mxu0 %v7955_v5  ;;  %5705 = vmatpush1.bf16.msra.mxu1 %v7958_v6  ;;  %v8056_v5 = vld [vmem:[%s11187_s1 + $0xdc4] ss:$16 sps:$4 sm:$0xff]   ;;  %v8059_v6 = vld [vmem:[%s11187_s1 + $0xdcc] ss:$16 sps:$4 sm:$0xff]  }
 0x17c   :  { %5147 = vmatprep.subr.bf16.mxu0 %v7963_v7  ;;  %5706 = vmatprep.subr.bf16.mxu1 %v7966_v8  ;;  %v8054_v7 = vld [vmem:[%s11187_s1 + $0xdc0] ss:$16 sps:$4 sm:$0xff]   ;;  %v8057_v8 = vld [vmem:[%s11187_s1 + $0xdc8] ss:$16 sps:$4 sm:$0xff]  }
 0x17f   :  { %5148 = vmatpush1.bf16.msra.mxu0 %v7961_v9  ;;  %5707 = vmatpush1.bf16.msra.mxu1 %v7964_v10  ;;  %v8062_v9 = vld [vmem:[%s11187_s1 + $0xde4] ss:$16 sps:$4 sm:$0xff]   ;;  %v8065_v10 = vld [vmem:[%s11187_s1 + $0xdec] ss:$16 sps:$4 sm:$0xff]  }
 0x180   :  { %5160 = vmatprep.subr.bf16.mxu0 %v7972_v12  ;;  %5719 = vmatprep.subr.bf16.mxu1 %v7975_v13  ;;  %v8063_v12 = vld [vmem:[%s11187_s1 + $0xde8] ss:$16 sps:$4 sm:$0xff]   ;;  %v8066_v13 = vld [vmem:[%s11188_s0 + $0x30] ss:$100 sps:$4 sm:$0xff]  }
 0x182   :  { %5150 = vmatmul.mubr.bf16.vlgmr.msra.gmra.mrb[0].mxu0 %v7967_v11  ;;  %5709 = vmatmul.mubr.bf16.vlgmr.msra.gmra.mrb[0].mxu1 %v7967_v11  ;;  %v8060_v11 = vld [vmem:[%s11187_s1 + $0xde0] ss:$16 sps:$4 sm:$0xff]  }
 0x183   :  { %5161 = vmatpush1.bf16.msra.mxu0 %v7970_v14  ;;  %5720 = vmatpush1.bf16.msra.mxu1 %v7973_v15  ;;  %v8071_v14 = vld [vmem:[%s11187_s1 + $0xe04] ss:$16 sps:$4 sm:$0xff]   ;;  %v8074_v15 = vld [vmem:[%s11187_s1 + $0xe0c] ss:$16 sps:$4 sm:$0xff]  }
 0x184   :  { %5162 = vmatprep.subr.bf16.mxu0 %v7978_v16  ;;  %5721 = vmatprep.subr.bf16.mxu1 %v7981_v17  ;;  %v8069_v16 = vld [vmem:[%s11187_s1 + $0xe00] ss:$16 sps:$4 sm:$0xff]   ;;  %v8072_v17 = vld [vmem:[%s11187_s1 + $0xe08] ss:$16 sps:$4 sm:$0xff]  }
 0x185   :  { %5192 = vmatprep.mubr.bf16.mxu0 %v8068_v18  ;;  %5751 = vmatprep.mubr.bf16.mxu1 %v8068_v18  ;;  %v8077_v18 = vld [vmem:[%s11187_s1 + $0xe24] ss:$16 sps:$4 sm:$0xff]  }
 0x187   :  { %5163 = vmatpush1.bf16.msra.mxu0 %v7976_v19  ;;  %5722 = vmatpush1.bf16.msra.mxu1 %v7979_v20  ;;  %v8080_v19 = vld [vmem:[%s11187_s1 + $0xe2c] ss:$16 sps:$4 sm:$0xff]  }
 0x188   :  { %5164 = vmatprep.subr.bf16.mxu0 %v7984_v21  ;;  %5723 = vmatprep.subr.bf16.mxu1 %v7987_v22  ;;  %v8167_v20 = vld [vmem:[%s11188_s0 + $0x3c] ss:$100 sps:$4 sm:$0xff]   ;;  %v8078_v22 = vld [vmem:[%s11187_s1 + $0xe28] ss:$16 sps:$4 sm:$0xff]  }
 0x189   :  { %v8075_v21 = vld [vmem:[%s11187_s1 + $0xe20] ss:$16 sps:$4 sm:$0xff]  }
 0x18b   :  { %5165 = vmatpush1.bf16.msra.mxu0 %v7982_v23  ;;  %5724 = vmatpush1.bf16.msra.mxu1 %v7985_v24  ;;  %v8083_v23 = vld [vmem:[%s11187_s1 + $0xe44] ss:$16 sps:$4 sm:$0xff]   ;;  %v8086_v24 = vld [vmem:[%s11187_s1 + $0xe4c] ss:$16 sps:$4 sm:$0xff]  }
 0x18c   :  { %5166 = vmatprep.subr.bf16.mxu0 %v7990_v25  ;;  %5725 = vmatprep.subr.bf16.mxu1 %v7993_v26  ;;  %v8081_v25 = vld [vmem:[%s11187_s1 + $0xe40] ss:$16 sps:$4 sm:$0xff]   ;;  %v8084_v26 = vld [vmem:[%s11187_s1 + $0xe48] ss:$16 sps:$4 sm:$0xff]  }
 0x18f   :  { %5167 = vmatpush1.bf16.msra.mxu0 %v7988_v27  ;;  %5726 = vmatpush1.bf16.msra.mxu1 %v7991_v28  ;;  %v8089_v27 = vld [vmem:[%s11187_s1 + $0xe64] ss:$16 sps:$4 sm:$0xff]   ;;  %v8092_v28 = vld [vmem:[%s11187_s1 + $0xe6c] ss:$16 sps:$4 sm:$0xff]  }
 0x190   :  { %5168 = vmatprep.subr.bf16.mxu0 %v7996_v29  ;;  %5727 = vmatprep.subr.bf16.mxu1 %v7999_v30  ;;  %v8087_v29 = vld [vmem:[%s11187_s1 + $0xe60] ss:$16 sps:$4 sm:$0xff]   ;;  %v8090_v30 = vld [vmem:[%s11187_s1 + $0xe68] ss:$16 sps:$4 sm:$0xff]  }
 0x193   :  { %5169 = vmatpush1.bf16.msra.mxu0 %v7994_v31  ;;  %5728 = vmatpush1.bf16.msra.mxu1 %v7997_v32  ;;  %v8095_v31 = vld [vmem:[%s11187_s1 + $0xe84] ss:$16 sps:$4 sm:$0xff]   ;;  %v8098_v32 = vld [vmem:[%s11187_s1 + $0xe8c] ss:$16 sps:$4 sm:$0xff]  }
 0x194   :  { %5170 = vmatprep.subr.bf16.mxu0 %v8002_v33  ;;  %5729 = vmatprep.subr.bf16.mxu1 %v8005_v34  ;;  %v8093_v33 = vld [vmem:[%s11187_s1 + $0xe80] ss:$16 sps:$4 sm:$0xff]   ;;  %v8096_v34 = vld [vmem:[%s11187_s1 + $0xe88] ss:$16 sps:$4 sm:$0xff]  }
 0x197   :  { %5171 = vmatpush1.bf16.msra.mxu0 %v8000_v35  ;;  %5730 = vmatpush1.bf16.msra.mxu1 %v8003_v36  ;;  %v8101_v35 = vld [vmem:[%s11187_s1 + $0xea4] ss:$16 sps:$4 sm:$0xff]   ;;  %v8104_v36 = vld [vmem:[%s11187_s1 + $0xeac] ss:$16 sps:$4 sm:$0xff]  }
 0x198   :  { %5172 = vmatprep.subr.bf16.mxu0 %v8008_v37  ;;  %5731 = vmatprep.subr.bf16.mxu1 %v8011_v38  ;;  %v8099_v37 = vld [vmem:[%s11187_s1 + $0xea0] ss:$16 sps:$4 sm:$0xff]   ;;  %v8102_v38 = vld [vmem:[%s11187_s1 + $0xea8] ss:$16 sps:$4 sm:$0xff]  }
 0x19b   :  { %5173 = vmatpush1.bf16.msra.mxu0 %v8006_v39  ;;  %5732 = vmatpush1.bf16.msra.mxu1 %v8009_v40  ;;  %v8107_v39 = vld [vmem:[%s11187_s1 + $0xec4] ss:$16 sps:$4 sm:$0xff]   ;;  %v8110_v40 = vld [vmem:[%s11187_s1 + $0xecc] ss:$16 sps:$4 sm:$0xff]  }
 0x19c   :  { %5174 = vmatprep.subr.bf16.mxu0 %v8014_v41  ;;  %5733 = vmatprep.subr.bf16.mxu1 %v8017_v42  ;;  %v8105_v41 = vld [vmem:[%s11187_s1 + $0xec0] ss:$16 sps:$4 sm:$0xff]   ;;  %v8108_v42 = vld [vmem:[%s11187_s1 + $0xec8] ss:$16 sps:$4 sm:$0xff]  }
 0x19f   :  { %5175 = vmatpush1.bf16.msra.mxu0 %v8012_v43  ;;  %5734 = vmatpush1.bf16.msra.mxu1 %v8015_v44  ;;  %v8113_v43 = vld [vmem:[%s11187_s1 + $0xee4] ss:$16 sps:$4 sm:$0xff]   ;;  %v8116_v44 = vld [vmem:[%s11187_s1 + $0xeec] ss:$16 sps:$4 sm:$0xff]  }
 0x1a0   :  { %5176 = vmatprep.subr.bf16.mxu0 %v8020_v45  ;;  %5735 = vmatprep.subr.bf16.mxu1 %v8023_v46  ;;  %v8111_v45 = vld [vmem:[%s11187_s1 + $0xee0] ss:$16 sps:$4 sm:$0xff]   ;;  %v8114_v46 = vld [vmem:[%s11187_s1 + $0xee8] ss:$16 sps:$4 sm:$0xff]  }
 0x1a3   :  { %5177 = vmatpush1.bf16.msra.mxu0 %v8018_v47  ;;  %5736 = vmatpush1.bf16.msra.mxu1 %v8021_v48  ;;  %v8119_v47 = vld [vmem:[%s11187_s1 + $0xf04] ss:$16 sps:$4 sm:$0xff]   ;;  %v8122_v48 = vld [vmem:[%s11187_s1 + $0xf0c] ss:$16 sps:$4 sm:$0xff]  }
 0x1a4   :  { %5178 = vmatprep.subr.bf16.mxu0 %v8026_v49  ;;  %5737 = vmatprep.subr.bf16.mxu1 %v8029_v50  ;;  %v8117_v49 = vld [vmem:[%s11187_s1 + $0xf00] ss:$16 sps:$4 sm:$0xff]   ;;  %v8120_v50 = vld [vmem:[%s11187_s1 + $0xf08] ss:$16 sps:$4 sm:$0xff]  }
 0x1a7   :  { %5179 = vmatpush1.bf16.msra.mxu0 %v8024_v51  ;;  %5738 = vmatpush1.bf16.msra.mxu1 %v8027_v52  ;;  %v8125_v51 = vld [vmem:[%s11187_s1 + $0xf24] ss:$16 sps:$4 sm:$0xff]   ;;  %v8128_v52 = vld [vmem:[%s11187_s1 + $0xf2c] ss:$16 sps:$4 sm:$0xff]  }
 0x1a8   :  { %5180 = vmatprep.subr.bf16.mxu0 %v8032_v53  ;;  %5739 = vmatprep.subr.bf16.mxu1 %v8035_v54  ;;  %v8123_v53 = vld [vmem:[%s11187_s1 + $0xf20] ss:$16 sps:$4 sm:$0xff]   ;;  %v8126_v54 = vld [vmem:[%s11187_s1 + $0xf28] ss:$16 sps:$4 sm:$0xff]  }
 0x1ab   :  { %5181 = vmatpush1.bf16.msra.mxu0 %v8030_v55  ;;  %5740 = vmatpush1.bf16.msra.mxu1 %v8033_v56  ;;  %v8131_v55 = vld [vmem:[%s11187_s1 + $0xf44] ss:$16 sps:$4 sm:$0xff]   ;;  %v8134_v56 = vld [vmem:[%s11187_s1 + $0xf4c] ss:$16 sps:$4 sm:$0xff]  }
 0x1ac   :  { %5182 = vmatprep.subr.bf16.mxu0 %v8038_v57  ;;  %5741 = vmatprep.subr.bf16.mxu1 %v8041_v58  ;;  %v8129_v57 = vld [vmem:[%s11187_s1 + $0xf40] ss:$16 sps:$4 sm:$0xff]   ;;  %v8132_v58 = vld [vmem:[%s11187_s1 + $0xf48] ss:$16 sps:$4 sm:$0xff]  }
 0x1af   :  { %5183 = vmatpush1.bf16.msra.mxu0 %v8036_v59  ;;  %5742 = vmatpush1.bf16.msra.mxu1 %v8039_v60  ;;  %v8137_v59 = vld [vmem:[%s11187_s1 + $0xf64] ss:$16 sps:$4 sm:$0xff]   ;;  %v8140_v60 = vld [vmem:[%s11187_s1 + $0xf6c] ss:$16 sps:$4 sm:$0xff]  }
 0x1b0   :  { %5184 = vmatprep.subr.bf16.mxu0 %v8044_v61  ;;  %5743 = vmatprep.subr.bf16.mxu1 %v8047_v62  ;;  %v8135_v61 = vld [vmem:[%s11187_s1 + $0xf60] ss:$16 sps:$4 sm:$0xff]   ;;  %v8138_v62 = vld [vmem:[%s11187_s1 + $0xf68] ss:$16 sps:$4 sm:$0xff]  }
 0x1b3   :  { %5185 = vmatpush1.bf16.msra.mxu0 %v8042_v63  ;;  %5744 = vmatpush1.bf16.msra.mxu1 %v8045_v0  ;;  %v8143_v63 = vld [vmem:[%s11187_s1 + $0xf84] ss:$16 sps:$4 sm:$0xff]   ;;  %v8146_v0 = vld [vmem:[%s11187_s1 + $0xf8c] ss:$16 sps:$4 sm:$0xff]  }
 0x1b4   :  { %5186 = vmatprep.subr.bf16.mxu0 %v8050_v1  ;;  %5745 = vmatprep.subr.bf16.mxu1 %v8053_v2  ;;  %v8141_v1 = vld [vmem:[%s11187_s1 + $0xf80] ss:$16 sps:$4 sm:$0xff]   ;;  %v8144_v2 = vld [vmem:[%s11187_s1 + $0xf88] ss:$16 sps:$4 sm:$0xff]  }
 0x1b7   :  { %5187 = vmatpush1.bf16.msra.mxu0 %v8048_v3  ;;  %5746 = vmatpush1.bf16.msra.mxu1 %v8051_v4  ;;  %v8149_v3 = vld [vmem:[%s11187_s1 + $0xfa4] ss:$16 sps:$4 sm:$0xff]   ;;  %v8152_v4 = vld [vmem:[%s11187_s1 + $0xfac] ss:$16 sps:$4 sm:$0xff]  }
 0x1b8   :  { %5188 = vmatprep.subr.bf16.mxu0 %v8056_v5  ;;  %5747 = vmatprep.subr.bf16.mxu1 %v8059_v6  ;;  %v8147_v5 = vld [vmem:[%s11187_s1 + $0xfa0] ss:$16 sps:$4 sm:$0xff]   ;;  %v8150_v6 = vld [vmem:[%s11187_s1 + $0xfa8] ss:$16 sps:$4 sm:$0xff]  }
 0x1bb   :  { %5189 = vmatpush1.bf16.msra.mxu0 %v8054_v7  ;;  %5748 = vmatpush1.bf16.msra.mxu1 %v8057_v8  ;;  %v8155_v7 = vld [vmem:[%s11187_s1 + $0xfc4] ss:$16 sps:$4 sm:$0xff]   ;;  %v8158_v8 = vld [vmem:[%s11187_s1 + $0xfcc] ss:$16 sps:$4 sm:$0xff]  }
 0x1bc   :  { %5190 = vmatprep.subr.bf16.mxu0 %v8062_v9  ;;  %5749 = vmatprep.subr.bf16.mxu1 %v8065_v10  ;;  %v8153_v9 = vld [vmem:[%s11187_s1 + $0xfc0] ss:$16 sps:$4 sm:$0xff]   ;;  %v8156_v10 = vld [vmem:[%s11187_s1 + $0xfc8] ss:$16 sps:$4 sm:$0xff]  }
 0x1bf   :  { %5191 = vmatpush1.bf16.msra.mxu0 %v8060_v11  ;;  %5750 = vmatpush1.bf16.msra.mxu1 %v8063_v12  ;;  %v8161_v11 = vld [vmem:[%s11187_s1 + $0xfe4] ss:$16 sps:$4 sm:$0xff]   ;;  %v8164_v12 = vld [vmem:[%s11187_s1 + $0xfec] ss:$16 sps:$4 sm:$0xff]  }
 0x1c0   :  { %5203 = vmatprep.subr.bf16.mxu0 %v8071_v14  ;;  %5762 = vmatprep.subr.bf16.mxu1 %v8074_v15  ;;  %v8162_v14 = vld [vmem:[%s11187_s1 + $0xfe8] ss:$16 sps:$4 sm:$0xff]   ;;  %v8170_v15 = vld [vmem:[%s11187_s1 + $0x1004] ss:$16 sps:$4 sm:$0xff]  }
 0x1c2   :  { %5193 = vmatmul.mubr.bf16.vlgmr.msra.gmra.mrb[0].mxu0 %v8066_v13  ;;  %5752 = vmatmul.mubr.bf16.vlgmr.msra.gmra.mrb[0].mxu1 %v8066_v13  ;;  %v8159_v13 = vld [vmem:[%s11187_s1 + $0xfe0] ss:$16 sps:$4 sm:$0xff]  }
 0x1c3   :  { %5204 = vmatpush1.bf16.msra.mxu0 %v8069_v16  ;;  %5763 = vmatpush1.bf16.msra.mxu1 %v8072_v17  ;;  %v8173_v16 = vld [vmem:[%s11187_s1 + $0x100c] ss:$16 sps:$4 sm:$0xff]  }
 0x1c4   :  { %5205 = vmatprep.subr.bf16.mxu0 %v8077_v18  ;;  %5764 = vmatprep.subr.bf16.mxu1 %v8080_v19  ;;  %v8165_v17 = vld [vmem:[%s11188_s0 + $0x38] ss:$100 sps:$4 sm:$0xff]   ;;  %v8168_v18 = vld [vmem:[%s11187_s1 + $0x1000] ss:$16 sps:$4 sm:$0xff]  }
 0x1c5   :  { %5235 = vmatprep.mubr.bf16.mxu0 %v8167_v20  ;;  %5794 = vmatprep.mubr.bf16.mxu1 %v8167_v20  ;;  %v8171_v19 = vld [vmem:[%s11187_s1 + $0x1008] ss:$16 sps:$4 sm:$0xff]   ;;  %v8176_v20 = vld [vmem:[%s11187_s1 + $0x1024] ss:$16 sps:$4 sm:$0xff]  }
 0x1c7   :  { %5206 = vmatpush1.bf16.msra.mxu0 %v8075_v21  ;;  %5765 = vmatpush1.bf16.msra.mxu1 %v8078_v22  ;;  %v8179_v21 = vld [vmem:[%s11187_s1 + $0x102c] ss:$16 sps:$4 sm:$0xff]   ;;  %v8266_v22 = vld [vmem:[%s11188_s0 + $0x44] ss:$100 sps:$4 sm:$0xff]  }
 0x1c8   :  { %5207 = vmatprep.subr.bf16.mxu0 %v8083_v23  ;;  %5766 = vmatprep.subr.bf16.mxu1 %v8086_v24  ;;  %v8174_v23 = vld [vmem:[%s11187_s1 + $0x1020] ss:$16 sps:$4 sm:$0xff]   ;;  %v8177_v24 = vld [vmem:[%s11187_s1 + $0x1028] ss:$16 sps:$4 sm:$0xff]  }
 0x1cb   :  { %5208 = vmatpush1.bf16.msra.mxu0 %v8081_v25  ;;  %5767 = vmatpush1.bf16.msra.mxu1 %v8084_v26  ;;  %v8182_v25 = vld [vmem:[%s11187_s1 + $0x1044] ss:$16 sps:$4 sm:$0xff]   ;;  %v8185_v26 = vld [vmem:[%s11187_s1 + $0x104c] ss:$16 sps:$4 sm:$0xff]  }
 0x1cc   :  { %5209 = vmatprep.subr.bf16.mxu0 %v8089_v27  ;;  %5768 = vmatprep.subr.bf16.mxu1 %v8092_v28  ;;  %v8180_v27 = vld [vmem:[%s11187_s1 + $0x1040] ss:$16 sps:$4 sm:$0xff]   ;;  %v8183_v28 = vld [vmem:[%s11187_s1 + $0x1048] ss:$16 sps:$4 sm:$0xff]  }
 0x1cf   :  { %5210 = vmatpush1.bf16.msra.mxu0 %v8087_v29  ;;  %5769 = vmatpush1.bf16.msra.mxu1 %v8090_v30  ;;  %v8188_v29 = vld [vmem:[%s11187_s1 + $0x1064] ss:$16 sps:$4 sm:$0xff]   ;;  %v8191_v30 = vld [vmem:[%s11187_s1 + $0x106c] ss:$16 sps:$4 sm:$0xff]  }
 0x1d0   :  { %5211 = vmatprep.subr.bf16.mxu0 %v8095_v31  ;;  %5770 = vmatprep.subr.bf16.mxu1 %v8098_v32  ;;  %v8186_v31 = vld [vmem:[%s11187_s1 + $0x1060] ss:$16 sps:$4 sm:$0xff]   ;;  %v8189_v32 = vld [vmem:[%s11187_s1 + $0x1068] ss:$16 sps:$4 sm:$0xff]  }
 0x1d3   :  { %5212 = vmatpush1.bf16.msra.mxu0 %v8093_v33  ;;  %5771 = vmatpush1.bf16.msra.mxu1 %v8096_v34  ;;  %v8194_v33 = vld [vmem:[%s11187_s1 + $0x1084] ss:$16 sps:$4 sm:$0xff]   ;;  %v8197_v34 = vld [vmem:[%s11187_s1 + $0x108c] ss:$16 sps:$4 sm:$0xff]  }
 0x1d4   :  { %5213 = vmatprep.subr.bf16.mxu0 %v8101_v35  ;;  %5772 = vmatprep.subr.bf16.mxu1 %v8104_v36  ;;  %v8192_v35 = vld [vmem:[%s11187_s1 + $0x1080] ss:$16 sps:$4 sm:$0xff]   ;;  %v8195_v36 = vld [vmem:[%s11187_s1 + $0x1088] ss:$16 sps:$4 sm:$0xff]  }
 0x1d7   :  { %5214 = vmatpush1.bf16.msra.mxu0 %v8099_v37  ;;  %5773 = vmatpush1.bf16.msra.mxu1 %v8102_v38  ;;  %v8200_v37 = vld [vmem:[%s11187_s1 + $0x10a4] ss:$16 sps:$4 sm:$0xff]   ;;  %v8203_v38 = vld [vmem:[%s11187_s1 + $0x10ac] ss:$16 sps:$4 sm:$0xff]  }
 0x1d8   :  { %5215 = vmatprep.subr.bf16.mxu0 %v8107_v39  ;;  %5774 = vmatprep.subr.bf16.mxu1 %v8110_v40  ;;  %v8198_v39 = vld [vmem:[%s11187_s1 + $0x10a0] ss:$16 sps:$4 sm:$0xff]   ;;  %v8201_v40 = vld [vmem:[%s11187_s1 + $0x10a8] ss:$16 sps:$4 sm:$0xff]  }
 0x1db   :  { %5216 = vmatpush1.bf16.msra.mxu0 %v8105_v41  ;;  %5775 = vmatpush1.bf16.msra.mxu1 %v8108_v42  ;;  %v8206_v41 = vld [vmem:[%s11187_s1 + $0x10c4] ss:$16 sps:$4 sm:$0xff]   ;;  %v8209_v42 = vld [vmem:[%s11187_s1 + $0x10cc] ss:$16 sps:$4 sm:$0xff]  }
 0x1dc   :  { %5217 = vmatprep.subr.bf16.mxu0 %v8113_v43  ;;  %5776 = vmatprep.subr.bf16.mxu1 %v8116_v44  ;;  %v8204_v43 = vld [vmem:[%s11187_s1 + $0x10c0] ss:$16 sps:$4 sm:$0xff]   ;;  %v8207_v44 = vld [vmem:[%s11187_s1 + $0x10c8] ss:$16 sps:$4 sm:$0xff]  }
 0x1df   :  { %5218 = vmatpush1.bf16.msra.mxu0 %v8111_v45  ;;  %5777 = vmatpush1.bf16.msra.mxu1 %v8114_v46  ;;  %v8212_v45 = vld [vmem:[%s11187_s1 + $0x10e4] ss:$16 sps:$4 sm:$0xff]   ;;  %v8215_v46 = vld [vmem:[%s11187_s1 + $0x10ec] ss:$16 sps:$4 sm:$0xff]  }
 0x1e0   :  { %5219 = vmatprep.subr.bf16.mxu0 %v8119_v47  ;;  %5778 = vmatprep.subr.bf16.mxu1 %v8122_v48  ;;  %v8210_v47 = vld [vmem:[%s11187_s1 + $0x10e0] ss:$16 sps:$4 sm:$0xff]   ;;  %v8213_v48 = vld [vmem:[%s11187_s1 + $0x10e8] ss:$16 sps:$4 sm:$0xff]  }
 0x1e3   :  { %5220 = vmatpush1.bf16.msra.mxu0 %v8117_v49  ;;  %5779 = vmatpush1.bf16.msra.mxu1 %v8120_v50  ;;  %v8218_v49 = vld [vmem:[%s11187_s1 + $0x1104] ss:$16 sps:$4 sm:$0xff]   ;;  %v8221_v50 = vld [vmem:[%s11187_s1 + $0x110c] ss:$16 sps:$4 sm:$0xff]  }
 0x1e4   :  { %5221 = vmatprep.subr.bf16.mxu0 %v8125_v51  ;;  %5780 = vmatprep.subr.bf16.mxu1 %v8128_v52  ;;  %v8216_v51 = vld [vmem:[%s11187_s1 + $0x1100] ss:$16 sps:$4 sm:$0xff]   ;;  %v8219_v52 = vld [vmem:[%s11187_s1 + $0x1108] ss:$16 sps:$4 sm:$0xff]  }
 0x1e7   :  { %5222 = vmatpush1.bf16.msra.mxu0 %v8123_v53  ;;  %5781 = vmatpush1.bf16.msra.mxu1 %v8126_v54  ;;  %v8224_v53 = vld [vmem:[%s11187_s1 + $0x1124] ss:$16 sps:$4 sm:$0xff]   ;;  %v8227_v54 = vld [vmem:[%s11187_s1 + $0x112c] ss:$16 sps:$4 sm:$0xff]  }
 0x1e8   :  { %5223 = vmatprep.subr.bf16.mxu0 %v8131_v55  ;;  %5782 = vmatprep.subr.bf16.mxu1 %v8134_v56  ;;  %v8222_v55 = vld [vmem:[%s11187_s1 + $0x1120] ss:$16 sps:$4 sm:$0xff]   ;;  %v8225_v56 = vld [vmem:[%s11187_s1 + $0x1128] ss:$16 sps:$4 sm:$0xff]  }
 0x1eb   :  { %5224 = vmatpush1.bf16.msra.mxu0 %v8129_v57  ;;  %5783 = vmatpush1.bf16.msra.mxu1 %v8132_v58  ;;  %v8230_v57 = vld [vmem:[%s11187_s1 + $0x1144] ss:$16 sps:$4 sm:$0xff]   ;;  %v8233_v58 = vld [vmem:[%s11187_s1 + $0x114c] ss:$16 sps:$4 sm:$0xff]  }
 0x1ec   :  { %5225 = vmatprep.subr.bf16.mxu0 %v8137_v59  ;;  %5784 = vmatprep.subr.bf16.mxu1 %v8140_v60  ;;  %v8228_v59 = vld [vmem:[%s11187_s1 + $0x1140] ss:$16 sps:$4 sm:$0xff]   ;;  %v8231_v60 = vld [vmem:[%s11187_s1 + $0x1148] ss:$16 sps:$4 sm:$0xff]  }
 0x1ef   :  { %5226 = vmatpush1.bf16.msra.mxu0 %v8135_v61  ;;  %5785 = vmatpush1.bf16.msra.mxu1 %v8138_v62  ;;  %v8236_v61 = vld [vmem:[%s11187_s1 + $0x1164] ss:$16 sps:$4 sm:$0xff]   ;;  %v8239_v62 = vld [vmem:[%s11187_s1 + $0x116c] ss:$16 sps:$4 sm:$0xff]  }
 0x1f0   :  { %5227 = vmatprep.subr.bf16.mxu0 %v8143_v63  ;;  %5786 = vmatprep.subr.bf16.mxu1 %v8146_v0  ;;  %v8234_v63 = vld [vmem:[%s11187_s1 + $0x1160] ss:$16 sps:$4 sm:$0xff]   ;;  %v8237_v0 = vld [vmem:[%s11187_s1 + $0x1168] ss:$16 sps:$4 sm:$0xff]  }
 0x1f3   :  { %5228 = vmatpush1.bf16.msra.mxu0 %v8141_v1  ;;  %5787 = vmatpush1.bf16.msra.mxu1 %v8144_v2  ;;  %v8242_v1 = vld [vmem:[%s11187_s1 + $0x1184] ss:$16 sps:$4 sm:$0xff]   ;;  %v8245_v2 = vld [vmem:[%s11187_s1 + $0x118c] ss:$16 sps:$4 sm:$0xff]  }
 0x1f4   :  { %5229 = vmatprep.subr.bf16.mxu0 %v8149_v3  ;;  %5788 = vmatprep.subr.bf16.mxu1 %v8152_v4  ;;  %v8240_v3 = vld [vmem:[%s11187_s1 + $0x1180] ss:$16 sps:$4 sm:$0xff]   ;;  %v8243_v4 = vld [vmem:[%s11187_s1 + $0x1188] ss:$16 sps:$4 sm:$0xff]  }
 0x1f7   :  { %5230 = vmatpush1.bf16.msra.mxu0 %v8147_v5  ;;  %5789 = vmatpush1.bf16.msra.mxu1 %v8150_v6  ;;  %v8248_v5 = vld [vmem:[%s11187_s1 + $0x11a4] ss:$16 sps:$4 sm:$0xff]   ;;  %v8251_v6 = vld [vmem:[%s11187_s1 + $0x11ac] ss:$16 sps:$4 sm:$0xff]  }
 0x1f8   :  { %5231 = vmatprep.subr.bf16.mxu0 %v8155_v7  ;;  %5790 = vmatprep.subr.bf16.mxu1 %v8158_v8  ;;  %v8246_v7 = vld [vmem:[%s11187_s1 + $0x11a0] ss:$16 sps:$4 sm:$0xff]   ;;  %v8249_v8 = vld [vmem:[%s11187_s1 + $0x11a8] ss:$16 sps:$4 sm:$0xff]  }
 0x1fb   :  { %5232 = vmatpush1.bf16.msra.mxu0 %v8153_v9  ;;  %5791 = vmatpush1.bf16.msra.mxu1 %v8156_v10  ;;  %v8254_v9 = vld [vmem:[%s11187_s1 + $0x11c4] ss:$16 sps:$4 sm:$0xff]   ;;  %v8257_v10 = vld [vmem:[%s11187_s1 + $0x11cc] ss:$16 sps:$4 sm:$0xff]  }
 0x1fc   :  { %5233 = vmatprep.subr.bf16.mxu0 %v8161_v11  ;;  %5792 = vmatprep.subr.bf16.mxu1 %v8164_v12  ;;  %v8252_v11 = vld [vmem:[%s11187_s1 + $0x11c0] ss:$16 sps:$4 sm:$0xff]   ;;  %v8255_v12 = vld [vmem:[%s11187_s1 + $0x11c8] ss:$16 sps:$4 sm:$0xff]  }
 0x1ff   :  { %5234 = vmatpush1.bf16.msra.mxu0 %v8159_v13  ;;  %5793 = vmatpush1.bf16.msra.mxu1 %v8162_v14  ;;  %v8260_v13 = vld [vmem:[%s11187_s1 + $0x11e4] ss:$16 sps:$4 sm:$0xff]   ;;  %v8263_v14 = vld [vmem:[%s11187_s1 + $0x11ec] ss:$16 sps:$4 sm:$0xff]  }
 0x200   :  { %5246 = vmatprep.subr.bf16.mxu0 %v8170_v15  ;;  %5805 = vmatprep.subr.bf16.mxu1 %v8173_v16  ;;  %v8258_v15 = vld [vmem:[%s11187_s1 + $0x11e0] ss:$16 sps:$4 sm:$0xff]   ;;  %v8261_v16 = vld [vmem:[%s11187_s1 + $0x11e8] ss:$16 sps:$4 sm:$0xff]  }
 0x202   :  { %5236 = vmatmul.mubr.bf16.vlgmr.msra.gmra.mrb[0].mxu0 %v8165_v17  ;;  %5795 = vmatmul.mubr.bf16.vlgmr.msra.gmra.mrb[0].mxu1 %v8165_v17  ;;  %v8269_v17 = vld [vmem:[%s11187_s1 + $0x1204] ss:$16 sps:$4 sm:$0xff]  }
 0x203   :  { %5247 = vmatpush1.bf16.msra.mxu0 %v8168_v18  ;;  %5806 = vmatpush1.bf16.msra.mxu1 %v8171_v19  ;;  %v8272_v18 = vld [vmem:[%s11187_s1 + $0x120c] ss:$16 sps:$4 sm:$0xff]   ;;  %v8264_v19 = vld [vmem:[%s11188_s0 + $0x40] ss:$100 sps:$4 sm:$0xff]  }
 0x204   :  { %5248 = vmatprep.subr.bf16.mxu0 %v8176_v20  ;;  %5807 = vmatprep.subr.bf16.mxu1 %v8179_v21  ;;  %v8267_v20 = vld [vmem:[%s11187_s1 + $0x1200] ss:$16 sps:$4 sm:$0xff]   ;;  %v8270_v21 = vld [vmem:[%s11187_s1 + $0x1208] ss:$16 sps:$4 sm:$0xff]  }
 0x205   :  { %5278 = vmatprep.mubr.bf16.mxu0 %v8266_v22  ;;  %5837 = vmatprep.mubr.bf16.mxu1 %v8266_v22  ;;  %v8275_v22 = vld [vmem:[%s11187_s1 + $0x1224] ss:$16 sps:$4 sm:$0xff]  }
 0x207   :  { %5249 = vmatpush1.bf16.msra.mxu0 %v8174_v23  ;;  %5808 = vmatpush1.bf16.msra.mxu1 %v8177_v24  ;;  %v8278_v23 = vld [vmem:[%s11187_s1 + $0x122c] ss:$16 sps:$4 sm:$0xff]  }
 0x208   :  { %5250 = vmatprep.subr.bf16.mxu0 %v8182_v25  ;;  %5809 = vmatprep.subr.bf16.mxu1 %v8185_v26  ;;  %v8365_v24 = vld [vmem:[%s11188_s0 + $0x4c] ss:$100 sps:$4 sm:$0xff]   ;;  %v8276_v26 = vld [vmem:[%s11187_s1 + $0x1228] ss:$16 sps:$4 sm:$0xff]  }
 0x209   :  { %v8273_v25 = vld [vmem:[%s11187_s1 + $0x1220] ss:$16 sps:$4 sm:$0xff]  }
 0x20b   :  { %5251 = vmatpush1.bf16.msra.mxu0 %v8180_v27  ;;  %5810 = vmatpush1.bf16.msra.mxu1 %v8183_v28  ;;  %v8281_v27 = vld [vmem:[%s11187_s1 + $0x1244] ss:$16 sps:$4 sm:$0xff]   ;;  %v8284_v28 = vld [vmem:[%s11187_s1 + $0x124c] ss:$16 sps:$4 sm:$0xff]  }
 0x20c   :  { %5252 = vmatprep.subr.bf16.mxu0 %v8188_v29  ;;  %5811 = vmatprep.subr.bf16.mxu1 %v8191_v30  ;;  %v8279_v29 = vld [vmem:[%s11187_s1 + $0x1240] ss:$16 sps:$4 sm:$0xff]   ;;  %v8282_v30 = vld [vmem:[%s11187_s1 + $0x1248] ss:$16 sps:$4 sm:$0xff]  }
 0x20f   :  { %5253 = vmatpush1.bf16.msra.mxu0 %v8186_v31  ;;  %5812 = vmatpush1.bf16.msra.mxu1 %v8189_v32  ;;  %v8287_v31 = vld [vmem:[%s11187_s1 + $0x1264] ss:$16 sps:$4 sm:$0xff]   ;;  %v8290_v32 = vld [vmem:[%s11187_s1 + $0x126c] ss:$16 sps:$4 sm:$0xff]  }
 0x210   :  { %5254 = vmatprep.subr.bf16.mxu0 %v8194_v33  ;;  %5813 = vmatprep.subr.bf16.mxu1 %v8197_v34  ;;  %v8285_v33 = vld [vmem:[%s11187_s1 + $0x1260] ss:$16 sps:$4 sm:$0xff]   ;;  %v8288_v34 = vld [vmem:[%s11187_s1 + $0x1268] ss:$16 sps:$4 sm:$0xff]  }
 0x213   :  { %5255 = vmatpush1.bf16.msra.mxu0 %v8192_v35  ;;  %5814 = vmatpush1.bf16.msra.mxu1 %v8195_v36  ;;  %v8293_v35 = vld [vmem:[%s11187_s1 + $0x1284] ss:$16 sps:$4 sm:$0xff]   ;;  %v8296_v36 = vld [vmem:[%s11187_s1 + $0x128c] ss:$16 sps:$4 sm:$0xff]  }
 0x214   :  { %5256 = vmatprep.subr.bf16.mxu0 %v8200_v37  ;;  %5815 = vmatprep.subr.bf16.mxu1 %v8203_v38  ;;  %v8291_v37 = vld [vmem:[%s11187_s1 + $0x1280] ss:$16 sps:$4 sm:$0xff]   ;;  %v8294_v38 = vld [vmem:[%s11187_s1 + $0x1288] ss:$16 sps:$4 sm:$0xff]  }
 0x217   :  { %5257 = vmatpush1.bf16.msra.mxu0 %v8198_v39  ;;  %5816 = vmatpush1.bf16.msra.mxu1 %v8201_v40  ;;  %v8299_v39 = vld [vmem:[%s11187_s1 + $0x12a4] ss:$16 sps:$4 sm:$0xff]   ;;  %v8302_v40 = vld [vmem:[%s11187_s1 + $0x12ac] ss:$16 sps:$4 sm:$0xff]  }
 0x218   :  { %5258 = vmatprep.subr.bf16.mxu0 %v8206_v41  ;;  %5817 = vmatprep.subr.bf16.mxu1 %v8209_v42  ;;  %v8297_v41 = vld [vmem:[%s11187_s1 + $0x12a0] ss:$16 sps:$4 sm:$0xff]   ;;  %v8300_v42 = vld [vmem:[%s11187_s1 + $0x12a8] ss:$16 sps:$4 sm:$0xff]  }
 0x21b   :  { %5259 = vmatpush1.bf16.msra.mxu0 %v8204_v43  ;;  %5818 = vmatpush1.bf16.msra.mxu1 %v8207_v44  ;;  %v8305_v43 = vld [vmem:[%s11187_s1 + $0x12c4] ss:$16 sps:$4 sm:$0xff]   ;;  %v8308_v44 = vld [vmem:[%s11187_s1 + $0x12cc] ss:$16 sps:$4 sm:$0xff]  }
 0x21c   :  { %5260 = vmatprep.subr.bf16.mxu0 %v8212_v45  ;;  %5819 = vmatprep.subr.bf16.mxu1 %v8215_v46  ;;  %v8303_v45 = vld [vmem:[%s11187_s1 + $0x12c0] ss:$16 sps:$4 sm:$0xff]   ;;  %v8306_v46 = vld [vmem:[%s11187_s1 + $0x12c8] ss:$16 sps:$4 sm:$0xff]  }
 0x21f   :  { %5261 = vmatpush1.bf16.msra.mxu0 %v8210_v47  ;;  %5820 = vmatpush1.bf16.msra.mxu1 %v8213_v48  ;;  %v8311_v47 = vld [vmem:[%s11187_s1 + $0x12e4] ss:$16 sps:$4 sm:$0xff]   ;;  %v8314_v48 = vld [vmem:[%s11187_s1 + $0x12ec] ss:$16 sps:$4 sm:$0xff]  }
 0x220   :  { %5262 = vmatprep.subr.bf16.mxu0 %v8218_v49  ;;  %5821 = vmatprep.subr.bf16.mxu1 %v8221_v50  ;;  %v8309_v49 = vld [vmem:[%s11187_s1 + $0x12e0] ss:$16 sps:$4 sm:$0xff]   ;;  %v8312_v50 = vld [vmem:[%s11187_s1 + $0x12e8] ss:$16 sps:$4 sm:$0xff]  }
 0x223   :  { %5263 = vmatpush1.bf16.msra.mxu0 %v8216_v51  ;;  %5822 = vmatpush1.bf16.msra.mxu1 %v8219_v52  ;;  %v8317_v51 = vld [vmem:[%s11187_s1 + $0x1304] ss:$16 sps:$4 sm:$0xff]   ;;  %v8320_v52 = vld [vmem:[%s11187_s1 + $0x130c] ss:$16 sps:$4 sm:$0xff]  }
 0x224   :  { %5264 = vmatprep.subr.bf16.mxu0 %v8224_v53  ;;  %5823 = vmatprep.subr.bf16.mxu1 %v8227_v54  ;;  %v8315_v53 = vld [vmem:[%s11187_s1 + $0x1300] ss:$16 sps:$4 sm:$0xff]   ;;  %v8318_v54 = vld [vmem:[%s11187_s1 + $0x1308] ss:$16 sps:$4 sm:$0xff]  }
 0x227   :  { %5265 = vmatpush1.bf16.msra.mxu0 %v8222_v55  ;;  %5824 = vmatpush1.bf16.msra.mxu1 %v8225_v56  ;;  %v8323_v55 = vld [vmem:[%s11187_s1 + $0x1324] ss:$16 sps:$4 sm:$0xff]   ;;  %v8326_v56 = vld [vmem:[%s11187_s1 + $0x132c] ss:$16 sps:$4 sm:$0xff]  }
 0x228   :  { %5266 = vmatprep.subr.bf16.mxu0 %v8230_v57  ;;  %5825 = vmatprep.subr.bf16.mxu1 %v8233_v58  ;;  %v8321_v57 = vld [vmem:[%s11187_s1 + $0x1320] ss:$16 sps:$4 sm:$0xff]   ;;  %v8324_v58 = vld [vmem:[%s11187_s1 + $0x1328] ss:$16 sps:$4 sm:$0xff]  }
 0x22b   :  { %5267 = vmatpush1.bf16.msra.mxu0 %v8228_v59  ;;  %5826 = vmatpush1.bf16.msra.mxu1 %v8231_v60  ;;  %v8329_v59 = vld [vmem:[%s11187_s1 + $0x1344] ss:$16 sps:$4 sm:$0xff]   ;;  %v8332_v60 = vld [vmem:[%s11187_s1 + $0x134c] ss:$16 sps:$4 sm:$0xff]  }
 0x22c   :  { %5268 = vmatprep.subr.bf16.mxu0 %v8236_v61  ;;  %5827 = vmatprep.subr.bf16.mxu1 %v8239_v62  ;;  %v8327_v61 = vld [vmem:[%s11187_s1 + $0x1340] ss:$16 sps:$4 sm:$0xff]   ;;  %v8330_v62 = vld [vmem:[%s11187_s1 + $0x1348] ss:$16 sps:$4 sm:$0xff]  }
 0x22f   :  { %5269 = vmatpush1.bf16.msra.mxu0 %v8234_v63  ;;  %5828 = vmatpush1.bf16.msra.mxu1 %v8237_v0  ;;  %v8335_v63 = vld [vmem:[%s11187_s1 + $0x1364] ss:$16 sps:$4 sm:$0xff]   ;;  %v8338_v0 = vld [vmem:[%s11187_s1 + $0x136c] ss:$16 sps:$4 sm:$0xff]  }
 0x230   :  { %5270 = vmatprep.subr.bf16.mxu0 %v8242_v1  ;;  %5829 = vmatprep.subr.bf16.mxu1 %v8245_v2  ;;  %v8333_v1 = vld [vmem:[%s11187_s1 + $0x1360] ss:$16 sps:$4 sm:$0xff]   ;;  %v8336_v2 = vld [vmem:[%s11187_s1 + $0x1368] ss:$16 sps:$4 sm:$0xff]  }
 0x233   :  { %5271 = vmatpush1.bf16.msra.mxu0 %v8240_v3  ;;  %5830 = vmatpush1.bf16.msra.mxu1 %v8243_v4  ;;  %v8341_v3 = vld [vmem:[%s11187_s1 + $0x1384] ss:$16 sps:$4 sm:$0xff]   ;;  %v8344_v4 = vld [vmem:[%s11187_s1 + $0x138c] ss:$16 sps:$4 sm:$0xff]  }
 0x234   :  { %5272 = vmatprep.subr.bf16.mxu0 %v8248_v5  ;;  %5831 = vmatprep.subr.bf16.mxu1 %v8251_v6  ;;  %v8339_v5 = vld [vmem:[%s11187_s1 + $0x1380] ss:$16 sps:$4 sm:$0xff]   ;;  %v8342_v6 = vld [vmem:[%s11187_s1 + $0x1388] ss:$16 sps:$4 sm:$0xff]  }
 0x237   :  { %5273 = vmatpush1.bf16.msra.mxu0 %v8246_v7  ;;  %5832 = vmatpush1.bf16.msra.mxu1 %v8249_v8  ;;  %v8347_v7 = vld [vmem:[%s11187_s1 + $0x13a4] ss:$16 sps:$4 sm:$0xff]   ;;  %v8350_v8 = vld [vmem:[%s11187_s1 + $0x13ac] ss:$16 sps:$4 sm:$0xff]  }
 0x238   :  { %5274 = vmatprep.subr.bf16.mxu0 %v8254_v9  ;;  %5833 = vmatprep.subr.bf16.mxu1 %v8257_v10  ;;  %v8345_v9 = vld [vmem:[%s11187_s1 + $0x13a0] ss:$16 sps:$4 sm:$0xff]   ;;  %v8348_v10 = vld [vmem:[%s11187_s1 + $0x13a8] ss:$16 sps:$4 sm:$0xff]  }
 0x23b   :  { %5275 = vmatpush1.bf16.msra.mxu0 %v8252_v11  ;;  %5834 = vmatpush1.bf16.msra.mxu1 %v8255_v12  ;;  %v8353_v11 = vld [vmem:[%s11187_s1 + $0x13c4] ss:$16 sps:$4 sm:$0xff]   ;;  %v8356_v12 = vld [vmem:[%s11187_s1 + $0x13cc] ss:$16 sps:$4 sm:$0xff]  }
 0x23c   :  { %5276 = vmatprep.subr.bf16.mxu0 %v8260_v13  ;;  %5835 = vmatprep.subr.bf16.mxu1 %v8263_v14  ;;  %v8351_v13 = vld [vmem:[%s11187_s1 + $0x13c0] ss:$16 sps:$4 sm:$0xff]   ;;  %v8354_v14 = vld [vmem:[%s11187_s1 + $0x13c8] ss:$16 sps:$4 sm:$0xff]  }
 0x23f   :  { %5277 = vmatpush1.bf16.msra.mxu0 %v8258_v15  ;;  %5836 = vmatpush1.bf16.msra.mxu1 %v8261_v16  ;;  %v8359_v15 = vld [vmem:[%s11187_s1 + $0x13e4] ss:$16 sps:$4 sm:$0xff]   ;;  %v8362_v16 = vld [vmem:[%s11187_s1 + $0x13ec] ss:$16 sps:$4 sm:$0xff]  }
 0x240   :  { %5289 = vmatprep.subr.bf16.mxu0 %v8269_v17  ;;  %5848 = vmatprep.subr.bf16.mxu1 %v8272_v18  ;;  %v8357_v17 = vld [vmem:[%s11187_s1 + $0x13e0] ss:$16 sps:$4 sm:$0xff]   ;;  %v8360_v18 = vld [vmem:[%s11187_s1 + $0x13e8] ss:$16 sps:$4 sm:$0xff]  }
 0x242   :  { %5279 = vmatmul.mubr.bf16.vlgmr.msra.gmra.mrb[0].mxu0 %v8264_v19  ;;  %5838 = vmatmul.mubr.bf16.vlgmr.msra.gmra.mrb[0].mxu1 %v8264_v19  ;;  %v8368_v19 = vld [vmem:[%s11187_s1 + $0x1404] ss:$16 sps:$4 sm:$0xff]  }
 0x243   :  { %5290 = vmatpush1.bf16.msra.mxu0 %v8267_v20  ;;  %5849 = vmatpush1.bf16.msra.mxu1 %v8270_v21  ;;  %v8371_v20 = vld [vmem:[%s11187_s1 + $0x140c] ss:$16 sps:$4 sm:$0xff]  }
 0x244   :  { %5291 = vmatprep.subr.bf16.mxu0 %v8275_v22  ;;  %5850 = vmatprep.subr.bf16.mxu1 %v8278_v23  ;;  %v8363_v21 = vld [vmem:[%s11188_s0 + $0x48] ss:$100 sps:$4 sm:$0xff]   ;;  %v8366_v22 = vld [vmem:[%s11187_s1 + $0x1400] ss:$16 sps:$4 sm:$0xff]  }
 0x245   :  { %5321 = vmatprep.mubr.bf16.mxu0 %v8365_v24  ;;  %5880 = vmatprep.mubr.bf16.mxu1 %v8365_v24  ;;  %v8369_v23 = vld [vmem:[%s11187_s1 + $0x1408] ss:$16 sps:$4 sm:$0xff]   ;;  %v8374_v24 = vld [vmem:[%s11187_s1 + $0x1424] ss:$16 sps:$4 sm:$0xff]  }
 0x247   :  { %5292 = vmatpush1.bf16.msra.mxu0 %v8273_v25  ;;  %5851 = vmatpush1.bf16.msra.mxu1 %v8276_v26  ;;  %v8377_v25 = vld [vmem:[%s11187_s1 + $0x142c] ss:$16 sps:$4 sm:$0xff]   ;;  %v8464_v26 = vld [vmem:[%s11188_s0 + $0x54] ss:$100 sps:$4 sm:$0xff]  }
 0x248   :  { %5293 = vmatprep.subr.bf16.mxu0 %v8281_v27  ;;  %5852 = vmatprep.subr.bf16.mxu1 %v8284_v28  ;;  %v8372_v27 = vld [vmem:[%s11187_s1 + $0x1420] ss:$16 sps:$4 sm:$0xff]   ;;  %v8375_v28 = vld [vmem:[%s11187_s1 + $0x1428] ss:$16 sps:$4 sm:$0xff]  }
 0x24b   :  { %5294 = vmatpush1.bf16.msra.mxu0 %v8279_v29  ;;  %5853 = vmatpush1.bf16.msra.mxu1 %v8282_v30  ;;  %v8380_v29 = vld [vmem:[%s11187_s1 + $0x1444] ss:$16 sps:$4 sm:$0xff]   ;;  %v8383_v30 = vld [vmem:[%s11187_s1 + $0x144c] ss:$16 sps:$4 sm:$0xff]  }
 0x24c   :  { %5295 = vmatprep.subr.bf16.mxu0 %v8287_v31  ;;  %5854 = vmatprep.subr.bf16.mxu1 %v8290_v32  ;;  %v8378_v31 = vld [vmem:[%s11187_s1 + $0x1440] ss:$16 sps:$4 sm:$0xff]   ;;  %v8381_v32 = vld [vmem:[%s11187_s1 + $0x1448] ss:$16 sps:$4 sm:$0xff]  }
 0x24f   :  { %5296 = vmatpush1.bf16.msra.mxu0 %v8285_v33  ;;  %5855 = vmatpush1.bf16.msra.mxu1 %v8288_v34  ;;  %v8386_v33 = vld [vmem:[%s11187_s1 + $0x1464] ss:$16 sps:$4 sm:$0xff]   ;;  %v8389_v34 = vld [vmem:[%s11187_s1 + $0x146c] ss:$16 sps:$4 sm:$0xff]  }
 0x250   :  { %5297 = vmatprep.subr.bf16.mxu0 %v8293_v35  ;;  %5856 = vmatprep.subr.bf16.mxu1 %v8296_v36  ;;  %v8384_v35 = vld [vmem:[%s11187_s1 + $0x1460] ss:$16 sps:$4 sm:$0xff]   ;;  %v8387_v36 = vld [vmem:[%s11187_s1 + $0x1468] ss:$16 sps:$4 sm:$0xff]  }
 0x253   :  { %5298 = vmatpush1.bf16.msra.mxu0 %v8291_v37  ;;  %5857 = vmatpush1.bf16.msra.mxu1 %v8294_v38  ;;  %v8392_v37 = vld [vmem:[%s11187_s1 + $0x1484] ss:$16 sps:$4 sm:$0xff]   ;;  %v8395_v38 = vld [vmem:[%s11187_s1 + $0x148c] ss:$16 sps:$4 sm:$0xff]  }
 0x254   :  { %5299 = vmatprep.subr.bf16.mxu0 %v8299_v39  ;;  %5858 = vmatprep.subr.bf16.mxu1 %v8302_v40  ;;  %v8390_v39 = vld [vmem:[%s11187_s1 + $0x1480] ss:$16 sps:$4 sm:$0xff]   ;;  %v8393_v40 = vld [vmem:[%s11187_s1 + $0x1488] ss:$16 sps:$4 sm:$0xff]  }
 0x257   :  { %5300 = vmatpush1.bf16.msra.mxu0 %v8297_v41  ;;  %5859 = vmatpush1.bf16.msra.mxu1 %v8300_v42  ;;  %v8398_v41 = vld [vmem:[%s11187_s1 + $0x14a4] ss:$16 sps:$4 sm:$0xff]   ;;  %v8401_v42 = vld [vmem:[%s11187_s1 + $0x14ac] ss:$16 sps:$4 sm:$0xff]  }
 0x258   :  { %5301 = vmatprep.subr.bf16.mxu0 %v8305_v43  ;;  %5860 = vmatprep.subr.bf16.mxu1 %v8308_v44  ;;  %v8396_v43 = vld [vmem:[%s11187_s1 + $0x14a0] ss:$16 sps:$4 sm:$0xff]   ;;  %v8399_v44 = vld [vmem:[%s11187_s1 + $0x14a8] ss:$16 sps:$4 sm:$0xff]  }
 0x25b   :  { %5302 = vmatpush1.bf16.msra.mxu0 %v8303_v45  ;;  %5861 = vmatpush1.bf16.msra.mxu1 %v8306_v46  ;;  %v8404_v45 = vld [vmem:[%s11187_s1 + $0x14c4] ss:$16 sps:$4 sm:$0xff]   ;;  %v8407_v46 = vld [vmem:[%s11187_s1 + $0x14cc] ss:$16 sps:$4 sm:$0xff]  }
 0x25c   :  { %5303 = vmatprep.subr.bf16.mxu0 %v8311_v47  ;;  %5862 = vmatprep.subr.bf16.mxu1 %v8314_v48  ;;  %v8402_v47 = vld [vmem:[%s11187_s1 + $0x14c0] ss:$16 sps:$4 sm:$0xff]   ;;  %v8405_v48 = vld [vmem:[%s11187_s1 + $0x14c8] ss:$16 sps:$4 sm:$0xff]  }
 0x25f   :  { %5304 = vmatpush1.bf16.msra.mxu0 %v8309_v49  ;;  %5863 = vmatpush1.bf16.msra.mxu1 %v8312_v50  ;;  %v8410_v49 = vld [vmem:[%s11187_s1 + $0x14e4] ss:$16 sps:$4 sm:$0xff]   ;;  %v8413_v50 = vld [vmem:[%s11187_s1 + $0x14ec] ss:$16 sps:$4 sm:$0xff]  }
 0x260   :  { %5305 = vmatprep.subr.bf16.mxu0 %v8317_v51  ;;  %5864 = vmatprep.subr.bf16.mxu1 %v8320_v52  ;;  %v8408_v51 = vld [vmem:[%s11187_s1 + $0x14e0] ss:$16 sps:$4 sm:$0xff]   ;;  %v8411_v52 = vld [vmem:[%s11187_s1 + $0x14e8] ss:$16 sps:$4 sm:$0xff]  }
 0x263   :  { %5306 = vmatpush1.bf16.msra.mxu0 %v8315_v53  ;;  %5865 = vmatpush1.bf16.msra.mxu1 %v8318_v54  ;;  %v8416_v53 = vld [vmem:[%s11187_s1 + $0x1504] ss:$16 sps:$4 sm:$0xff]   ;;  %v8419_v54 = vld [vmem:[%s11187_s1 + $0x150c] ss:$16 sps:$4 sm:$0xff]  }
 0x264   :  { %5307 = vmatprep.subr.bf16.mxu0 %v8323_v55  ;;  %5866 = vmatprep.subr.bf16.mxu1 %v8326_v56  ;;  %v8414_v55 = vld [vmem:[%s11187_s1 + $0x1500] ss:$16 sps:$4 sm:$0xff]   ;;  %v8417_v56 = vld [vmem:[%s11187_s1 + $0x1508] ss:$16 sps:$4 sm:$0xff]  }
 0x267   :  { %5308 = vmatpush1.bf16.msra.mxu0 %v8321_v57  ;;  %5867 = vmatpush1.bf16.msra.mxu1 %v8324_v58  ;;  %v8422_v57 = vld [vmem:[%s11187_s1 + $0x1524] ss:$16 sps:$4 sm:$0xff]   ;;  %v8425_v58 = vld [vmem:[%s11187_s1 + $0x152c] ss:$16 sps:$4 sm:$0xff]  }
 0x268   :  { %5309 = vmatprep.subr.bf16.mxu0 %v8329_v59  ;;  %5868 = vmatprep.subr.bf16.mxu1 %v8332_v60  ;;  %v8420_v59 = vld [vmem:[%s11187_s1 + $0x1520] ss:$16 sps:$4 sm:$0xff]   ;;  %v8423_v60 = vld [vmem:[%s11187_s1 + $0x1528] ss:$16 sps:$4 sm:$0xff]  }
 0x26b   :  { %5310 = vmatpush1.bf16.msra.mxu0 %v8327_v61  ;;  %5869 = vmatpush1.bf16.msra.mxu1 %v8330_v62  ;;  %v8428_v61 = vld [vmem:[%s11187_s1 + $0x1544] ss:$16 sps:$4 sm:$0xff]   ;;  %v8431_v62 = vld [vmem:[%s11187_s1 + $0x154c] ss:$16 sps:$4 sm:$0xff]  }
 0x26c   :  { %5311 = vmatprep.subr.bf16.mxu0 %v8335_v63  ;;  %5870 = vmatprep.subr.bf16.mxu1 %v8338_v0  ;;  %v8426_v63 = vld [vmem:[%s11187_s1 + $0x1540] ss:$16 sps:$4 sm:$0xff]   ;;  %v8429_v0 = vld [vmem:[%s11187_s1 + $0x1548] ss:$16 sps:$4 sm:$0xff]  }
 0x26f   :  { %5312 = vmatpush1.bf16.msra.mxu0 %v8333_v1  ;;  %5871 = vmatpush1.bf16.msra.mxu1 %v8336_v2  ;;  %v8434_v1 = vld [vmem:[%s11187_s1 + $0x1564] ss:$16 sps:$4 sm:$0xff]   ;;  %v8437_v2 = vld [vmem:[%s11187_s1 + $0x156c] ss:$16 sps:$4 sm:$0xff]  }
 0x270   :  { %5313 = vmatprep.subr.bf16.mxu0 %v8341_v3  ;;  %5872 = vmatprep.subr.bf16.mxu1 %v8344_v4  ;;  %v8432_v3 = vld [vmem:[%s11187_s1 + $0x1560] ss:$16 sps:$4 sm:$0xff]   ;;  %v8435_v4 = vld [vmem:[%s11187_s1 + $0x1568] ss:$16 sps:$4 sm:$0xff]  }
 0x273   :  { %5314 = vmatpush1.bf16.msra.mxu0 %v8339_v5  ;;  %5873 = vmatpush1.bf16.msra.mxu1 %v8342_v6  ;;  %v8440_v5 = vld [vmem:[%s11187_s1 + $0x1584] ss:$16 sps:$4 sm:$0xff]   ;;  %v8443_v6 = vld [vmem:[%s11187_s1 + $0x158c] ss:$16 sps:$4 sm:$0xff]  }
 0x274   :  { %5315 = vmatprep.subr.bf16.mxu0 %v8347_v7  ;;  %5874 = vmatprep.subr.bf16.mxu1 %v8350_v8  ;;  %v8438_v7 = vld [vmem:[%s11187_s1 + $0x1580] ss:$16 sps:$4 sm:$0xff]   ;;  %v8441_v8 = vld [vmem:[%s11187_s1 + $0x1588] ss:$16 sps:$4 sm:$0xff]  }
 0x277   :  { %5316 = vmatpush1.bf16.msra.mxu0 %v8345_v9  ;;  %5875 = vmatpush1.bf16.msra.mxu1 %v8348_v10  ;;  %v8446_v9 = vld [vmem:[%s11187_s1 + $0x15a4] ss:$16 sps:$4 sm:$0xff]   ;;  %v8449_v10 = vld [vmem:[%s11187_s1 + $0x15ac] ss:$16 sps:$4 sm:$0xff]  }
 0x278   :  { %5317 = vmatprep.subr.bf16.mxu0 %v8353_v11  ;;  %5876 = vmatprep.subr.bf16.mxu1 %v8356_v12  ;;  %v8444_v11 = vld [vmem:[%s11187_s1 + $0x15a0] ss:$16 sps:$4 sm:$0xff]   ;;  %v8447_v12 = vld [vmem:[%s11187_s1 + $0x15a8] ss:$16 sps:$4 sm:$0xff]  }
 0x27b   :  { %5318 = vmatpush1.bf16.msra.mxu0 %v8351_v13  ;;  %5877 = vmatpush1.bf16.msra.mxu1 %v8354_v14  ;;  %v8452_v13 = vld [vmem:[%s11187_s1 + $0x15c4] ss:$16 sps:$4 sm:$0xff]   ;;  %v8455_v14 = vld [vmem:[%s11187_s1 + $0x15cc] ss:$16 sps:$4 sm:$0xff]  }
 0x27c   :  { %5319 = vmatprep.subr.bf16.mxu0 %v8359_v15  ;;  %5878 = vmatprep.subr.bf16.mxu1 %v8362_v16  ;;  %v8450_v15 = vld [vmem:[%s11187_s1 + $0x15c0] ss:$16 sps:$4 sm:$0xff]   ;;  %v8453_v16 = vld [vmem:[%s11187_s1 + $0x15c8] ss:$16 sps:$4 sm:$0xff]  }
 0x27f   :  { %5320 = vmatpush1.bf16.msra.mxu0 %v8357_v17  ;;  %5879 = vmatpush1.bf16.msra.mxu1 %v8360_v18  ;;  %v8458_v17 = vld [vmem:[%s11187_s1 + $0x15e4] ss:$16 sps:$4 sm:$0xff]   ;;  %v8461_v18 = vld [vmem:[%s11187_s1 + $0x15ec] ss:$16 sps:$4 sm:$0xff]  }
 0x280   :  { %5332 = vmatprep.subr.bf16.mxu0 %v8368_v19  ;;  %5891 = vmatprep.subr.bf16.mxu1 %v8371_v20  ;;  %v8456_v19 = vld [vmem:[%s11187_s1 + $0x15e0] ss:$16 sps:$4 sm:$0xff]   ;;  %v8459_v20 = vld [vmem:[%s11187_s1 + $0x15e8] ss:$16 sps:$4 sm:$0xff]  }
 0x282   :  { %5322 = vmatmul.mubr.bf16.vlgmr.msra.gmra.mrb[0].mxu0 %v8363_v21  ;;  %5881 = vmatmul.mubr.bf16.vlgmr.msra.gmra.mrb[0].mxu1 %v8363_v21  ;;  %v8467_v21 = vld [vmem:[%s11187_s1 + $0x1604] ss:$16 sps:$4 sm:$0xff]  }
 0x283   :  { %5333 = vmatpush1.bf16.msra.mxu0 %v8366_v22  ;;  %5892 = vmatpush1.bf16.msra.mxu1 %v8369_v23  ;;  %v8470_v22 = vld [vmem:[%s11187_s1 + $0x160c] ss:$16 sps:$4 sm:$0xff]   ;;  %v8462_v23 = vld [vmem:[%s11188_s0 + $0x50] ss:$100 sps:$4 sm:$0xff]  }
 0x284   :  { %5334 = vmatprep.subr.bf16.mxu0 %v8374_v24  ;;  %5893 = vmatprep.subr.bf16.mxu1 %v8377_v25  ;;  %v8465_v24 = vld [vmem:[%s11187_s1 + $0x1600] ss:$16 sps:$4 sm:$0xff]   ;;  %v8468_v25 = vld [vmem:[%s11187_s1 + $0x1608] ss:$16 sps:$4 sm:$0xff]  }
 0x285   :  { %5364 = vmatprep.mubr.bf16.mxu0 %v8464_v26  ;;  %5923 = vmatprep.mubr.bf16.mxu1 %v8464_v26  ;;  %v8473_v26 = vld [vmem:[%s11187_s1 + $0x1624] ss:$16 sps:$4 sm:$0xff]  }
 0x287   :  { %5335 = vmatpush1.bf16.msra.mxu0 %v8372_v27  ;;  %5894 = vmatpush1.bf16.msra.mxu1 %v8375_v28  ;;  %v8476_v27 = vld [vmem:[%s11187_s1 + $0x162c] ss:$16 sps:$4 sm:$0xff]  }
 0x288   :  { %5336 = vmatprep.subr.bf16.mxu0 %v8380_v29  ;;  %5895 = vmatprep.subr.bf16.mxu1 %v8383_v30  ;;  %v8563_v28 = vld [vmem:[%s11188_s0 + $0x5c] ss:$100 sps:$4 sm:$0xff]   ;;  %v8474_v30 = vld [vmem:[%s11187_s1 + $0x1628] ss:$16 sps:$4 sm:$0xff]  }
 0x289   :  { %v8471_v29 = vld [vmem:[%s11187_s1 + $0x1620] ss:$16 sps:$4 sm:$0xff]  }
 0x28b   :  { %5337 = vmatpush1.bf16.msra.mxu0 %v8378_v31  ;;  %5896 = vmatpush1.bf16.msra.mxu1 %v8381_v32  ;;  %v8479_v31 = vld [vmem:[%s11187_s1 + $0x1644] ss:$16 sps:$4 sm:$0xff]   ;;  %v8482_v32 = vld [vmem:[%s11187_s1 + $0x164c] ss:$16 sps:$4 sm:$0xff]  }
 0x28c   :  { %5338 = vmatprep.subr.bf16.mxu0 %v8386_v33  ;;  %5897 = vmatprep.subr.bf16.mxu1 %v8389_v34  ;;  %v8477_v33 = vld [vmem:[%s11187_s1 + $0x1640] ss:$16 sps:$4 sm:$0xff]   ;;  %v8480_v34 = vld [vmem:[%s11187_s1 + $0x1648] ss:$16 sps:$4 sm:$0xff]  }
 0x28f   :  { %5339 = vmatpush1.bf16.msra.mxu0 %v8384_v35  ;;  %5898 = vmatpush1.bf16.msra.mxu1 %v8387_v36  ;;  %v8485_v35 = vld [vmem:[%s11187_s1 + $0x1664] ss:$16 sps:$4 sm:$0xff]   ;;  %v8488_v36 = vld [vmem:[%s11187_s1 + $0x166c] ss:$16 sps:$4 sm:$0xff]  }
 0x290   :  { %5340 = vmatprep.subr.bf16.mxu0 %v8392_v37  ;;  %5899 = vmatprep.subr.bf16.mxu1 %v8395_v38  ;;  %v8483_v37 = vld [vmem:[%s11187_s1 + $0x1660] ss:$16 sps:$4 sm:$0xff]   ;;  %v8486_v38 = vld [vmem:[%s11187_s1 + $0x1668] ss:$16 sps:$4 sm:$0xff]  }
 0x293   :  { %5341 = vmatpush1.bf16.msra.mxu0 %v8390_v39  ;;  %5900 = vmatpush1.bf16.msra.mxu1 %v8393_v40  ;;  %v8491_v39 = vld [vmem:[%s11187_s1 + $0x1684] ss:$16 sps:$4 sm:$0xff]   ;;  %v8494_v40 = vld [vmem:[%s11187_s1 + $0x168c] ss:$16 sps:$4 sm:$0xff]  }
 0x294   :  { %5342 = vmatprep.subr.bf16.mxu0 %v8398_v41  ;;  %5901 = vmatprep.subr.bf16.mxu1 %v8401_v42  ;;  %v8489_v41 = vld [vmem:[%s11187_s1 + $0x1680] ss:$16 sps:$4 sm:$0xff]   ;;  %v8492_v42 = vld [vmem:[%s11187_s1 + $0x1688] ss:$16 sps:$4 sm:$0xff]  }
 0x297   :  { %5343 = vmatpush1.bf16.msra.mxu0 %v8396_v43  ;;  %5902 = vmatpush1.bf16.msra.mxu1 %v8399_v44  ;;  %v8497_v43 = vld [vmem:[%s11187_s1 + $0x16a4] ss:$16 sps:$4 sm:$0xff]   ;;  %v8500_v44 = vld [vmem:[%s11187_s1 + $0x16ac] ss:$16 sps:$4 sm:$0xff]  }
 0x298   :  { %5344 = vmatprep.subr.bf16.mxu0 %v8404_v45  ;;  %5903 = vmatprep.subr.bf16.mxu1 %v8407_v46  ;;  %v8495_v45 = vld [vmem:[%s11187_s1 + $0x16a0] ss:$16 sps:$4 sm:$0xff]   ;;  %v8498_v46 = vld [vmem:[%s11187_s1 + $0x16a8] ss:$16 sps:$4 sm:$0xff]  }
 0x29b   :  { %5345 = vmatpush1.bf16.msra.mxu0 %v8402_v47  ;;  %5904 = vmatpush1.bf16.msra.mxu1 %v8405_v48  ;;  %v8503_v47 = vld [vmem:[%s11187_s1 + $0x16c4] ss:$16 sps:$4 sm:$0xff]   ;;  %v8506_v48 = vld [vmem:[%s11187_s1 + $0x16cc] ss:$16 sps:$4 sm:$0xff]  }
 0x29c   :  { %5346 = vmatprep.subr.bf16.mxu0 %v8410_v49  ;;  %5905 = vmatprep.subr.bf16.mxu1 %v8413_v50  ;;  %v8501_v49 = vld [vmem:[%s11187_s1 + $0x16c0] ss:$16 sps:$4 sm:$0xff]   ;;  %v8504_v50 = vld [vmem:[%s11187_s1 + $0x16c8] ss:$16 sps:$4 sm:$0xff]  }
 0x29f   :  { %5347 = vmatpush1.bf16.msra.mxu0 %v8408_v51  ;;  %5906 = vmatpush1.bf16.msra.mxu1 %v8411_v52  ;;  %v8509_v51 = vld [vmem:[%s11187_s1 + $0x16e4] ss:$16 sps:$4 sm:$0xff]   ;;  %v8512_v52 = vld [vmem:[%s11187_s1 + $0x16ec] ss:$16 sps:$4 sm:$0xff]  }
 0x2a0   :  { %5348 = vmatprep.subr.bf16.mxu0 %v8416_v53  ;;  %5907 = vmatprep.subr.bf16.mxu1 %v8419_v54  ;;  %v8507_v53 = vld [vmem:[%s11187_s1 + $0x16e0] ss:$16 sps:$4 sm:$0xff]   ;;  %v8510_v54 = vld [vmem:[%s11187_s1 + $0x16e8] ss:$16 sps:$4 sm:$0xff]  }
 0x2a3   :  { %5349 = vmatpush1.bf16.msra.mxu0 %v8414_v55  ;;  %5908 = vmatpush1.bf16.msra.mxu1 %v8417_v56  ;;  %v8515_v55 = vld [vmem:[%s11187_s1 + $0x1704] ss:$16 sps:$4 sm:$0xff]   ;;  %v8518_v56 = vld [vmem:[%s11187_s1 + $0x170c] ss:$16 sps:$4 sm:$0xff]  }
 0x2a4   :  { %5350 = vmatprep.subr.bf16.mxu0 %v8422_v57  ;;  %5909 = vmatprep.subr.bf16.mxu1 %v8425_v58  ;;  %v8513_v57 = vld [vmem:[%s11187_s1 + $0x1700] ss:$16 sps:$4 sm:$0xff]   ;;  %v8516_v58 = vld [vmem:[%s11187_s1 + $0x1708] ss:$16 sps:$4 sm:$0xff]  }
 0x2a7   :  { %5351 = vmatpush1.bf16.msra.mxu0 %v8420_v59  ;;  %5910 = vmatpush1.bf16.msra.mxu1 %v8423_v60  ;;  %v8521_v59 = vld [vmem:[%s11187_s1 + $0x1724] ss:$16 sps:$4 sm:$0xff]   ;;  %v8524_v60 = vld [vmem:[%s11187_s1 + $0x172c] ss:$16 sps:$4 sm:$0xff]  }
 0x2a8   :  { %5352 = vmatprep.subr.bf16.mxu0 %v8428_v61  ;;  %5911 = vmatprep.subr.bf16.mxu1 %v8431_v62  ;;  %v8519_v61 = vld [vmem:[%s11187_s1 + $0x1720] ss:$16 sps:$4 sm:$0xff]   ;;  %v8522_v62 = vld [vmem:[%s11187_s1 + $0x1728] ss:$16 sps:$4 sm:$0xff]  }
 0x2ab   :  { %5353 = vmatpush1.bf16.msra.mxu0 %v8426_v63  ;;  %5912 = vmatpush1.bf16.msra.mxu1 %v8429_v0  ;;  %v8527_v63 = vld [vmem:[%s11187_s1 + $0x1744] ss:$16 sps:$4 sm:$0xff]   ;;  %v8530_v0 = vld [vmem:[%s11187_s1 + $0x174c] ss:$16 sps:$4 sm:$0xff]  }
 0x2ac   :  { %5354 = vmatprep.subr.bf16.mxu0 %v8434_v1  ;;  %5913 = vmatprep.subr.bf16.mxu1 %v8437_v2  ;;  %v8525_v1 = vld [vmem:[%s11187_s1 + $0x1740] ss:$16 sps:$4 sm:$0xff]   ;;  %v8528_v2 = vld [vmem:[%s11187_s1 + $0x1748] ss:$16 sps:$4 sm:$0xff]  }
 0x2af   :  { %5355 = vmatpush1.bf16.msra.mxu0 %v8432_v3  ;;  %5914 = vmatpush1.bf16.msra.mxu1 %v8435_v4  ;;  %v8533_v3 = vld [vmem:[%s11187_s1 + $0x1764] ss:$16 sps:$4 sm:$0xff]   ;;  %v8536_v4 = vld [vmem:[%s11187_s1 + $0x176c] ss:$16 sps:$4 sm:$0xff]  }
 0x2b0   :  { %5356 = vmatprep.subr.bf16.mxu0 %v8440_v5  ;;  %5915 = vmatprep.subr.bf16.mxu1 %v8443_v6  ;;  %v8531_v5 = vld [vmem:[%s11187_s1 + $0x1760] ss:$16 sps:$4 sm:$0xff]   ;;  %v8534_v6 = vld [vmem:[%s11187_s1 + $0x1768] ss:$16 sps:$4 sm:$0xff]  }
 0x2b3   :  { %5357 = vmatpush1.bf16.msra.mxu0 %v8438_v7  ;;  %5916 = vmatpush1.bf16.msra.mxu1 %v8441_v8  ;;  %v8539_v7 = vld [vmem:[%s11187_s1 + $0x1784] ss:$16 sps:$4 sm:$0xff]   ;;  %v8542_v8 = vld [vmem:[%s11187_s1 + $0x178c] ss:$16 sps:$4 sm:$0xff]  }
 0x2b4   :  { %5358 = vmatprep.subr.bf16.mxu0 %v8446_v9  ;;  %5917 = vmatprep.subr.bf16.mxu1 %v8449_v10  ;;  %v8537_v9 = vld [vmem:[%s11187_s1 + $0x1780] ss:$16 sps:$4 sm:$0xff]   ;;  %v8540_v10 = vld [vmem:[%s11187_s1 + $0x1788] ss:$16 sps:$4 sm:$0xff]  }
 0x2b7   :  { %5359 = vmatpush1.bf16.msra.mxu0 %v8444_v11  ;;  %5918 = vmatpush1.bf16.msra.mxu1 %v8447_v12  ;;  %v8545_v11 = vld [vmem:[%s11187_s1 + $0x17a4] ss:$16 sps:$4 sm:$0xff]   ;;  %v8548_v12 = vld [vmem:[%s11187_s1 + $0x17ac] ss:$16 sps:$4 sm:$0xff]  }
 0x2b8   :  { %5360 = vmatprep.subr.bf16.mxu0 %v8452_v13  ;;  %5919 = vmatprep.subr.bf16.mxu1 %v8455_v14  ;;  %v8543_v13 = vld [vmem:[%s11187_s1 + $0x17a0] ss:$16 sps:$4 sm:$0xff]   ;;  %v8546_v14 = vld [vmem:[%s11187_s1 + $0x17a8] ss:$16 sps:$4 sm:$0xff]  }
 0x2bb   :  { %5361 = vmatpush1.bf16.msra.mxu0 %v8450_v15  ;;  %5920 = vmatpush1.bf16.msra.mxu1 %v8453_v16  ;;  %v8551_v15 = vld [vmem:[%s11187_s1 + $0x17c4] ss:$16 sps:$4 sm:$0xff]   ;;  %v8554_v16 = vld [vmem:[%s11187_s1 + $0x17cc] ss:$16 sps:$4 sm:$0xff]  }
 0x2bc   :  { %5362 = vmatprep.subr.bf16.mxu0 %v8458_v17  ;;  %5921 = vmatprep.subr.bf16.mxu1 %v8461_v18  ;;  %v8549_v17 = vld [vmem:[%s11187_s1 + $0x17c0] ss:$16 sps:$4 sm:$0xff]   ;;  %v8552_v18 = vld [vmem:[%s11187_s1 + $0x17c8] ss:$16 sps:$4 sm:$0xff]  }
 0x2bf   :  { %5363 = vmatpush1.bf16.msra.mxu0 %v8456_v19  ;;  %5922 = vmatpush1.bf16.msra.mxu1 %v8459_v20  ;;  %v8557_v19 = vld [vmem:[%s11187_s1 + $0x17e4] ss:$16 sps:$4 sm:$0xff]   ;;  %v8560_v20 = vld [vmem:[%s11187_s1 + $0x17ec] ss:$16 sps:$4 sm:$0xff]  }
 0x2c0   :  { %5375 = vmatprep.subr.bf16.mxu0 %v8467_v21  ;;  %5934 = vmatprep.subr.bf16.mxu1 %v8470_v22  ;;  %v8555_v21 = vld [vmem:[%s11187_s1 + $0x17e0] ss:$16 sps:$4 sm:$0xff]   ;;  %v8558_v22 = vld [vmem:[%s11187_s1 + $0x17e8] ss:$16 sps:$4 sm:$0xff]  }
 0x2c2   :  { %5365 = vmatmul.mubr.bf16.vlgmr.msra.gmra.mrb[0].mxu0 %v8462_v23  ;;  %5924 = vmatmul.mubr.bf16.vlgmr.msra.gmra.mrb[0].mxu1 %v8462_v23  ;;  %v8566_v23 = vld [vmem:[%s11187_s1 + $0x1804] ss:$16 sps:$4 sm:$0xff]  }
 0x2c3   :  { %5376 = vmatpush1.bf16.msra.mxu0 %v8465_v24  ;;  %5935 = vmatpush1.bf16.msra.mxu1 %v8468_v25  ;;  %v8569_v24 = vld [vmem:[%s11187_s1 + $0x180c] ss:$16 sps:$4 sm:$0xff]  }
 0x2c4   :  { %5377 = vmatprep.subr.bf16.mxu0 %v8473_v26  ;;  %5936 = vmatprep.subr.bf16.mxu1 %v8476_v27  ;;  %v8561_v25 = vld [vmem:[%s11188_s0 + $0x58] ss:$100 sps:$4 sm:$0xff]   ;;  %v8564_v26 = vld [vmem:[%s11187_s1 + $0x1800] ss:$16 sps:$4 sm:$0xff]  }
 0x2c5   :  { %5407 = vmatprep.mubr.bf16.mxu0 %v8563_v28  ;;  %5966 = vmatprep.mubr.bf16.mxu1 %v8563_v28  ;;  %v8567_v27 = vld [vmem:[%s11187_s1 + $0x1808] ss:$16 sps:$4 sm:$0xff]   ;;  %v8572_v28 = vld [vmem:[%s11187_s1 + $0x1824] ss:$16 sps:$4 sm:$0xff]  }
 0x2c7   :  { %5378 = vmatpush1.bf16.msra.mxu0 %v8471_v29  ;;  %5937 = vmatpush1.bf16.msra.mxu1 %v8474_v30  ;;  %v8575_v29 = vld [vmem:[%s11187_s1 + $0x182c] ss:$16 sps:$4 sm:$0xff]   ;;  %v8570_v30 = vld [vmem:[%s11187_s1 + $0x1820] ss:$16 sps:$4 sm:$0xff]  }
 0x2c8   :  { %5379 = vmatprep.subr.bf16.mxu0 %v8479_v31  ;;  %5938 = vmatprep.subr.bf16.mxu1 %v8482_v32  ;;  %v8573_v31 = vld [vmem:[%s11187_s1 + $0x1828] ss:$16 sps:$4 sm:$0xff]   ;;  %v8578_v32 = vld [vmem:[%s11187_s1 + $0x1844] ss:$16 sps:$4 sm:$0xff]  }
 0x2cb   :  { %5380 = vmatpush1.bf16.msra.mxu0 %v8477_v33  ;;  %5939 = vmatpush1.bf16.msra.mxu1 %v8480_v34  ;;  %v8581_v33 = vld [vmem:[%s11187_s1 + $0x184c] ss:$16 sps:$4 sm:$0xff]   ;;  %v8621_v34 = vmov 0  }
 0x2cc   :  { %5381 = vmatprep.subr.bf16.mxu0 %v8485_v35  ;;  %5940 = vmatprep.subr.bf16.mxu1 %v8488_v36  ;;  %v8576_v35 = vld [vmem:[%s11187_s1 + $0x1840] ss:$16 sps:$4 sm:$0xff]   ;;  %v8579_v36 = vld [vmem:[%s11187_s1 + $0x1848] ss:$16 sps:$4 sm:$0xff]  }
 0x2cf   :  { %5382 = vmatpush1.bf16.msra.mxu0 %v8483_v37  ;;  %5941 = vmatpush1.bf16.msra.mxu1 %v8486_v38  ;;  %v8584_v37 = vld [vmem:[%s11187_s1 + $0x1864] ss:$16 sps:$4 sm:$0xff]   ;;  %v8587_v38 = vld [vmem:[%s11187_s1 + $0x186c] ss:$16 sps:$4 sm:$0xff]  }
 0x2d0   :  { %5383 = vmatprep.subr.bf16.mxu0 %v8491_v39  ;;  %5942 = vmatprep.subr.bf16.mxu1 %v8494_v40  ;;  %v8582_v39 = vld [vmem:[%s11187_s1 + $0x1860] ss:$16 sps:$4 sm:$0xff]   ;;  %v8585_v40 = vld [vmem:[%s11187_s1 + $0x1868] ss:$16 sps:$4 sm:$0xff]  }
 0x2d3   :  { %5384 = vmatpush1.bf16.msra.mxu0 %v8489_v41  ;;  %5943 = vmatpush1.bf16.msra.mxu1 %v8492_v42  ;;  %v8589_v41 = vld [vmem:[%s11189_s3 + $0x40] sm:$0xff]  }
 0x2d4   :  { %5385 = vmatprep.subr.bf16.mxu0 %v8497_v43  ;;  %5944 = vmatprep.subr.bf16.mxu1 %v8500_v44  ;;  %v8590_v42 = vld [vmem:[%s11189_s3 + $0xc0] sm:$0xff]  }
 0x2d5   :  { %v8588_v43 = vld [vmem:[%s11188_s0 + $0x60] ss:$100 sps:$4 sm:$0xff]  }
 0x2d6   :  { %v8591_v44 = vld [vmem:[%s11189_s3] sm:$0xff]  }
 0x2d7   :  { %5386 = vmatpush1.bf16.msra.mxu0 %v8495_v45  ;;  %5945 = vmatpush1.bf16.msra.mxu1 %v8498_v46  ;;  %v8592_v45 = vld [vmem:[%s11189_s3 + $0x80] sm:$0xff]   ;;  %v8593_v46 = vld [vmem:[%s11189_s3 + $0x48] sm:$0xff]  }
 0x2d8   :  { %5387 = vmatprep.subr.bf16.mxu0 %v8503_v47  ;;  %5946 = vmatprep.subr.bf16.mxu1 %v8506_v48  ;;  %v8594_v47 = vld [vmem:[%s11189_s3 + $0xc8] sm:$0xff]  }
 0x2d9   :  { %v8595_v48 = vld [vmem:[%s11189_s3 + $0x8] sm:$0xff]  }
 0x2db   :  { %5388 = vmatpush1.bf16.msra.mxu0 %v8501_v49  ;;  %5947 = vmatpush1.bf16.msra.mxu1 %v8504_v50  ;;  %v8596_v49 = vld [vmem:[%s11189_s3 + $0x88] sm:$0xff]   ;;  %v8597_v50 = vld [vmem:[%s11189_s3 + $0x50] sm:$0xff]  }
 0x2dc   :  { %5389 = vmatprep.subr.bf16.mxu0 %v8509_v51  ;;  %5948 = vmatprep.subr.bf16.mxu1 %v8512_v52  ;;  %v8598_v51 = vld [vmem:[%s11189_s3 + $0xd0] sm:$0xff]  }
 0x2dd   :  { %v8599_v52 = vld [vmem:[%s11189_s3 + $0x10] sm:$0xff]  }
 0x2df   :  { %5390 = vmatpush1.bf16.msra.mxu0 %v8507_v53  ;;  %5949 = vmatpush1.bf16.msra.mxu1 %v8510_v54  ;;  %v8600_v53 = vld [vmem:[%s11189_s3 + $0x90] sm:$0xff]   ;;  %v8601_v54 = vld [vmem:[%s11189_s3 + $0x58] sm:$0xff]  }
 0x2e0   :  { %5391 = vmatprep.subr.bf16.mxu0 %v8515_v55  ;;  %5950 = vmatprep.subr.bf16.mxu1 %v8518_v56  ;;  %v8602_v55 = vld [vmem:[%s11189_s3 + $0xd8] sm:$0xff]  }
 0x2e1   :  { %v8603_v56 = vld [vmem:[%s11189_s3 + $0x18] sm:$0xff]  }
 0x2e3   :  { %5392 = vmatpush1.bf16.msra.mxu0 %v8513_v57  ;;  %5951 = vmatpush1.bf16.msra.mxu1 %v8516_v58  ;;  %v8604_v57 = vld [vmem:[%s11189_s3 + $0x98] sm:$0xff]   ;;  %v8605_v58 = vld [vmem:[%s11189_s3 + $0x60] sm:$0xff]  }
 0x2e4   :  { %5393 = vmatprep.subr.bf16.mxu0 %v8521_v59  ;;  %5952 = vmatprep.subr.bf16.mxu1 %v8524_v60  ;;  %v8606_v59 = vld [vmem:[%s11189_s3 + $0xe0] sm:$0xff]  }
 0x2e5   :  { %v8607_v60 = vld [vmem:[%s11189_s3 + $0x20] sm:$0xff]  }
 0x2e7   :  { %5394 = vmatpush1.bf16.msra.mxu0 %v8519_v61  ;;  %5953 = vmatpush1.bf16.msra.mxu1 %v8522_v62  ;;  %v8608_v61 = vld [vmem:[%s11189_s3 + $0xa0] sm:$0xff]   ;;  %v8609_v62 = vld [vmem:[%s11189_s3 + $0x68] sm:$0xff]  }
 0x2e8   :  { %5395 = vmatprep.subr.bf16.mxu0 %v8527_v63  ;;  %5954 = vmatprep.subr.bf16.mxu1 %v8530_v0  ;;  %v8610_v63 = vld [vmem:[%s11189_s3 + $0xe8] sm:$0xff]  }
 0x2e9   :  { %v8611_v0 = vld [vmem:[%s11189_s3 + $0x28] sm:$0xff]  }
 0x2eb   :  { %5396 = vmatpush1.bf16.msra.mxu0 %v8525_v1  ;;  %5955 = vmatpush1.bf16.msra.mxu1 %v8528_v2  ;;  %v8612_v1 = vld [vmem:[%s11189_s3 + $0xa8] sm:$0xff]   ;;  %v8613_v2 = vld [vmem:[%s11189_s3 + $0x70] sm:$0xff]  }
 0x2ec   :  { %5397 = vmatprep.subr.bf16.mxu0 %v8533_v3  ;;  %5956 = vmatprep.subr.bf16.mxu1 %v8536_v4  ;;  %v8614_v3 = vld [vmem:[%s11189_s3 + $0xf0] sm:$0xff]  }
 0x2ed   :  { %v8615_v4 = vld [vmem:[%s11189_s3 + $0x30] sm:$0xff]  }
 0x2ef   :  { %5398 = vmatpush1.bf16.msra.mxu0 %v8531_v5  ;;  %5957 = vmatpush1.bf16.msra.mxu1 %v8534_v6  ;;  %v8616_v5 = vld [vmem:[%s11189_s3 + $0xb0] sm:$0xff]   ;;  %v8617_v6 = vld [vmem:[%s11189_s3 + $0x78] sm:$0xff]  }
 0x2f0   :  { %5399 = vmatprep.subr.bf16.mxu0 %v8539_v7  ;;  %5958 = vmatprep.subr.bf16.mxu1 %v8542_v8  ;;  %v8618_v7 = vld [vmem:[%s11189_s3 + $0xf8] sm:$0xff]  }
 0x2f1   :  { %v8619_v8 = vld [vmem:[%s11189_s3 + $0x38] sm:$0xff]  }
 0x2f3   :  { %5400 = vmatpush1.bf16.msra.mxu0 %v8537_v9  ;;  %5959 = vmatpush1.bf16.msra.mxu1 %v8540_v10  ;;  %v8620_v9 = vld [vmem:[%s11189_s3 + $0xb8] sm:$0xff]   ;;  %v833_v10 = vlaneseq }
 0x2f4   :  { %5401 = vmatprep.subr.bf16.mxu0 %v8545_v11  ;;  %5960 = vmatprep.subr.bf16.mxu1 %v8548_v12 }
 0x2f5   :  { %v834_v11 = vshrl.u32 %v833_v10, 7 }
 0x2f7   :  { %5402 = vmatpush1.bf16.msra.mxu0 %v8543_v13  ;;  %5961 = vmatpush1.bf16.msra.mxu1 %v8546_v14  ;;  %v835_v12 = vsub.s32 0, %v834_v11  ;;  %v843_v13 = vsub.s32 2, %v834_v11  ;;  %v831_v14 = vld [vmem:[%s11190_s2] sm:$0xf] }
 0x2f8   :  { %5403 = vmatprep.subr.bf16.mxu0 %v8551_v15  ;;  %5962 = vmatprep.subr.bf16.mxu1 %v8554_v16  ;;  %v839_v15 = vsub.s32 1, %v834_v11  ;;  %v847_v16 = vsub.s32 3, %v834_v11 }
 0x2fb   :  { %5404 = vmatpush1.bf16.msra.mxu0 %v8549_v17  ;;  %5963 = vmatpush1.bf16.msra.mxu1 %v8552_v18  ;;  %v836_v17 = vrot.slane %v831_v14, %v835_v12  ;;  %v844_v18 = vrot.slane %v831_v14, %v843_v13 }
 0x2fc   :  { %5405 = vmatprep.subr.bf16.mxu0 %v8557_v19  ;;  %5964 = vmatprep.subr.bf16.mxu1 %v8560_v20  ;;  %v840_v19 = vrot.slane %v831_v14, %v839_v15  ;;  %v848_v20 = vrot.slane %v831_v14, %v847_v16 }
 0x2ff   :  { %5406 = vmatpush1.bf16.msra.mxu0 %v8555_v21  ;;  %5965 = vmatpush1.bf16.msra.mxu1 %v8558_v22 }
 0x300   :  { %5418 = vmatprep.subr.bf16.mxu0 %v8566_v23  ;;  %5977 = vmatprep.subr.bf16.mxu1 %v8569_v24 }
 0x302   :  { %5408 = vmatmul.mubr.bf16.vlgmr.msra.gmra.mrb[0].mxu0 %v8561_v25  ;;  %5967 = vmatmul.mubr.bf16.vlgmr.msra.gmra.mrb[0].mxu1 %v8561_v25 }
 0x303   :  { %5419 = vmatpush1.bf16.msra.mxu0 %v8564_v26  ;;  %5978 = vmatpush1.bf16.msra.mxu1 %v8567_v27 }
 0x304   :  { %5420 = vmatprep.subr.bf16.mxu0 %v8572_v28  ;;  %5979 = vmatprep.subr.bf16.mxu1 %v8575_v29 }
 0x305   :  { %5450 = vmatprep.mubr.bf16.mxu0 %v8621_v34  ;;  %6009 = vmatprep.mubr.bf16.mxu1 %v8621_v34 }
 0x307   :  { %5421 = vmatpush1.bf16.msra.mxu0 %v8570_v30  ;;  %5980 = vmatpush1.bf16.msra.mxu1 %v8573_v31 }
 0x308   :  { %5422 = vmatprep.subr.bf16.mxu0 %v8578_v32  ;;  %5981 = vmatprep.subr.bf16.mxu1 %v8581_v33 }
 0x30b   :  { %5423 = vmatpush1.bf16.msra.mxu0 %v8576_v35  ;;  %5982 = vmatpush1.bf16.msra.mxu1 %v8579_v36 }
 0x30c   :  { %5424 = vmatprep.subr.bf16.mxu0 %v8584_v37  ;;  %5983 = vmatprep.subr.bf16.mxu1 %v8587_v38 }
 0x30f   :  { %5425 = vmatpush1.bf16.msra.mxu0 %v8582_v39  ;;  %5984 = vmatpush1.bf16.msra.mxu1 %v8585_v40 }
 0x310   :  { %7227 = vmatprep.subr.bf16.mxu0 %v8589_v41  ;;  %7249 = vmatprep.subr.bf16.mxu1 %v8590_v42 }
 0x312   :  { %7192 = vmatmul.mubr.msk.bf16.vlgmr.msra.gmra.mrb[0].mxu0 %vm4898_vm0, %v8588_v43  ;;  %7193 = vmatmul.mubr.msk.bf16.vlgmr.msra.gmra.mrb[0].mxu1 %vm4898_vm0, %v8588_v43 }
 0x313   :  { %7228 = vmatpush3.bf16.msra.mxu0 %v8591_v44  ;;  %7250 = vmatpush3.bf16.msra.mxu1 %v8592_v45 }
 0x314   :  { %7229 = vmatprep.subr.bf16.mxu0 %v8593_v46  ;;  %7251 = vmatprep.subr.bf16.mxu1 %v8594_v47 }
 0x317   :  { %7230 = vmatpush3.bf16.msra.mxu0 %v8595_v48  ;;  %7252 = vmatpush3.bf16.msra.mxu1 %v8596_v49 }
 0x318   :  { %7231 = vmatprep.subr.bf16.mxu0 %v8597_v50  ;;  %7253 = vmatprep.subr.bf16.mxu1 %v8598_v51  ;;  %v7194_v51 = vld [vmem:[%s11191_s4] ss:$0 sm:$0xff] }
 0x31b   :  { %7232 = vmatpush3.bf16.msra.mxu0 %v8599_v52  ;;  %7254 = vmatpush3.bf16.msra.mxu1 %v8600_v53 }
 0x31c   :  { %7233 = vmatprep.subr.bf16.mxu0 %v8601_v54  ;;  %7255 = vmatprep.subr.bf16.mxu1 %v8602_v55 }
 0x31f   :  { %7234 = vmatpush3.bf16.msra.mxu0 %v8603_v56  ;;  %7256 = vmatpush3.bf16.msra.mxu1 %v8604_v57 }
 0x320   :  { %7235 = vmatprep.subr.bf16.mxu0 %v8605_v58  ;;  %7257 = vmatprep.subr.bf16.mxu1 %v8606_v59 }
 0x323   :  { %7236 = vmatpush3.bf16.msra.mxu0 %v8607_v60  ;;  %7258 = vmatpush3.bf16.msra.mxu1 %v8608_v61 }
 0x324   :  { %7237 = vmatprep.subr.bf16.mxu0 %v8609_v62  ;;  %7259 = vmatprep.subr.bf16.mxu1 %v8610_v63 }
 0x327   :  { %7238 = vmatpush3.bf16.msra.mxu0 %v8611_v0  ;;  %7260 = vmatpush3.bf16.msra.mxu1 %v8612_v1 }
 0x328   :  { %7239 = vmatprep.subr.bf16.mxu0 %v8613_v2  ;;  %7261 = vmatprep.subr.bf16.mxu1 %v8614_v3 }
 0x32b   :  { %7240 = vmatpush3.bf16.msra.mxu0 %v8615_v4  ;;  %7262 = vmatpush3.bf16.msra.mxu1 %v8616_v5 }
 0x32c   :  { %7241 = vmatprep.subr.bf16.mxu0 %v8617_v6  ;;  %7263 = vmatprep.subr.bf16.mxu1 %v8618_v7 }
 0x32f   :  { %7242 = vmatpush3.bf16.msra.mxu0 %v8619_v8  ;;  %7264 = vmatpush3.bf16.msra.mxu1 %v8620_v9 }
 0x3e5   :  { %v5452_v21 = vpop.f32.mrb[0].mxu0  ;;  %v6011_v22 = vpop.f32.mrb[0].mxu1 }
 0x3e6   :  { %v7271_v23 = vadd.f32 %v5452_v21, %v836_v17  ;;  %v7275_v24 = vadd.f32 %v6011_v22, %v844_v18  ;;  %v5454_v25 = vpop.f32.mrb[1].mxu0  ;;  %v6013_v26 = vpop.f32.mrb[1].mxu1 }
 0x3e7   :  { %v7272_v27 = vadd.f32 %v5454_v25, %v840_v19  ;;  %v7276_v28 = vadd.f32 %v6013_v26, %v848_v20  ;;  %v5456_v29 = vpop.f32.mrb[2].mxu0  ;;  %v6015_v30 = vpop.f32.mrb[2].mxu1 }
 0x3e8   :  { %v7273_v31 = vadd.f32 %v5456_v29, %v836_v17  ;;  %v7277_v32 = vadd.f32 %v6015_v30, %v844_v18  ;;  %v5458_v33 = vpop.f32.mrb[3].mxu0  ;;  %v6017_v34 = vpop.f32.mrb[3].mxu1  ;;  %v6020_v37 = vmax.f32 %v7271_v23, 0.0  ;;  %v6022_v38 = vmax.f32 %v7275_v24, 0.0 }
 0x3e9   :  { %v7274_v35 = vadd.f32 %v5458_v33, %v840_v19  ;;  %v7278_v36 = vadd.f32 %v6017_v34, %v848_v20  ;;  %v6021_v41 = vmax.f32 %v7272_v27, 0.0  ;;  %v6023_v42 = vmax.f32 %v7276_v28, 0.0 }
 0x3ea   :  { %v6024_v39 = vmax.f32 %v7273_v31, 0.0  ;;  %v6026_v40 = vmax.f32 %v7277_v32, 0.0 }
 0x3eb   :  { %v6025_v43 = vmax.f32 %v7274_v35, 0.0  ;;  %v6027_v44 = vmax.f32 %v7278_v36, 0.0 }
 0x3ec   :  { %v6028_v45 = vpack.c.bf16 %v6024_v39, %v6020_v37  ;;  %v6030_v46 = vpack.c.bf16 %v6026_v40, %v6022_v38 }
 0x3ed   :  { %v6029_v47 = vpack.c.bf16 %v6025_v43, %v6021_v41  ;;  %v6031_v48 = vpack.c.bf16 %v6027_v44, %v6023_v42 }
 0x3ef   :  { %6327 = vmatprep.mubr.bf16.mxu0 %v6029_v47  ;;  %6368 = vmatprep.mubr.bf16.mxu1 %v6031_v48 }
 0x3f0   :  { %6328 = vmatmul.mubr.bf16.vlgmr.msra.gmra.mrb[4].mxu0 %v6028_v45  ;;  %6369 = vmatmul.mubr.bf16.vlgmr.msra.gmra.mrb[4].mxu1 %v6030_v46 }
 0x4c3   :  { %v7243_v49 = vpop.f32.mrb[4].mxu0  ;;  %v7265_v50 = vpop.f32.mrb[4].mxu1 }
 0x4c4   :  { %v7244_v52 = vpop.f32.mrb[5].mxu0  ;;  %v7266_v53 = vpop.f32.mrb[5].mxu1 }
 0x4c5   :  { %v7245_v54 = vadd.f32 %v7244_v52, %v7243_v49  ;;  %v7267_v55 = vadd.f32 %v7266_v53, %v7265_v50  ;;  %v7246_v56 = vpop.f32.mrb[6].mxu0  ;;  %v7268_v57 = vpop.f32.mrb[6].mxu1 }
 0x4c6   :  { %v7247_v58 = vpop.f32.mrb[7].mxu0  ;;  %v7269_v59 = vpop.f32.mrb[7].mxu1 }
 0x4c7   :  { %v6330_v60 = vadd.f32 %v7245_v54, %v7194_v51  ;;  %v7248_v61 = vadd.f32 %v7247_v58, %v7246_v56  ;;  %v7270_v62 = vadd.f32 %v7269_v59, %v7268_v57 }
 0x4c9   :  { %v6371_v63 = vadd.f32 %v7267_v55, %v6330_v60  ;;  %v6333_v0 = vadd.f32 %v7248_v61, %v7194_v51 }
 0x4cb   :  { %6377 = vst [vmem:[%s11192_s5] sm:$0xff] %v6371_v63  ;;  %v6374_v1 = vadd.f32 %v7270_v62, %v6333_v0 }
 0x4cd   :  { %6378 = vst [vmem:[%s11192_s5 + $0x8] sm:$0xff] %v6374_v1 }

</bundles_post_ra>
